<compile_context>
chip_gen: v6e
topology: v6e:2x2x1
jax: 0.10.0
libtpu: 0.0.40
codegen_flags: <defaults>
</compile_context>

<pallas_src>
import functools

import jax
import jax.numpy as jnp
import numpy as np
from jax import lax
from jax.experimental import pallas as pl
from jax.experimental.pallas import tpu as pltpu

BN_EPS = 1e-5
_MATMUL_DTYPE = jnp.bfloat16          # MXU input dtype (f32 accumulation)
_VMEM_LIMIT_BYTES = 32 * 1024 * 1024  # safe on v5e/v6e/v7x scoped-VMEM budgets


# ----------------------------------------------------------------------------
# helpers
# ----------------------------------------------------------------------------
def _round_up(x, m):
    return (x + m - 1) // m * m


def _pick_tile(dim, candidates):
    for c in candidates:
        if dim % c == 0:
            return c
    return dim


@functools.lru_cache(maxsize=1)
def _is_v5e():
    try:
        kind = jax.devices()[0].device_kind.lower()
    except Exception:
        return False
    return ("v5 lite" in kind) or ("v5e" in kind) or ("v5litepod" in kind)


# ----------------------------------------------------------------------------
# Pallas kernel: tiled matmul + folded BN (+ residual) (+ ReLU)
# ----------------------------------------------------------------------------
def _matmul_bn_act_kernel(*refs, use_residual, use_relu):
    """refs = (x, w, scale, bias, [residual], out, acc_scratch).

    Grid = (M_tiles, N_tiles, K_tiles), K innermost ("arbitrary").
      x     : (tm, tk)   bf16
      w     : (tk, tn)   bf16
      scale : (1, tn)    f32 folded-BN scale
      bias  : (1, tn)    f32 folded-BN bias
      res   : (tm, tn)   optional residual (added before ReLU)
      out   : (tm, tn)
      acc   : (tm, tn)   f32 VMEM accumulator scratch
    """
    if use_residual:
        x_ref, w_ref, s_ref, b_ref, r_ref, o_ref, acc_ref = refs
    else:
        x_ref, w_ref, s_ref, b_ref, o_ref, acc_ref = refs
        r_ref = None

    k = pl.program_id(2)

    @pl.when(k == 0)
    def _init():
        acc_ref[...] = jnp.zeros_like(acc_ref)

    acc_ref[...] += jnp.dot(x_ref[...], w_ref[...],
                            preferred_element_type=jnp.float32)

    @pl.when(k == pl.num_programs(2) - 1)
    def _finalize():
        y = acc_ref[...] * s_ref[...] + b_ref[...]
        if r_ref is not None:
            y = y + r_ref[...].astype(jnp.float32)
        if use_relu:
            y = jnp.maximum(y, 0.0)
        o_ref[...] = y.astype(o_ref.dtype)


def _matmul_bn_act(patches, w2, scale, bias, *, relu, residual2d=None,
                   out_dtype=jnp.float32):
    """out = act((patches @ w2) * scale + bias [+ residual]) with tiled Pallas."""
    M, K = patches.shape
    Cout = w2.shape[1]

    # --- pick lane/sublane-friendly, generation-aware tiles -----------------
    K_pad = _round_up(K, 128)
    Cout_pad = _round_up(Cout, 128)           # lane-dense output stores
    tk = _pick_tile(K_pad, (512, 256, 128))
    tn = _pick_tile(Cout_pad, (128,) if _is_v5e() else (256, 128))
    if M >= 1024:
        tm = 512
    elif M >= 256:
        tm = 256
    else:
        tm = _round_up(M, 8)
    M_pad = _round_up(M, tm)

    # --- zero-pad operands to the tiled shapes ------------------------------
    pad_m, pad_k, pad_n = M_pad - M, K_pad - K, Cout_pad - Cout
    if pad_m or pad_k:
        patches = jnp.pad(patches, ((0, pad_m), (0, pad_k)))
    if pad_k or pad_n:
        w2 = jnp.pad(w2, ((0, pad_k), (0, pad_n)))
    scale2 = scale.reshape(1, Cout).astype(jnp.float32)
    bias2 = bias.reshape(1, Cout).astype(jnp.float32)
    if pad_n:
        scale2 = jnp.pad(scale2, ((0, 0), (0, pad_n)))
        bias2 = jnp.pad(bias2, ((0, 0), (0, pad_n)))
    if residual2d is not None and (pad_m or pad_n):
        residual2d = jnp.pad(residual2d, ((0, pad_m), (0, pad_n)))

    grid = (M_pad // tm, Cout_pad // tn, K_pad // tk)

    in_specs = [
        pl.BlockSpec((tm, tk), lambda i, j, k: (i, k)),
        pl.BlockSpec((tk, tn), lambda i, j, k: (k, j)),
        pl.BlockSpec((1, tn), lambda i, j, k: (0, j)),
        pl.BlockSpec((1, tn), lambda i, j, k: (0, j)),
    ]
    args = [patches, w2, scale2, bias2]
    if residual2d is not None:
        in_specs.append(pl.BlockSpec((tm, tn), lambda i, j, k: (i, j)))
        args.append(residual2d)

    flops = 2 * M_pad * K_pad * Cout_pad
    bytes_accessed = (
        patches.size * patches.dtype.itemsize
        + w2.size * w2.dtype.itemsize
        + M_pad * Cout_pad * jnp.dtype(out_dtype).itemsize
        + (residual2d.size * residual2d.dtype.itemsize
           if residual2d is not None else 0))

    out2d = pl.pallas_call(
        functools.partial(_matmul_bn_act_kernel,
                          use_residual=residual2d is not None,
                          use_relu=relu),
        out_shape=jax.ShapeDtypeStruct((M_pad, Cout_pad), out_dtype),
        grid=grid,
        in_specs=in_specs,
        out_specs=pl.BlockSpec((tm, tn), lambda i, j, k: (i, j)),
        scratch_shapes=[pltpu.VMEM((tm, tn), jnp.float32)],
        compiler_params=pltpu.CompilerParams(
            dimension_semantics=("parallel", "parallel", "arbitrary"),
            vmem_limit_bytes=_VMEM_LIMIT_BYTES),
        cost_estimate=pl.CostEstimate(flops=flops, transcendentals=0,
                                      bytes_accessed=bytes_accessed),
    )(*args)

    return out2d[:M, :Cout]


# ----------------------------------------------------------------------------
# Conv wrappers (glue: padding, im2col for 3x3, weight reshape, BN fold)
# ----------------------------------------------------------------------------
def _im2col(x_nhwc, kh, kw, stride, dilation, pad):
    N, H, W, C = x_nhwc.shape
    xp = jnp.pad(x_nhwc, ((0, 0), (pad, pad), (pad, pad), (0, 0)))
    Hp, Wp = H + 2 * pad, W + 2 * pad
    Ho = (Hp - dilation * (kh - 1) - 1) // stride + 1
    Wo = (Wp - dilation * (kw - 1) - 1) // stride + 1
    cols = []
    for i in range(kh):
        for j in range(kw):
            hi, wj = i * dilation, j * dilation
            cols.append(
                xp[:, hi:hi + (Ho - 1) * stride + 1:stride,
                      wj:wj + (Wo - 1) * stride + 1:stride, :])
    patches = jnp.concatenate(cols, axis=-1)        # (N, Ho, Wo, kh*kw*C)
    return patches.reshape(N * Ho * Wo, kh * kw * C), (N, Ho, Wo)


def conv_bn_act(x_nhwc, w, bn, *, stride=1, dilation=1, pad=0, relu=False,
                residual_nhwc=None, out_dtype=jnp.float32):
    """Conv2d(bias=False) + folded inference-mode BN (+residual) (+ReLU)."""
    Cout, Cin, kh, kw = w.shape
    if kh == 1 and kw == 1:
        # 1x1 conv: no im2col, the NHWC tensor is already the matmul operand.
        xs = x_nhwc if stride == 1 else x_nhwc[:, ::stride, ::stride, :]
        N, Ho, Wo, _ = xs.shape
        patches = xs.reshape(N * Ho * Wo, Cin)
        w2 = w.reshape(Cout, Cin).T                 # (Cin, Cout)
    else:
        patches, (N, Ho, Wo) = _im2col(x_nhwc, kh, kw, stride, dilation, pad)
        # PyTorch (Cout, Cin, kh, kw) -> (kh*kw*Cin, Cout), matching the
        # im2col tap order (i, j, c).
        w2 = jnp.transpose(w, (2, 3, 1, 0)).reshape(kh * kw * Cin, Cout)

    scale = bn["gamma"] / jnp.sqrt(bn["var"] + BN_EPS)
    bias = bn["beta"] - bn["mean"] * scale

    patches = patches.astype(_MATMUL_DTYPE)
    w2 = w2.astype(_MATMUL_DTYPE)

    res2d = None
    if residual_nhwc is not None:
        res2d = residual_nhwc.reshape(N * Ho * Wo, Cout).astype(jnp.float32)

    out2d = _matmul_bn_act(patches, w2, scale, bias, relu=relu,
                           residual2d=res2d, out_dtype=out_dtype)
    return out2d.reshape(N, Ho, Wo, Cout)


# ----------------------------------------------------------------------------
# Bottleneck forward (matches the PyTorch module semantics)
# ----------------------------------------------------------------------------
def bottleneck_forward_nhwc(p, x_nhwc, *, stride=1, dilation=1):
    out = conv_bn_act(x_nhwc, p["w1"], p["bn1"], relu=True,
                      out_dtype=_MATMUL_DTYPE)
    out = conv_bn_act(out, p["w2"], p["bn2"], stride=stride, dilation=dilation,
                      pad=dilation, relu=True, out_dtype=_MATMUL_DTYPE)
    if "wd" in p:   # downsample = Conv1x1(stride) + BN
        residual = conv_bn_act(x_nhwc, p["wd"], p["bnd"], stride=stride,
                               relu=False, out_dtype=jnp.float32)
    else:
        residual = x_nhwc.astype(jnp.float32)
    # conv3 -> bn3 -> (+residual) -> relu, fused into one kernel call
    out = conv_bn_act(out, p["w3"], p["bn3"], relu=True,
                      residual_nhwc=residual, out_dtype=jnp.float32)
    return out


def bottleneck_forward(params, x_nchw, *, stride=1, dilation=1):
    x = jnp.transpose(x_nchw, (0, 2, 3, 1))         # NCHW -> NHWC
    y = bottleneck_forward_nhwc(params, x, stride=stride, dilation=dilation)
    return jnp.transpose(y, (0, 3, 1, 2))           # NHWC -> NCHW


# ----------------------------------------------------------------------------
# Pure-JAX reference (same bf16-input / f32-accumulate numerics)
# ----------------------------------------------------------------------------
def _ref_conv_bn_act(x_nhwc, w, bn, *, stride=1, dilation=1, pad=0, relu=False,
                     residual_nhwc=None, out_dtype=jnp.float32):
    w_hwio = jnp.transpose(w, (2, 3, 1, 0)).astype(_MATMUL_DTYPE)
    y = lax.conv_general_dilated(
        x_nhwc.astype(_MATMUL_DTYPE), w_hwio,
        window_strides=(stride, stride),
        padding=[(pad, pad), (pad, pad)],
        rhs_dilation=(dilation, dilation),
        dimension_numbers=("NHWC", "HWIO", "NHWC"),
        preferred_element_type=jnp.float32)
    scale = bn["gamma"] / jnp.sqrt(bn["var"] + BN_EPS)
    bias = bn["beta"] - bn["mean"] * scale
    y = y * scale + bias
    if residual_nhwc is not None:
        y = y + residual_nhwc.astype(jnp.float32)
    if relu:
        y = jnp.maximum(y, 0.0)
    return y.astype(out_dtype)


def _ref_bottleneck(params, x_nchw, *, stride=1, dilation=1):
    x = jnp.transpose(x_nchw, (0, 2, 3, 1))
    out = _ref_conv_bn_act(x, params["w1"], params["bn1"], relu=True,
                           out_dtype=_MATMUL_DTYPE)
    out = _ref_conv_bn_act(out, params["w2"], params["bn2"], stride=stride,
                           dilation=dilation, pad=dilation, relu=True,
                           out_dtype=_MATMUL_DTYPE)
    if "wd" in params:
        residual = _ref_conv_bn_act(x, params["wd"], params["bnd"],
                                    stride=stride, relu=False,
                                    out_dtype=jnp.float32)
    else:
        residual = x.astype(jnp.float32)
    out = _ref_conv_bn_act(out, params["w3"], params["bn3"], relu=True,
                           residual_nhwc=residual, out_dtype=jnp.float32)
    return jnp.transpose(out, (0, 3, 1, 2))


# ----------------------------------------------------------------------------
# Deterministic parameter init (kaiming-normal convs, unit inference-mode BN)
# ----------------------------------------------------------------------------
def init_bottleneck_params(key, inplanes, planes, stride=1, expansion=4):
    with_downsample = (stride != 1) or (inplanes != planes * expansion)
    keys = jax.random.split(key, 4)

    def conv_w(k, cout, cin, kh, kw):
        std = (2.0 / (cin * kh * kw)) ** 0.5       # kaiming_normal_ (fan_in)
        return jax.random.normal(k, (cout, cin, kh, kw), jnp.float32) * std

    def bn(c):
        return dict(gamma=jnp.ones((c,), jnp.float32),
                    beta=jnp.zeros((c,), jnp.float32),
                    mean=jnp.zeros((c,), jnp.float32),
                    var=jnp.ones((c,), jnp.float32))

    p = dict(w1=conv_w(keys[0], planes, inplanes, 1, 1), bn1=bn(planes),
             w2=conv_w(keys[1], planes, planes, 3, 3), bn2=bn(planes),
             w3=conv_w(keys[2], planes * expansion, planes, 1, 1),
             bn3=bn(planes * expansion))
    if with_downsample:
        p["wd"] = conv_w(keys[3], planes * expansion, inplanes, 1, 1)
        p["bnd"] = bn(planes * expansion)
    return p


if __name__ == "__main__":
    key = jax.random.PRNGKey(0)
    kpA, kxA, kpB, kxB = jax.random.split(key, 4)

    fwd = jax.jit(bottleneck_forward, static_argnames=("stride", "dilation"))

    # Block A: stride-2 bottleneck with 1x1 downsample (ResNet layer2[0] style).
    pA = init_bottleneck_params(kpA, inplanes=256, planes=128, stride=2)
    xA = jax.random.normal(kxA, (2, 256, 16, 16), jnp.float32)
    outA = fwd(pA, xA, stride=2, dilation=1)

    # Block B: identity-residual bottleneck with dilation=2 (DeepLab layer4 style).
    pB = init_bottleneck_params(kpB, inplanes=512, planes=128, stride=1)
    xB = jax.random.normal(kxB, (2, 512, 8, 8), jnp.float32)
    outB = fwd(pB, xB, stride=1, dilation=2)

    jax.block_until_ready((outA, outB))

    assert outA.shape == (2, 512, 8, 8), outA.shape
    assert outB.shape == (2, 512, 8, 8), outB.shape
    assert jnp.isfinite(outA).all() and jnp.isfinite(outB).all()

    refA = _ref_bottleneck(pA, xA, stride=2, dilation=1)
    refB = _ref_bottleneck(pB, xB, stride=1, dilation=2)
    np.testing.assert_allclose(np.asarray(outA), np.asarray(refA),
                               rtol=5e-2, atol=5e-2)
    np.testing.assert_allclose(np.asarray(outB), np.asarray(refB),
                               rtol=5e-2, atol=5e-2)

    print("KERNEL_OK")
</pallas_src>

<mosaic_0001>
module attributes {stable_mosaic.version = 11 : i64} {
  func.func @_matmul_bn_act_kernel(%arg0: i32, %arg1: i32, %arg2: i32, %arg3: memref<256x256xbf16, #tpu.memory_space<vmem>>, %arg4: memref<256x128xbf16, #tpu.memory_space<vmem>>, %arg5: memref<1x128xf32, #tpu.memory_space<vmem>>, %arg6: memref<1x128xf32, #tpu.memory_space<vmem>>, %arg7: memref<256x128xbf16, #tpu.memory_space<vmem>>, %arg8: memref<256x128xf32, #tpu.memory_space<vmem>>) attributes {dimension_semantics = [#tpu.dimension_semantics<parallel>, #tpu.dimension_semantics<parallel>, #tpu.dimension_semantics<arbitrary>], iteration_bounds = array<i64: 2, 1, 1>, scalar_prefetch = 0 : i64, scratch_operands = 1 : i64, tpu.core_type = #tpu.core_type<tc>, window_params = [{transform_indices = @transform_0, window_bounds = array<i64: 256, 256>}, {transform_indices = @transform_1, window_bounds = array<i64: 256, 128>}, {transform_indices = @transform_2, window_bounds = array<i64: 1, 128>}, {transform_indices = @transform_3, window_bounds = array<i64: 1, 128>}, {transform_indices = @transform_4, window_bounds = array<i64: 256, 128>}]} {
    %c0_i32 = arith.constant 0 : i32
    %0 = arith.cmpi eq, %arg2, %c0_i32 : i32
    %1 = arith.extui %0 : i1 to i32
    %c0_i32_0 = arith.constant 0 : i32
    %2 = arith.cmpi ne, %1, %c0_i32_0 : i32
    scf.if %2 {
      %cst_10 = arith.constant 0.000000e+00 : f32
      %12 = vector.broadcast %cst_10 : f32 to vector<256x128xf32>
      %c0_11 = arith.constant 0 : index
      %c0_12 = arith.constant 0 : index
      %13 = vector.load %arg8[%c0_11, %c0_12] : memref<256x128xf32, #tpu.memory_space<vmem>>, vector<256x128xf32>
      tpu.vector_store %arg8[%c0_11, %c0_12], %12 {strides = array<i32>} : memref<256x128xf32, #tpu.memory_space<vmem>>, vector<256x128xf32>,
    } else {
    }
    %c0 = arith.constant 0 : index
    %c0_1 = arith.constant 0 : index
    %3 = vector.load %arg8[%c0, %c0_1] : memref<256x128xf32, #tpu.memory_space<vmem>>, vector<256x128xf32>
    %c0_2 = arith.constant 0 : index
    %c0_3 = arith.constant 0 : index
    %4 = vector.load %arg3[%c0_2, %c0_3] : memref<256x256xbf16, #tpu.memory_space<vmem>>, vector<256x256xbf16>
    %c0_4 = arith.constant 0 : index
    %c0_5 = arith.constant 0 : index
    %5 = vector.load %arg4[%c0_4, %c0_5] : memref<256x128xbf16, #tpu.memory_space<vmem>>, vector<256x128xbf16>
    %cst = arith.constant dense<0.000000e+00> : vector<256x128xf32>
    %6 = tpu.matmul %4, %5, %cst {dimension_numbers = #tpu.dot_dimension_numbers<[1], [0], [0], [1], [0, 0, 1, 1], [], []>} : vector<256x256xbf16>, vector<256x128xbf16>, vector<256x128xf32> -> vector<256x128xf32>
    %7 = arith.addf %3, %6 : vector<256x128xf32>
    %c0_6 = arith.constant 0 : index
    %c0_7 = arith.constant 0 : index
    %8 = vector.load %arg8[%c0_6, %c0_7] : memref<256x128xf32, #tpu.memory_space<vmem>>, vector<256x128xf32>
    tpu.vector_store %arg8[%c0_6, %c0_7], %7 {strides = array<i32>} : memref<256x128xf32, #tpu.memory_space<vmem>>, vector<256x128xf32>,
    %c0_i32_8 = arith.constant 0 : i32
    %9 = arith.cmpi eq, %arg2, %c0_i32_8 : i32
    %10 = arith.extui %9 : i1 to i32
    %c0_i32_9 = arith.constant 0 : i32
    %11 = arith.cmpi ne, %10, %c0_i32_9 : i32
    scf.if %11 {
      %c0_10 = arith.constant 0 : index
      %c0_11 = arith.constant 0 : index
      %12 = vector.load %arg8[%c0_10, %c0_11] : memref<256x128xf32, #tpu.memory_space<vmem>>, vector<256x128xf32>
      %c0_12 = arith.constant 0 : index
      %c0_13 = arith.constant 0 : index
      %13 = vector.load %arg5[%c0_12, %c0_13] : memref<1x128xf32, #tpu.memory_space<vmem>>, vector<1x128xf32>
      %14 = vector.broadcast %13 : vector<1x128xf32> to vector<256x128xf32>
      %15 = arith.mulf %12, %14 : vector<256x128xf32>
      %c0_14 = arith.constant 0 : index
      %c0_15 = arith.constant 0 : index
      %16 = vector.load %arg6[%c0_14, %c0_15] : memref<1x128xf32, #tpu.memory_space<vmem>>, vector<1x128xf32>
      %17 = vector.broadcast %16 : vector<1x128xf32> to vector<256x128xf32>
      %18 = arith.addf %15, %17 : vector<256x128xf32>
      %cst_16 = arith.constant 0.000000e+00 : f32
      %19 = vector.broadcast %cst_16 : f32 to vector<256x128xf32>
      %20 = arith.maximumf %18, %19 : vector<256x128xf32>
      %21 = arith.truncf %20 : vector<256x128xf32> to vector<256x128xbf16>
      %c0_17 = arith.constant 0 : index
      %c0_18 = arith.constant 0 : index
      %22 = vector.load %arg7[%c0_17, %c0_18] : memref<256x128xbf16, #tpu.memory_space<vmem>>, vector<256x128xbf16>
      tpu.vector_store %arg7[%c0_17, %c0_18], %21 {strides = array<i32>} : memref<256x128xbf16, #tpu.memory_space<vmem>>, vector<256x128xbf16>,
    } else {
    }
    return
  }
  func.func @transform_0(%arg0: i32, %arg1: i32, %arg2: i32) -> (i32, i32) {
    %c0_i32 = arith.constant 0 : i32
    return %arg0, %arg2 : i32, i32
  }
  func.func @transform_1(%arg0: i32, %arg1: i32, %arg2: i32) -> (i32, i32) {
    %c0_i32 = arith.constant 0 : i32
    return %arg2, %arg1 : i32, i32
  }
  func.func @transform_2(%arg0: i32, %arg1: i32, %arg2: i32) -> (i32, i32) {
    %c0_i32 = arith.constant 0 : i32
    %c0_i32_0 = arith.constant 0 : i32
    return %c0_i32, %arg1 : i32, i32
  }
  func.func @transform_3(%arg0: i32, %arg1: i32, %arg2: i32) -> (i32, i32) {
    %c0_i32 = arith.constant 0 : i32
    %c0_i32_0 = arith.constant 0 : i32
    return %c0_i32, %arg1 : i32, i32
  }
  func.func @transform_4(%arg0: i32, %arg1: i32, %arg2: i32) -> (i32, i32) {
    %c0_i32 = arith.constant 0 : i32
    return %arg0, %arg1 : i32, i32
  }
}

module attributes {stable_mosaic.version = 11 : i64} {
  func.func @_matmul_bn_act_kernel(%arg0: i32, %arg1: i32, %arg2: i32, %arg3: memref<128x128xbf16, #tpu.memory_space<vmem>>, %arg4: memref<128x128xbf16, #tpu.memory_space<vmem>>, %arg5: memref<1x128xf32, #tpu.memory_space<vmem>>, %arg6: memref<1x128xf32, #tpu.memory_space<vmem>>, %arg7: memref<128x128xbf16, #tpu.memory_space<vmem>>, %arg8: memref<128x128xf32, #tpu.memory_space<vmem>>) attributes {dimension_semantics = [#tpu.dimension_semantics<parallel>, #tpu.dimension_semantics<parallel>, #tpu.dimension_semantics<arbitrary>], iteration_bounds = array<i64: 1, 1, 9>, scalar_prefetch = 0 : i64, scratch_operands = 1 : i64, tpu.core_type = #tpu.core_type<tc>, window_params = [{transform_indices = @transform_0, window_bounds = array<i64: 128, 128>}, {transform_indices = @transform_1, window_bounds = array<i64: 128, 128>}, {transform_indices = @transform_2, window_bounds = array<i64: 1, 128>}, {transform_indices = @transform_3, window_bounds = array<i64: 1, 128>}, {transform_indices = @transform_4, window_bounds = array<i64: 128, 128>}]} {
    %c0_i32 = arith.constant 0 : i32
    %0 = arith.cmpi eq, %arg2, %c0_i32 : i32
    %1 = arith.extui %0 : i1 to i32
    %c0_i32_0 = arith.constant 0 : i32
    %2 = arith.cmpi ne, %1, %c0_i32_0 : i32
    scf.if %2 {
      %cst_9 = arith.constant 0.000000e+00 : f32
      %12 = vector.broadcast %cst_9 : f32 to vector<128x128xf32>
      %c0_10 = arith.constant 0 : index
      %c0_11 = arith.constant 0 : index
      %13 = vector.load %arg8[%c0_10, %c0_11] : memref<128x128xf32, #tpu.memory_space<vmem>>, vector<128x128xf32>
      tpu.vector_store %arg8[%c0_10, %c0_11], %12 {strides = array<i32>} : memref<128x128xf32, #tpu.memory_space<vmem>>, vector<128x128xf32>,
    } else {
    }
    %c0 = arith.constant 0 : index
    %c0_1 = arith.constant 0 : index
    %3 = vector.load %arg8[%c0, %c0_1] : memref<128x128xf32, #tpu.memory_space<vmem>>, vector<128x128xf32>
    %c0_2 = arith.constant 0 : index
    %c0_3 = arith.constant 0 : index
    %4 = vector.load %arg3[%c0_2, %c0_3] : memref<128x128xbf16, #tpu.memory_space<vmem>>, vector<128x128xbf16>
    %c0_4 = arith.constant 0 : index
    %c0_5 = arith.constant 0 : index
    %5 = vector.load %arg4[%c0_4, %c0_5] : memref<128x128xbf16, #tpu.memory_space<vmem>>, vector<128x128xbf16>
    %cst = arith.constant dense<0.000000e+00> : vector<128x128xf32>
    %6 = tpu.matmul %4, %5, %cst {dimension_numbers = #tpu.dot_dimension_numbers<[1], [0], [0], [1], [0, 0, 1, 1], [], []>} : vector<128x128xbf16>, vector<128x128xbf16>, vector<128x128xf32> -> vector<128x128xf32>
    %7 = arith.addf %3, %6 : vector<128x128xf32>
    %c0_6 = arith.constant 0 : index
    %c0_7 = arith.constant 0 : index
    %8 = vector.load %arg8[%c0_6, %c0_7] : memref<128x128xf32, #tpu.memory_space<vmem>>, vector<128x128xf32>
    tpu.vector_store %arg8[%c0_6, %c0_7], %7 {strides = array<i32>} : memref<128x128xf32, #tpu.memory_space<vmem>>, vector<128x128xf32>,
    %c8_i32 = arith.constant 8 : i32
    %9 = arith.cmpi eq, %arg2, %c8_i32 : i32
    %10 = arith.extui %9 : i1 to i32
    %c0_i32_8 = arith.constant 0 : i32
    %11 = arith.cmpi ne, %10, %c0_i32_8 : i32
    scf.if %11 {
      %c0_9 = arith.constant 0 : index
      %c0_10 = arith.constant 0 : index
      %12 = vector.load %arg8[%c0_9, %c0_10] : memref<128x128xf32, #tpu.memory_space<vmem>>, vector<128x128xf32>
      %c0_11 = arith.constant 0 : index
      %c0_12 = arith.constant 0 : index
      %13 = vector.load %arg5[%c0_11, %c0_12] : memref<1x128xf32, #tpu.memory_space<vmem>>, vector<1x128xf32>
      %14 = vector.broadcast %13 : vector<1x128xf32> to vector<128x128xf32>
      %15 = arith.mulf %12, %14 : vector<128x128xf32>
      %c0_13 = arith.constant 0 : index
      %c0_14 = arith.constant 0 : index
      %16 = vector.load %arg6[%c0_13, %c0_14] : memref<1x128xf32, #tpu.memory_space<vmem>>, vector<1x128xf32>
      %17 = vector.broadcast %16 : vector<1x128xf32> to vector<128x128xf32>
      %18 = arith.addf %15, %17 : vector<128x128xf32>
      %cst_15 = arith.constant 0.000000e+00 : f32
      %19 = vector.broadcast %cst_15 : f32 to vector<128x128xf32>
      %20 = arith.maximumf %18, %19 : vector<128x128xf32>
      %21 = arith.truncf %20 : vector<128x128xf32> to vector<128x128xbf16>
      %c0_16 = arith.constant 0 : index
      %c0_17 = arith.constant 0 : index
      %22 = vector.load %arg7[%c0_16, %c0_17] : memref<128x128xbf16, #tpu.memory_space<vmem>>, vector<128x128xbf16>
      tpu.vector_store %arg7[%c0_16, %c0_17], %21 {strides = array<i32>} : memref<128x128xbf16, #tpu.memory_space<vmem>>, vector<128x128xbf16>,
    } else {
    }
    return
  }
  func.func @transform_0(%arg0: i32, %arg1: i32, %arg2: i32) -> (i32, i32) {
    %c0_i32 = arith.constant 0 : i32
    return %arg0, %arg2 : i32, i32
  }
  func.func @transform_1(%arg0: i32, %arg1: i32, %arg2: i32) -> (i32, i32) {
    %c0_i32 = arith.constant 0 : i32
    return %arg2, %arg1 : i32, i32
  }
  func.func @transform_2(%arg0: i32, %arg1: i32, %arg2: i32) -> (i32, i32) {
    %c0_i32 = arith.constant 0 : i32
    %c0_i32_0 = arith.constant 0 : i32
    return %c0_i32, %arg1 : i32, i32
  }
  func.func @transform_3(%arg0: i32, %arg1: i32, %arg2: i32) -> (i32, i32) {
    %c0_i32 = arith.constant 0 : i32
    %c0_i32_0 = arith.constant 0 : i32
    return %c0_i32, %arg1 : i32, i32
  }
  func.func @transform_4(%arg0: i32, %arg1: i32, %arg2: i32) -> (i32, i32) {
    %c0_i32 = arith.constant 0 : i32
    return %arg0, %arg1 : i32, i32
  }
}

module attributes {stable_mosaic.version = 11 : i64} {
  func.func @_matmul_bn_act_kernel(%arg0: i32, %arg1: i32, %arg2: i32, %arg3: memref<128x128xbf16, #tpu.memory_space<vmem>>, %arg4: memref<128x256xbf16, #tpu.memory_space<vmem>>, %arg5: memref<1x256xf32, #tpu.memory_space<vmem>>, %arg6: memref<1x256xf32, #tpu.memory_space<vmem>>, %arg7: memref<128x256xf32, #tpu.memory_space<vmem>>, %arg8: memref<128x256xf32, #tpu.memory_space<vmem>>, %arg9: memref<128x256xf32, #tpu.memory_space<vmem>>) attributes {dimension_semantics = [#tpu.dimension_semantics<parallel>, #tpu.dimension_semantics<parallel>, #tpu.dimension_semantics<arbitrary>], iteration_bounds = array<i64: 1, 2, 1>, scalar_prefetch = 0 : i64, scratch_operands = 1 : i64, tpu.core_type = #tpu.core_type<tc>, window_params = [{transform_indices = @transform_0, window_bounds = array<i64: 128, 128>}, {transform_indices = @transform_1, window_bounds = array<i64: 128, 256>}, {transform_indices = @transform_2, window_bounds = array<i64: 1, 256>}, {transform_indices = @transform_3, window_bounds = array<i64: 1, 256>}, {transform_indices = @transform_4, window_bounds = array<i64: 128, 256>}, {transform_indices = @transform_5, window_bounds = array<i64: 128, 256>}]} {
    %c0_i32 = arith.constant 0 : i32
    %0 = arith.cmpi eq, %arg2, %c0_i32 : i32
    %1 = arith.extui %0 : i1 to i32
    %c0_i32_0 = arith.constant 0 : i32
    %2 = arith.cmpi ne, %1, %c0_i32_0 : i32
    scf.if %2 {
      %cst_10 = arith.constant 0.000000e+00 : f32
      %12 = vector.broadcast %cst_10 : f32 to vector<128x256xf32>
      %c0_11 = arith.constant 0 : index
      %c0_12 = arith.constant 0 : index
      %13 = vector.load %arg9[%c0_11, %c0_12] : memref<128x256xf32, #tpu.memory_space<vmem>>, vector<128x256xf32>
      tpu.vector_store %arg9[%c0_11, %c0_12], %12 {strides = array<i32>} : memref<128x256xf32, #tpu.memory_space<vmem>>, vector<128x256xf32>,
    } else {
    }
    %c0 = arith.constant 0 : index
    %c0_1 = arith.constant 0 : index
    %3 = vector.load %arg9[%c0, %c0_1] : memref<128x256xf32, #tpu.memory_space<vmem>>, vector<128x256xf32>
    %c0_2 = arith.constant 0 : index
    %c0_3 = arith.constant 0 : index
    %4 = vector.load %arg3[%c0_2, %c0_3] : memref<128x128xbf16, #tpu.memory_space<vmem>>, vector<128x128xbf16>
    %c0_4 = arith.constant 0 : index
    %c0_5 = arith.constant 0 : index
    %5 = vector.load %arg4[%c0_4, %c0_5] : memref<128x256xbf16, #tpu.memory_space<vmem>>, vector<128x256xbf16>
    %cst = arith.constant dense<0.000000e+00> : vector<128x256xf32>
    %6 = tpu.matmul %4, %5, %cst {dimension_numbers = #tpu.dot_dimension_numbers<[1], [0], [0], [1], [0, 0, 1, 1], [], []>} : vector<128x128xbf16>, vector<128x256xbf16>, vector<128x256xf32> -> vector<128x256xf32>
    %7 = arith.addf %3, %6 : vector<128x256xf32>
    %c0_6 = arith.constant 0 : index
    %c0_7 = arith.constant 0 : index
    %8 = vector.load %arg9[%c0_6, %c0_7] : memref<128x256xf32, #tpu.memory_space<vmem>>, vector<128x256xf32>
    tpu.vector_store %arg9[%c0_6, %c0_7], %7 {strides = array<i32>} : memref<128x256xf32, #tpu.memory_space<vmem>>, vector<128x256xf32>,
    %c0_i32_8 = arith.constant 0 : i32
    %9 = arith.cmpi eq, %arg2, %c0_i32_8 : i32
    %10 = arith.extui %9 : i1 to i32
    %c0_i32_9 = arith.constant 0 : i32
    %11 = arith.cmpi ne, %10, %c0_i32_9 : i32
    scf.if %11 {
      %c0_10 = arith.constant 0 : index
      %c0_11 = arith.constant 0 : index
      %12 = vector.load %arg9[%c0_10, %c0_11] : memref<128x256xf32, #tpu.memory_space<vmem>>, vector<128x256xf32>
      %c0_12 = arith.constant 0 : index
      %c0_13 = arith.constant 0 : index
      %13 = vector.load %arg5[%c0_12, %c0_13] : memref<1x256xf32, #tpu.memory_space<vmem>>, vector<1x256xf32>
      %14 = vector.broadcast %13 : vector<1x256xf32> to vector<128x256xf32>
      %15 = arith.mulf %12, %14 : vector<128x256xf32>
      %c0_14 = arith.constant 0 : index
      %c0_15 = arith.constant 0 : index
      %16 = vector.load %arg6[%c0_14, %c0_15] : memref<1x256xf32, #tpu.memory_space<vmem>>, vector<1x256xf32>
      %17 = vector.broadcast %16 : vector<1x256xf32> to vector<128x256xf32>
      %18 = arith.addf %15, %17 : vector<128x256xf32>
      %c0_16 = arith.constant 0 : index
      %c0_17 = arith.constant 0 : index
      %19 = vector.load %arg7[%c0_16, %c0_17] : memref<128x256xf32, #tpu.memory_space<vmem>>, vector<128x256xf32>
      %20 = arith.addf %18, %19 : vector<128x256xf32>
      %cst_18 = arith.constant 0.000000e+00 : f32
      %21 = vector.broadcast %cst_18 : f32 to vector<128x256xf32>
      %22 = arith.maximumf %20, %21 : vector<128x256xf32>
      %c0_19 = arith.constant 0 : index
      %c0_20 = arith.constant 0 : index
      %23 = vector.load %arg8[%c0_19, %c0_20] : memref<128x256xf32, #tpu.memory_space<vmem>>, vector<128x256xf32>
      tpu.vector_store %arg8[%c0_19, %c0_20], %22 {strides = array<i32>} : memref<128x256xf32, #tpu.memory_space<vmem>>, vector<128x256xf32>,
    } else {
    }
    return
  }
  func.func @transform_0(%arg0: i32, %arg1: i32, %arg2: i32) -> (i32, i32) {
    %c0_i32 = arith.constant 0 : i32
    return %arg0, %arg2 : i32, i32
  }
  func.func @transform_1(%arg0: i32, %arg1: i32, %arg2: i32) -> (i32, i32) {
    %c0_i32 = arith.constant 0 : i32
    return %arg2, %arg1 : i32, i32
  }
  func.func @transform_2(%arg0: i32, %arg1: i32, %arg2: i32) -> (i32, i32) {
    %c0_i32 = arith.constant 0 : i32
    %c0_i32_0 = arith.constant 0 : i32
    return %c0_i32, %arg1 : i32, i32
  }
  func.func @transform_3(%arg0: i32, %arg1: i32, %arg2: i32) -> (i32, i32) {
    %c0_i32 = arith.constant 0 : i32
    %c0_i32_0 = arith.constant 0 : i32
    return %c0_i32, %arg1 : i32, i32
  }
  func.func @transform_4(%arg0: i32, %arg1: i32, %arg2: i32) -> (i32, i32) {
    %c0_i32 = arith.constant 0 : i32
    return %arg0, %arg1 : i32, i32
  }
  func.func @transform_5(%arg0: i32, %arg1: i32, %arg2: i32) -> (i32, i32) {
    %c0_i32 = arith.constant 0 : i32
    return %arg0, %arg1 : i32, i32
  }
}

module attributes {stable_mosaic.version = 11 : i64} {
  func.func @_matmul_bn_act_kernel(%arg0: i32, %arg1: i32, %arg2: i32, %arg3: memref<128x256xbf16, #tpu.memory_space<vmem>>, %arg4: memref<256x256xbf16, #tpu.memory_space<vmem>>, %arg5: memref<1x256xf32, #tpu.memory_space<vmem>>, %arg6: memref<1x256xf32, #tpu.memory_space<vmem>>, %arg7: memref<128x256xf32, #tpu.memory_space<vmem>>, %arg8: memref<128x256xf32, #tpu.memory_space<vmem>>) attributes {dimension_semantics = [#tpu.dimension_semantics<parallel>, #tpu.dimension_semantics<parallel>, #tpu.dimension_semantics<arbitrary>], iteration_bounds = array<i64: 1, 2, 1>, scalar_prefetch = 0 : i64, scratch_operands = 1 : i64, tpu.core_type = #tpu.core_type<tc>, window_params = [{transform_indices = @transform_0, window_bounds = array<i64: 128, 256>}, {transform_indices = @transform_1, window_bounds = array<i64: 256, 256>}, {transform_indices = @transform_2, window_bounds = array<i64: 1, 256>}, {transform_indices = @transform_3, window_bounds = array<i64: 1, 256>}, {transform_indices = @transform_4, window_bounds = array<i64: 128, 256>}]} {
    %c0_i32 = arith.constant 0 : i32
    %0 = arith.cmpi eq, %arg2, %c0_i32 : i32
    %1 = arith.extui %0 : i1 to i32
    %c0_i32_0 = arith.constant 0 : i32
    %2 = arith.cmpi ne, %1, %c0_i32_0 : i32
    scf.if %2 {
      %cst_10 = arith.constant 0.000000e+00 : f32
      %12 = vector.broadcast %cst_10 : f32 to vector<128x256xf32>
      %c0_11 = arith.constant 0 : index
      %c0_12 = arith.constant 0 : index
      %13 = vector.load %arg8[%c0_11, %c0_12] : memref<128x256xf32, #tpu.memory_space<vmem>>, vector<128x256xf32>
      tpu.vector_store %arg8[%c0_11, %c0_12], %12 {strides = array<i32>} : memref<128x256xf32, #tpu.memory_space<vmem>>, vector<128x256xf32>,
    } else {
    }
    %c0 = arith.constant 0 : index
    %c0_1 = arith.constant 0 : index
    %3 = vector.load %arg8[%c0, %c0_1] : memref<128x256xf32, #tpu.memory_space<vmem>>, vector<128x256xf32>
    %c0_2 = arith.constant 0 : index
    %c0_3 = arith.constant 0 : index
    %4 = vector.load %arg3[%c0_2, %c0_3] : memref<128x256xbf16, #tpu.memory_space<vmem>>, vector<128x256xbf16>
    %c0_4 = arith.constant 0 : index
    %c0_5 = arith.constant 0 : index
    %5 = vector.load %arg4[%c0_4, %c0_5] : memref<256x256xbf16, #tpu.memory_space<vmem>>, vector<256x256xbf16>
    %cst = arith.constant dense<0.000000e+00> : vector<128x256xf32>
    %6 = tpu.matmul %4, %5, %cst {dimension_numbers = #tpu.dot_dimension_numbers<[1], [0], [0], [1], [0, 0, 1, 1], [], []>} : vector<128x256xbf16>, vector<256x256xbf16>, vector<128x256xf32> -> vector<128x256xf32>
    %7 = arith.addf %3, %6 : vector<128x256xf32>
    %c0_6 = arith.constant 0 : index
    %c0_7 = arith.constant 0 : index
    %8 = vector.load %arg8[%c0_6, %c0_7] : memref<128x256xf32, #tpu.memory_space<vmem>>, vector<128x256xf32>
    tpu.vector_store %arg8[%c0_6, %c0_7], %7 {strides = array<i32>} : memref<128x256xf32, #tpu.memory_space<vmem>>, vector<128x256xf32>,
    %c0_i32_8 = arith.constant 0 : i32
    %9 = arith.cmpi eq, %arg2, %c0_i32_8 : i32
    %10 = arith.extui %9 : i1 to i32
    %c0_i32_9 = arith.constant 0 : i32
    %11 = arith.cmpi ne, %10, %c0_i32_9 : i32
    scf.if %11 {
      %c0_10 = arith.constant 0 : index
      %c0_11 = arith.constant 0 : index
      %12 = vector.load %arg8[%c0_10, %c0_11] : memref<128x256xf32, #tpu.memory_space<vmem>>, vector<128x256xf32>
      %c0_12 = arith.constant 0 : index
      %c0_13 = arith.constant 0 : index
      %13 = vector.load %arg5[%c0_12, %c0_13] : memref<1x256xf32, #tpu.memory_space<vmem>>, vector<1x256xf32>
      %14 = vector.broadcast %13 : vector<1x256xf32> to vector<128x256xf32>
      %15 = arith.mulf %12, %14 : vector<128x256xf32>
      %c0_14 = arith.constant 0 : index
      %c0_15 = arith.constant 0 : index
      %16 = vector.load %arg6[%c0_14, %c0_15] : memref<1x256xf32, #tpu.memory_space<vmem>>, vector<1x256xf32>
      %17 = vector.broadcast %16 : vector<1x256xf32> to vector<128x256xf32>
      %18 = arith.addf %15, %17 : vector<128x256xf32>
      %c0_16 = arith.constant 0 : index
      %c0_17 = arith.constant 0 : index
      %19 = vector.load %arg7[%c0_16, %c0_17] : memref<128x256xf32, #tpu.memory_space<vmem>>, vector<128x256xf32>
      tpu.vector_store %arg7[%c0_16, %c0_17], %18 {strides = array<i32>} : memref<128x256xf32, #tpu.memory_space<vmem>>, vector<128x256xf32>,
    } else {
    }
    return
  }
  func.func @transform_0(%arg0: i32, %arg1: i32, %arg2: i32) -> (i32, i32) {
    %c0_i32 = arith.constant 0 : i32
    return %arg0, %arg2 : i32, i32
  }
  func.func @transform_1(%arg0: i32, %arg1: i32, %arg2: i32) -> (i32, i32) {
    %c0_i32 = arith.constant 0 : i32
    return %arg2, %arg1 : i32, i32
  }
  func.func @transform_2(%arg0: i32, %arg1: i32, %arg2: i32) -> (i32, i32) {
    %c0_i32 = arith.constant 0 : i32
    %c0_i32_0 = arith.constant 0 : i32
    return %c0_i32, %arg1 : i32, i32
  }
  func.func @transform_3(%arg0: i32, %arg1: i32, %arg2: i32) -> (i32, i32) {
    %c0_i32 = arith.constant 0 : i32
    %c0_i32_0 = arith.constant 0 : i32
    return %c0_i32, %arg1 : i32, i32
  }
  func.func @transform_4(%arg0: i32, %arg1: i32, %arg2: i32) -> (i32, i32) {
    %c0_i32 = arith.constant 0 : i32
    return %arg0, %arg1 : i32, i32
  }
}

</mosaic_0001>

<bundles_post_ra>
// kernel: bottleneck_forward.4
= control target key start
LH: loop header
LB: loop body
LE: loop exit
PB: predicated region body
PF: predicated region fallthrough
CT: control target
= control target key end

     0   :  { %s1843_s15 = smov 0   ;;  %s1845_s16 = smov 0   ;;  %s2054_s0 = inlined_call_operand.vmem [shape: bf16[512,256], index: 0, kind: input, shape index: {}]   ;;  %s2055_s1 = inlined_call_operand.vmem [shape: bf16[256,128], index: 1, kind: input, shape index: {}]   ;;  %s2056_s2 = inlined_call_operand.vmem [shape: f32[1,128], index: 2, kind: input, shape index: {}]   ;;  %s2057_s3 = inlined_call_operand.vmem [shape: f32[1,128], index: 3, kind: input, shape index: {}]   ;;  %s2058_s4 = inlined_call_operand.vmem [shape: bf16[512,128], index: 4, kind: output, shape index: {}]  }
   0x1   :  { %s1847_s17 = smov 0  }
   0x2 LB: > { %s33_s18 = sadd.s32 1, %s1812_s16  ;;  %p1360_p0 = scmp.ge.s32.totalorder %s1816_s17, 1  ;;  %s1816_s17 = sphi %s1847_s17, %s14_s17   ;;  %s1812_s16 = sphi %s1845_s16, %s2060_s16   ;;  %s1808_s15 = sphi %s1843_s15, %s2059_s15  }
   0x3   : > { %p35_p1 = scmp.ge.s32.totalorder %s33_s18, 2  ;;  %p224_p2 = scmp.lt.s32.totalorder %s1816_s17, 3 }
   0x5   : > { %s2062_s18 = smov (%p35_p1, %s33_s18), 0  ;;  %p225_p3 = pnand %p1360_p0, %p224_p2 }
   0x6   : > { %s1361_s21 = sshll.u32 (!%p225_p3), %s1808_s15, 5 }
   0x7   : > { %228 = sbr.rel (%p225_p3) target bundleno = 311 (0x137), region = 36  ;;  %p274_p4 = scmp.lt.s32.totalorder (!%p225_p3), %s1361_s21, 63 }
   0xc   : > { %v1730_v0 = vld [vmem:[%s2055_s1 + $0x78] sm:$0xff]   ;;  %v1732_v2 = vld [vmem:[%s2055_s1 + $0x70] sm:$0xff]   ;;  %v1734_v4 = vld [vmem:[%s2055_s1 + $0x68] sm:$0xff]   ;;  %s2064_s21 = smov (!%p274_p4, %s1361_s21), 63 }
   0xd   : > { %v1731_v1 = vld [vmem:[%s2055_s1 + $0x38] sm:$0xff]   ;;  %1578 = vmatprep.subr.bf16.mxu0 %v1730_v0  ;;  %1690 = vmatprep.subr.bf16.mxu1 %v1730_v0  ;;  %v1733_v3 = vld [vmem:[%s2055_s1 + $0x30] sm:$0xff]   ;;  %v1735_v5 = vld [vmem:[%s2055_s1 + $0x28] sm:$0xff]   ;;  %s1450_s10 = sshll.u32 %s2064_s21, 3  ;;  %s1365_s12 = sshll.u32 %s2064_s21, 2 }
   0xe   : > { %1579 = vmatpush3.bf16.msra.mxu0 %v1731_v1  ;;  %1698 = vmatpush3.bf16.msra.mxu1 %v1731_v1  ;;  %v1736_v6 = vld [vmem:[%s2055_s1 + $0x60] sm:$0xff]   ;;  %v1738_v8 = vld [vmem:[%s2055_s1 + $0x58] sm:$0xff]   ;;  %s1894_s15 = scalar_lea.vmem %s2054_s0, %s1450_s10  ;;  %v1740_v10 = vld [vmem:[%s2055_s1 + $0x50] sm:$0xff]  }
   0xf   : > { %1580 = vmatprep.subr.bf16.mxu0 %v1732_v2  ;;  %1691 = vmatprep.subr.bf16.mxu1 %v1732_v2  ;;  %v1737_v7 = vld [vmem:[%s2055_s1 + $0x20] sm:$0xff]   ;;  %v1739_v9 = vld [vmem:[%s2055_s1 + $0x18] sm:$0xff]   ;;  %v1741_v13 = vld [vmem:[%s2055_s1 + $0x10] sm:$0xff]  }
  0x10   : > { %v1748_v11 = vld [vmem:[%s1894_s15 + $0x4] ss:$8 sps:$4 sm:$0xff]   ;;  %v1746_v18 = vld [vmem:[%s1894_s15] ss:$8 sps:$4 sm:$0xff]   ;;  %v1752_v20 = vld [vmem:[%s1894_s15 + $0x14] ss:$8 sps:$4 sm:$0xff]  }
  0x11   : > { %v1751_v12 = vld [vmem:[%s1894_s15 + $0x84] ss:$8 sps:$4 sm:$0xff]   ;;  %729 = vmatprep.mubr.bf16.mxu0 %v1748_v11  ;;  %v1749_v19 = vld [vmem:[%s1894_s15 + $0x80] ss:$8 sps:$4 sm:$0xff]   ;;  %v1754_v21 = vld [vmem:[%s1894_s15 + $0x94] ss:$8 sps:$4 sm:$0xff]  }
  0x12   : > { %1581 = vmatpush3.bf16.msra.mxu0 %v1733_v3  ;;  %1699 = vmatpush3.bf16.msra.mxu1 %v1733_v3  ;;  %v1742_v14 = vld [vmem:[%s2055_s1 + $0x48] sm:$0xff]   ;;  %v1744_v16 = vld [vmem:[%s2055_s1 + $0x40] sm:$0xff]   ;;  %v1756_v22 = vld [vmem:[%s1894_s15 + $0x10] ss:$8 sps:$4 sm:$0xff]  }
  0x13   : > { %1582 = vmatprep.subr.bf16.mxu0 %v1734_v4  ;;  %1692 = vmatprep.subr.bf16.mxu1 %v1734_v4  ;;  %v1743_v15 = vld [vmem:[%s2055_s1 + $0x8] sm:$0xff]   ;;  %v1745_v17 = vld [vmem:[%s2055_s1] sm:$0xff]   ;;  %v1757_v23 = vld [vmem:[%s1894_s15 + $0x90] ss:$8 sps:$4 sm:$0xff]  }
  0x14   : > { %793 = vmatprep.mubr.bf16.mxu1 %v1751_v12  ;;  %v1758_v24 = vld [vmem:[%s1894_s15 + $0x24] ss:$8 sps:$4 sm:$0xff]   ;;  %v1762_v26 = vld [vmem:[%s1894_s15 + $0x20] ss:$8 sps:$4 sm:$0xff]   ;;  %v1764_v28 = vld [vmem:[%s1894_s15 + $0x34] ss:$8 sps:$4 sm:$0xff]  }
  0x15   : > { %v1760_v25 = vld [vmem:[%s1894_s15 + $0xa4] ss:$8 sps:$4 sm:$0xff]   ;;  %v1763_v27 = vld [vmem:[%s1894_s15 + $0xa0] ss:$8 sps:$4 sm:$0xff]   ;;  %v1766_v29 = vld [vmem:[%s1894_s15 + $0xb4] ss:$8 sps:$4 sm:$0xff]  }
  0x16   : > { %1583 = vmatpush3.bf16.msra.mxu0 %v1735_v5  ;;  %1700 = vmatpush3.bf16.msra.mxu1 %v1735_v5  ;;  %v1768_v30 = vld [vmem:[%s1894_s15 + $0x30] ss:$8 sps:$4 sm:$0xff]   ;;  %v1770_v32 = vld [vmem:[%s1894_s15 + $0x44] ss:$8 sps:$4 sm:$0xff]   ;;  %v1774_v34 = vld [vmem:[%s1894_s15 + $0x40] ss:$8 sps:$4 sm:$0xff]  }
  0x17   : > { %1584 = vmatprep.subr.bf16.mxu0 %v1736_v6  ;;  %1693 = vmatprep.subr.bf16.mxu1 %v1736_v6  ;;  %v1769_v31 = vld [vmem:[%s1894_s15 + $0xb0] ss:$8 sps:$4 sm:$0xff]   ;;  %v1772_v33 = vld [vmem:[%s1894_s15 + $0xc4] ss:$8 sps:$4 sm:$0xff]   ;;  %v1775_v35 = vld [vmem:[%s1894_s15 + $0xc0] ss:$8 sps:$4 sm:$0xff]  }
  0x18   : > { %v1776_v36 = vld [vmem:[%s1894_s15 + $0x54] ss:$8 sps:$4 sm:$0xff]   ;;  %v1780_v38 = vld [vmem:[%s1894_s15 + $0x50] ss:$8 sps:$4 sm:$0xff]   ;;  %v1782_v40 = vld [vmem:[%s1894_s15 + $0x64] ss:$8 sps:$4 sm:$0xff]  }
  0x19   : > { %v1778_v37 = vld [vmem:[%s1894_s15 + $0xd4] ss:$8 sps:$4 sm:$0xff]   ;;  %v1781_v39 = vld [vmem:[%s1894_s15 + $0xd0] ss:$8 sps:$4 sm:$0xff]   ;;  %v1784_v41 = vld [vmem:[%s1894_s15 + $0xe4] ss:$8 sps:$4 sm:$0xff]  }
  0x1a   : > { %1585 = vmatpush3.bf16.msra.mxu0 %v1737_v7  ;;  %1701 = vmatpush3.bf16.msra.mxu1 %v1737_v7  ;;  %v1786_v42 = vld [vmem:[%s1894_s15 + $0x60] ss:$8 sps:$4 sm:$0xff]   ;;  %v1788_v44 = vld [vmem:[%s1894_s15 + $0x74] ss:$8 sps:$4 sm:$0xff]   ;;  %v1792_v46 = vld [vmem:[%s1894_s15 + $0x70] ss:$8 sps:$4 sm:$0xff]  }
  0x1b   : > { %1586 = vmatprep.subr.bf16.mxu0 %v1738_v8  ;;  %1694 = vmatprep.subr.bf16.mxu1 %v1738_v8  ;;  %v1787_v43 = vld [vmem:[%s1894_s15 + $0xe0] ss:$8 sps:$4 sm:$0xff]   ;;  %v1790_v45 = vld [vmem:[%s1894_s15 + $0xf4] ss:$8 sps:$4 sm:$0xff]   ;;  %v1793_v47 = vld [vmem:[%s1894_s15 + $0xf0] ss:$8 sps:$4 sm:$0xff]   ;;  %s1971_s15 = scalar_lea.vmem %s2058_s4, %s1365_s12 }
  0x1c   : > { %v1952_v51 = vld [vmem:[%s2056_s2] ss:$0 sm:$0xff] }
  0x1d   : > { %v1959_v59 = vld [vmem:[%s2057_s3] ss:$0 sm:$0xff] }
  0x1e   : > { %1587 = vmatpush3.bf16.msra.mxu0 %v1739_v9  ;;  %1702 = vmatpush3.bf16.msra.mxu1 %v1739_v9 }
  0x1f   : > { %1588 = vmatprep.subr.bf16.mxu0 %v1740_v10  ;;  %1695 = vmatprep.subr.bf16.mxu1 %v1740_v10 }
  0x22   : > { %1589 = vmatpush3.bf16.msra.mxu0 %v1741_v13  ;;  %1703 = vmatpush3.bf16.msra.mxu1 %v1741_v13 }
  0x23   : > { %1590 = vmatprep.subr.bf16.mxu0 %v1742_v14  ;;  %1696 = vmatprep.subr.bf16.mxu1 %v1742_v14 }
  0x26   : > { %1591 = vmatpush3.bf16.msra.mxu0 %v1743_v15  ;;  %1704 = vmatpush3.bf16.msra.mxu1 %v1743_v15 }
  0x27   : > { %1592 = vmatprep.subr.bf16.mxu0 %v1744_v16  ;;  %1697 = vmatprep.subr.bf16.mxu1 %v1744_v16 }
  0x2a   : > { %1593 = vmatpush3.bf16.msra.mxu0 %v1745_v17  ;;  %1705 = vmatpush3.bf16.msra.mxu1 %v1745_v17 }
  0x2d   : > { %730 = vmatmul.mubr.bf16.vlgmr.msra.gmra.mxu0 %v1746_v18  ;;  %794 = vmatmul.mubr.bf16.vlgmr.msra.gmra.mxu1 %v1749_v19 }
  0x2e   : > { %737 = vmatprep.mubr.bf16.mxu0 %v1752_v20  ;;  %801 = vmatprep.mubr.bf16.mxu1 %v1754_v21 }
  0x35   : > { %738 = vmatmul.mubr.bf16.gmra.mxu0 %v1756_v22  ;;  %802 = vmatmul.mubr.bf16.gmra.mxu1 %v1757_v23 }
  0x36   : > { %745 = vmatprep.mubr.bf16.mxu0 %v1758_v24  ;;  %809 = vmatprep.mubr.bf16.mxu1 %v1760_v25 }
  0x3d   : > { %746 = vmatmul.mubr.bf16.gmra.mxu0 %v1762_v26  ;;  %810 = vmatmul.mubr.bf16.gmra.mxu1 %v1763_v27 }
  0x3e   : > { %753 = vmatprep.mubr.bf16.mxu0 %v1764_v28  ;;  %817 = vmatprep.mubr.bf16.mxu1 %v1766_v29 }
  0x45   : > { %754 = vmatmul.mubr.bf16.gmra.mxu0 %v1768_v30  ;;  %818 = vmatmul.mubr.bf16.gmra.mxu1 %v1769_v31 }
  0x46   : > { %761 = vmatprep.mubr.bf16.mxu0 %v1770_v32  ;;  %825 = vmatprep.mubr.bf16.mxu1 %v1772_v33 }
  0x4d   : > { %762 = vmatmul.mubr.bf16.gmra.mxu0 %v1774_v34  ;;  %826 = vmatmul.mubr.bf16.gmra.mxu1 %v1775_v35 }
  0x4e   : > { %769 = vmatprep.mubr.bf16.mxu0 %v1776_v36  ;;  %833 = vmatprep.mubr.bf16.mxu1 %v1778_v37 }
  0x55   : > { %770 = vmatmul.mubr.bf16.gmra.mxu0 %v1780_v38  ;;  %834 = vmatmul.mubr.bf16.gmra.mxu1 %v1781_v39 }
  0x56   : > { %777 = vmatprep.mubr.bf16.mxu0 %v1782_v40  ;;  %841 = vmatprep.mubr.bf16.mxu1 %v1784_v41 }
  0x5d   : > { %778 = vmatmul.mubr.bf16.gmra.mxu0 %v1786_v42  ;;  %842 = vmatmul.mubr.bf16.gmra.mxu1 %v1787_v43 }
  0x5e   : > { %785 = vmatprep.mubr.bf16.mxu0 %v1788_v44  ;;  %849 = vmatprep.mubr.bf16.mxu1 %v1790_v45 }
  0x65   : > { %786 = vmatmul.mubr.bf16.gmra.mxu0 %v1792_v46  ;;  %850 = vmatmul.mubr.bf16.gmra.mxu1 %v1793_v47 }
  0xed   : > { %v1594_v48 = vpop.f32.mrf.mxu0  ;;  %v1642_v49 = vpop.f32.mrf.mxu1 }
  0xef   : > { %v1595_v50 = vpop.f32.mrf.mxu0  ;;  %v1643_v52 = vpop.f32.mrf.mxu1 }
  0xf0   : > { %v1596_v53 = vadd.f32 %v1595_v50, %v1594_v48  ;;  %v1644_v54 = vadd.f32 %v1643_v52, %v1642_v49 }
  0xf1   : > { %v1597_v55 = vpop.f32.mrf.mxu0  ;;  %v1645_v56 = vpop.f32.mrf.mxu1 }
  0xf2   : > { %v964_v57 = vmul.f32 %v1596_v53, %v1952_v51  ;;  %v980_v58 = vmul.f32 %v1644_v54, %v1952_v51 }
  0xf3   : > { %v1598_v60 = vpop.f32.mrf.mxu0  ;;  %v1646_v61 = vpop.f32.mrf.mxu1 }
  0xf4   : > { %v1599_v62 = vadd.f32 %v1598_v60, %v1597_v55  ;;  %v1647_v63 = vadd.f32 %v1646_v61, %v1645_v56  ;;  %v1003_v2 = vadd.f32 %v1959_v59, %v964_v57  ;;  %v1019_v3 = vadd.f32 %v1959_v59, %v980_v58 }
  0xf5   : > { %v1600_v0 = vpop.f32.mrf.mxu0  ;;  %v1648_v1 = vpop.f32.mrf.mxu1 }
  0xf6   : > { %v965_v4 = vmul.f32 %v1599_v62, %v1952_v51  ;;  %v981_v5 = vmul.f32 %v1647_v63, %v1952_v51  ;;  %v1035_v14 = vmax.f32 %v1003_v2, 0.0  ;;  %v1051_v15 = vmax.f32 %v1019_v3, 0.0 }
  0xf7   : > { %v1601_v6 = vpop.f32.mrf.mxu0  ;;  %v1649_v7 = vpop.f32.mrf.mxu1 }
  0xf8   : > { %v1004_v8 = vadd.f32 %v1959_v59, %v965_v4  ;;  %v1020_v9 = vadd.f32 %v1959_v59, %v981_v5  ;;  %v1602_v10 = vadd.f32 %v1601_v6, %v1600_v0  ;;  %v1650_v11 = vadd.f32 %v1649_v7, %v1648_v1 }
  0xf9   : > { %v1603_v12 = vpop.f32.mrf.mxu0  ;;  %v1651_v13 = vpop.f32.mrf.mxu1 }
  0xfa   : > { %v1036_v16 = vmax.f32 %v1004_v8, 0.0  ;;  %v1052_v17 = vmax.f32 %v1020_v9, 0.0  ;;  %v966_v18 = vmul.f32 %v1602_v10, %v1952_v51  ;;  %v982_v19 = vmul.f32 %v1650_v11, %v1952_v51 }
  0xfb   : > { %v1604_v20 = vpop.f32.mrf.mxu0  ;;  %v1652_v21 = vpop.f32.mrf.mxu1 }
  0xfc   : > { %v1486_v22 = vpack.c.bf16 %v1036_v16, %v1035_v14  ;;  %v1526_v23 = vpack.c.bf16 %v1052_v17, %v1051_v15  ;;  %v1605_v24 = vadd.f32 %v1604_v20, %v1603_v12  ;;  %v1653_v25 = vadd.f32 %v1652_v21, %v1651_v13 }
  0xfd   : > { %v1606_v26 = vpop.f32.mrf.mxu0  ;;  %v1654_v27 = vpop.f32.mrf.mxu1  ;;  %v1005_v28 = vadd.f32 %v1959_v59, %v966_v18  ;;  %v1021_v29 = vadd.f32 %v1959_v59, %v982_v19 }
  0xfe   : > { %1487 = vst [vmem:[%s1971_s15] sm:$0xff] %v1486_v22   ;;  %1570 = vst [vmem:[%s1971_s15 + $0x40] sm:$0xff] %v1526_v23   ;;  %v967_v30 = vmul.f32 %v1605_v24, %v1952_v51  ;;  %v983_v31 = vmul.f32 %v1653_v25, %v1952_v51 }
  0xff   : > { %v1607_v32 = vpop.f32.mrf.mxu0  ;;  %v1655_v33 = vpop.f32.mrf.mxu1  ;;  %v1037_v42 = vmax.f32 %v1005_v28, 0.0  ;;  %v1053_v43 = vmax.f32 %v1021_v29, 0.0 }
 0x100   : > { %v1608_v34 = vadd.f32 %v1607_v32, %v1606_v26  ;;  %v1656_v35 = vadd.f32 %v1655_v33, %v1654_v27  ;;  %v1006_v36 = vadd.f32 %v1959_v59, %v967_v30  ;;  %v1022_v37 = vadd.f32 %v1959_v59, %v983_v31 }
 0x101   : > { %v1609_v38 = vpop.f32.mrf.mxu0  ;;  %v1657_v39 = vpop.f32.mrf.mxu1 }
 0x102   : > { %v968_v40 = vmul.f32 %v1608_v34, %v1952_v51  ;;  %v984_v41 = vmul.f32 %v1656_v35, %v1952_v51  ;;  %v1038_v44 = vmax.f32 %v1006_v36, 0.0  ;;  %v1054_v45 = vmax.f32 %v1022_v37, 0.0 }
 0x103   : > { %v1610_v46 = vpop.f32.mrf.mxu0  ;;  %v1658_v47 = vpop.f32.mrf.mxu1 }
 0x104   : > { %v1611_v48 = vadd.f32 %v1610_v46, %v1609_v38  ;;  %v1659_v49 = vadd.f32 %v1658_v47, %v1657_v39  ;;  %v1491_v50 = vpack.c.bf16 %v1038_v44, %v1037_v42  ;;  %v1531_v52 = vpack.c.bf16 %v1054_v45, %v1053_v43 }
 0x105   : > { %v1612_v53 = vpop.f32.mrf.mxu0  ;;  %v1660_v54 = vpop.f32.mrf.mxu1  ;;  %v1007_v55 = vadd.f32 %v1959_v59, %v968_v40  ;;  %v1023_v56 = vadd.f32 %v1959_v59, %v984_v41 }
 0x106   : > { %v969_v57 = vmul.f32 %v1611_v48, %v1952_v51  ;;  %v985_v58 = vmul.f32 %v1659_v49, %v1952_v51  ;;  %1563 = vst [vmem:[%s1971_s15 + $0x8] sm:$0xff] %v1491_v50   ;;  %1571 = vst [vmem:[%s1971_s15 + $0x48] sm:$0xff] %v1531_v52  }
 0x107   : > { %v1613_v60 = vpop.f32.mrf.mxu0  ;;  %v1661_v61 = vpop.f32.mrf.mxu1  ;;  %v1039_v4 = vmax.f32 %v1007_v55, 0.0  ;;  %v1055_v5 = vmax.f32 %v1023_v56, 0.0 }
 0x108   : > { %v1008_v62 = vadd.f32 %v1959_v59, %v969_v57  ;;  %v1024_v63 = vadd.f32 %v1959_v59, %v985_v58  ;;  %v1614_v0 = vadd.f32 %v1613_v60, %v1612_v53  ;;  %v1662_v1 = vadd.f32 %v1661_v61, %v1660_v54 }
 0x109   : > { %v1615_v2 = vpop.f32.mrf.mxu0  ;;  %v1663_v3 = vpop.f32.mrf.mxu1 }
 0x10a   : > { %v1040_v6 = vmax.f32 %v1008_v62, 0.0  ;;  %v1056_v7 = vmax.f32 %v1024_v63, 0.0  ;;  %v970_v8 = vmul.f32 %v1614_v0, %v1952_v51  ;;  %v986_v9 = vmul.f32 %v1662_v1, %v1952_v51 }
 0x10b   : > { %v1616_v10 = vpop.f32.mrf.mxu0  ;;  %v1664_v11 = vpop.f32.mrf.mxu1 }
 0x10c   : > { %v1496_v12 = vpack.c.bf16 %v1040_v6, %v1039_v4  ;;  %v1536_v13 = vpack.c.bf16 %v1056_v7, %v1055_v5  ;;  %v1617_v14 = vadd.f32 %v1616_v10, %v1615_v2  ;;  %v1665_v15 = vadd.f32 %v1664_v11, %v1663_v3 }
 0x10d   : > { %v1618_v16 = vpop.f32.mrf.mxu0  ;;  %v1666_v17 = vpop.f32.mrf.mxu1  ;;  %v1009_v18 = vadd.f32 %v1959_v59, %v970_v8  ;;  %v1025_v19 = vadd.f32 %v1959_v59, %v986_v9 }
 0x10e   : > { %1564 = vst [vmem:[%s1971_s15 + $0x10] sm:$0xff] %v1496_v12   ;;  %1572 = vst [vmem:[%s1971_s15 + $0x50] sm:$0xff] %v1536_v13   ;;  %v971_v20 = vmul.f32 %v1617_v14, %v1952_v51  ;;  %v987_v21 = vmul.f32 %v1665_v15, %v1952_v51 }
 0x10f   : > { %v1619_v22 = vpop.f32.mrf.mxu0  ;;  %v1667_v23 = vpop.f32.mrf.mxu1  ;;  %v1041_v32 = vmax.f32 %v1009_v18, 0.0  ;;  %v1057_v33 = vmax.f32 %v1025_v19, 0.0 }
 0x110   : > { %v1620_v24 = vadd.f32 %v1619_v22, %v1618_v16  ;;  %v1668_v25 = vadd.f32 %v1667_v23, %v1666_v17  ;;  %v1010_v26 = vadd.f32 %v1959_v59, %v971_v20  ;;  %v1026_v27 = vadd.f32 %v1959_v59, %v987_v21 }
 0x111   : > { %v1621_v28 = vpop.f32.mrf.mxu0  ;;  %v1669_v29 = vpop.f32.mrf.mxu1 }
 0x112   : > { %v972_v30 = vmul.f32 %v1620_v24, %v1952_v51  ;;  %v988_v31 = vmul.f32 %v1668_v25, %v1952_v51  ;;  %v1042_v34 = vmax.f32 %v1010_v26, 0.0  ;;  %v1058_v35 = vmax.f32 %v1026_v27, 0.0 }
 0x113   : > { %v1622_v36 = vpop.f32.mrf.mxu0  ;;  %v1670_v37 = vpop.f32.mrf.mxu1 }
 0x114   : > { %v1623_v38 = vadd.f32 %v1622_v36, %v1621_v28  ;;  %v1671_v39 = vadd.f32 %v1670_v37, %v1669_v29  ;;  %v1501_v40 = vpack.c.bf16 %v1042_v34, %v1041_v32  ;;  %v1541_v41 = vpack.c.bf16 %v1058_v35, %v1057_v33 }
 0x115   : > { %v1624_v42 = vpop.f32.mrf.mxu0  ;;  %v1672_v43 = vpop.f32.mrf.mxu1  ;;  %v1011_v44 = vadd.f32 %v1959_v59, %v972_v30  ;;  %v1027_v45 = vadd.f32 %v1959_v59, %v988_v31 }
 0x116   : > { %v973_v46 = vmul.f32 %v1623_v38, %v1952_v51  ;;  %v989_v47 = vmul.f32 %v1671_v39, %v1952_v51  ;;  %1565 = vst [vmem:[%s1971_s15 + $0x18] sm:$0xff] %v1501_v40   ;;  %1573 = vst [vmem:[%s1971_s15 + $0x58] sm:$0xff] %v1541_v41  }
 0x117   : > { %v1625_v48 = vpop.f32.mrf.mxu0  ;;  %v1673_v49 = vpop.f32.mrf.mxu1  ;;  %v1043_v57 = vmax.f32 %v1011_v44, 0.0  ;;  %v1059_v58 = vmax.f32 %v1027_v45, 0.0 }
 0x118   : > { %v1012_v50 = vadd.f32 %v1959_v59, %v973_v46  ;;  %v1028_v52 = vadd.f32 %v1959_v59, %v989_v47  ;;  %v1626_v53 = vadd.f32 %v1625_v48, %v1624_v42  ;;  %v1674_v54 = vadd.f32 %v1673_v49, %v1672_v43 }
 0x119   : > { %v1627_v55 = vpop.f32.mrf.mxu0  ;;  %v1675_v56 = vpop.f32.mrf.mxu1 }
 0x11a   : > { %v1044_v60 = vmax.f32 %v1012_v50, 0.0  ;;  %v1060_v61 = vmax.f32 %v1028_v52, 0.0  ;;  %v974_v62 = vmul.f32 %v1626_v53, %v1952_v51  ;;  %v990_v63 = vmul.f32 %v1674_v54, %v1952_v51 }
 0x11b   : > { %v1628_v0 = vpop.f32.mrf.mxu0  ;;  %v1676_v1 = vpop.f32.mrf.mxu1 }
 0x11c   : > { %v1506_v2 = vpack.c.bf16 %v1044_v60, %v1043_v57  ;;  %v1546_v3 = vpack.c.bf16 %v1060_v61, %v1059_v58  ;;  %v1629_v4 = vadd.f32 %v1628_v0, %v1627_v55  ;;  %v1677_v5 = vadd.f32 %v1676_v1, %v1675_v56 }
 0x11d   : > { %v1630_v6 = vpop.f32.mrf.mxu0  ;;  %v1678_v7 = vpop.f32.mrf.mxu1  ;;  %v1013_v8 = vadd.f32 %v1959_v59, %v974_v62  ;;  %v1029_v9 = vadd.f32 %v1959_v59, %v990_v63 }
 0x11e   : > { %1566 = vst [vmem:[%s1971_s15 + $0x20] sm:$0xff] %v1506_v2   ;;  %1574 = vst [vmem:[%s1971_s15 + $0x60] sm:$0xff] %v1546_v3   ;;  %v975_v10 = vmul.f32 %v1629_v4, %v1952_v51  ;;  %v991_v11 = vmul.f32 %v1677_v5, %v1952_v51 }
 0x11f   : > { %v1631_v12 = vpop.f32.mrf.mxu0  ;;  %v1679_v13 = vpop.f32.mrf.mxu1  ;;  %v1045_v22 = vmax.f32 %v1013_v8, 0.0  ;;  %v1061_v23 = vmax.f32 %v1029_v9, 0.0 }
 0x120   : > { %v1632_v14 = vadd.f32 %v1631_v12, %v1630_v6  ;;  %v1680_v15 = vadd.f32 %v1679_v13, %v1678_v7  ;;  %v1014_v16 = vadd.f32 %v1959_v59, %v975_v10  ;;  %v1030_v17 = vadd.f32 %v1959_v59, %v991_v11 }
 0x121   : > { %v1633_v18 = vpop.f32.mrf.mxu0  ;;  %v1681_v19 = vpop.f32.mrf.mxu1 }
 0x122   : > { %v976_v20 = vmul.f32 %v1632_v14, %v1952_v51  ;;  %v992_v21 = vmul.f32 %v1680_v15, %v1952_v51  ;;  %v1046_v24 = vmax.f32 %v1014_v16, 0.0  ;;  %v1062_v25 = vmax.f32 %v1030_v17, 0.0 }
 0x123   : > { %v1634_v26 = vpop.f32.mrf.mxu0  ;;  %v1682_v27 = vpop.f32.mrf.mxu1 }
 0x124   : > { %v1635_v28 = vadd.f32 %v1634_v26, %v1633_v18  ;;  %v1683_v29 = vadd.f32 %v1682_v27, %v1681_v19  ;;  %v1511_v30 = vpack.c.bf16 %v1046_v24, %v1045_v22  ;;  %v1551_v31 = vpack.c.bf16 %v1062_v25, %v1061_v23 }
 0x125   : > { %v1636_v32 = vpop.f32.mrf.mxu0  ;;  %v1684_v33 = vpop.f32.mrf.mxu1  ;;  %v1015_v34 = vadd.f32 %v1959_v59, %v976_v20  ;;  %v1031_v35 = vadd.f32 %v1959_v59, %v992_v21 }
 0x126   : > { %v977_v36 = vmul.f32 %v1635_v28, %v1952_v51  ;;  %v993_v37 = vmul.f32 %v1683_v29, %v1952_v51  ;;  %1567 = vst [vmem:[%s1971_s15 + $0x28] sm:$0xff] %v1511_v30   ;;  %1575 = vst [vmem:[%s1971_s15 + $0x68] sm:$0xff] %v1551_v31  }
 0x127   : > { %v1637_v38 = vpop.f32.mrf.mxu0  ;;  %v1685_v39 = vpop.f32.mrf.mxu1  ;;  %v1047_v46 = vmax.f32 %v1015_v34, 0.0  ;;  %v1063_v47 = vmax.f32 %v1031_v35, 0.0 }
 0x128   : > { %v1016_v40 = vadd.f32 %v1959_v59, %v977_v36  ;;  %v1032_v41 = vadd.f32 %v1959_v59, %v993_v37  ;;  %v1638_v42 = vadd.f32 %v1637_v38, %v1636_v32  ;;  %v1686_v43 = vadd.f32 %v1685_v39, %v1684_v33 }
 0x129   : > { %v1639_v44 = vpop.f32.mrf.mxu0  ;;  %v1687_v45 = vpop.f32.mrf.mxu1 }
 0x12a   : > { %v1048_v48 = vmax.f32 %v1016_v40, 0.0  ;;  %v1064_v49 = vmax.f32 %v1032_v41, 0.0  ;;  %v978_v50 = vmul.f32 %v1638_v42, %v1952_v51  ;;  %v994_v52 = vmul.f32 %v1686_v43, %v1952_v51 }
 0x12b   : > { %v1640_v53 = vpop.f32.mrf.mxu0  ;;  %v1688_v54 = vpop.f32.mrf.mxu1 }
 0x12c   : > { %v1516_v55 = vpack.c.bf16 %v1048_v48, %v1047_v46  ;;  %v1556_v56 = vpack.c.bf16 %v1064_v49, %v1063_v47  ;;  %v1641_v57 = vadd.f32 %v1640_v53, %v1639_v44  ;;  %v1689_v58 = vadd.f32 %v1688_v54, %v1687_v45 }
 0x12d   : > { %v1017_v60 = vadd.f32 %v1959_v59, %v978_v50  ;;  %v1033_v61 = vadd.f32 %v1959_v59, %v994_v52 }
 0x12e   : > { %1568 = vst [vmem:[%s1971_s15 + $0x30] sm:$0xff] %v1516_v55   ;;  %1576 = vst [vmem:[%s1971_s15 + $0x70] sm:$0xff] %v1556_v56   ;;  %v979_v62 = vmul.f32 %v1641_v57, %v1952_v51  ;;  %v995_v63 = vmul.f32 %v1689_v58, %v1952_v51 }
 0x12f   : > { %v1049_v2 = vmax.f32 %v1017_v60, 0.0  ;;  %v1065_v3 = vmax.f32 %v1033_v61, 0.0 }
 0x130   : > { %v1018_v0 = vadd.f32 %v1959_v59, %v979_v62  ;;  %v1034_v1 = vadd.f32 %v1959_v59, %v995_v63 }
 0x132   : > { %v1050_v4 = vmax.f32 %v1018_v0, 0.0  ;;  %v1066_v5 = vmax.f32 %v1034_v1, 0.0 }
 0x134   : > { %v1521_v6 = vpack.c.bf16 %v1050_v4, %v1049_v2  ;;  %v1561_v7 = vpack.c.bf16 %v1066_v5, %v1065_v3 }
 0x136   : > { %1569 = vst [vmem:[%s1971_s15 + $0x38] sm:$0xff] %v1521_v6   ;;  %1577 = vst [vmem:[%s1971_s15 + $0x78] sm:$0xff] %v1561_v7  }
 0x137 PF: > { %s14_s17 = sadd.s32 1, %s1816_s17   ;;  %s2059_s15 = smov %s1812_s16 }
 0x138   : > { %p11_p5 = scmp.ge.s32.totalorder %s14_s17, 4   ;;  %s2060_s16 = smov %s2062_s18 }
 0x13a   :  { %13 = sbr.rel (!%p11_p5) target bundleno = 2 (0x2), region = 83 }

// kernel: bottleneck_forward.5
= control target key start
LH: loop header
LB: loop body
LE: loop exit
PB: predicated region body
PF: predicated region fallthrough
CT: control target
= control target key end

     0   :  { %s1275_s15 = smov 0   ;;  %s1277_s16 = smov 0   ;;  %s1446_s0 = inlined_call_operand.vmem [shape: bf16[128,1152], index: 0, kind: input, shape index: {}]   ;;  %s1447_s1 = inlined_call_operand.vmem [shape: bf16[1152,128], index: 1, kind: input, shape index: {}]   ;;  %s1448_s2 = inlined_call_operand.vmem [shape: f32[1,128], index: 2, kind: input, shape index: {}]   ;;  %s1449_s3 = inlined_call_operand.vmem [shape: f32[1,128], index: 3, kind: input, shape index: {}]   ;;  %s1450_s4 = inlined_call_operand.vmem [shape: bf16[128,128], index: 4, kind: output, shape index: {}]  }
   0x1   :  { %s1279_s17 = smov 0   ;;  %s1281_s18 = smov 0  }
   0x2   :  { %s1283_s19 = smov 0  }
   0x3 LB: > { %s26_s20 = sadd.s32 1, %s1243_s18  ;;  %p49_p1 = scmp.ne.s32.totalorder %s1235_s16, %s1231_s15  ;;  %s1247_s19 = sphi %s1283_s19, %s14_s19   ;;  %s1243_s18 = sphi %s1281_s18, %s1454_s18   ;;  %s1239_s17 = sphi %s1279_s17, %s1453_s17   ;;  %s1235_s16 = sphi %s1277_s16, %s1452_s16   ;;  %s1231_s15 = sphi %s1275_s15, %s1451_s15  }
   0x4   : > { %p27_p0 = scmp.ge.s32.totalorder %s26_s20, 9  ;;  %p50_p2 = scmp.eq.s32.totalorder %s1247_s19, 0 }
   0x5   : > { %s42_s22 = sadd.s32 1, %s1235_s16  ;;  %p978_p5 = scmp.ge.s32.totalorder %s1247_s19, 9 }
   0x6   : > { %s1456_s20 = smov (%p27_p0, %s26_s20), 0  ;;  %p51_p3 = por %p50_p2, %p49_p1 }
   0x7   : > { %s38_s21 = ssub.s32 %s1243_s18, %s1456_s20  ;;  %195 = sbr.rel (%p978_p5) target bundleno = 26 (0x1a), region = 24 }
   0x8   : > { %p40_p4 = scmp.eq.s32.totalorder %s38_s21, 0 }
   0xa   : > { %s1310_s23 = scalar_select %p40_p4, %s1235_s16, %s42_s22  }
   0xc   : > { %198 = sbr.rel (!%p51_p3) target bundleno = 26 (0x1a), region = 28  ;;  %s200_s24 = sand.u32 (%p51_p3), 1, %s1235_s16  }
   0xd   : > { %s980_s25 = sshll.u32 (%p51_p3), %s1243_s18, 2  ;;  %s979_s26 = sshll.u32 (%p51_p3), %s200_s24, 6 }
   0xe   : > { %s1318_s29 = scalar_lea.vmem (%p51_p3), %s1446_s0, %s980_s25  ;;  %s202_s30 = scalar_lea.vmem (%p51_p3), [#allocation3], %s979_s26 }
   0xf   : > { %v224_v0 = vld [vmem:[%s1318_s29] sm:$0xf] (%p51_p3)  ;;  %v226_v1 = vld [vmem:[%s1318_s29 + $0x24] sm:$0xf] (%p51_p3)  ;;  %v228_v2 = vld [vmem:[%s1318_s29 + $0x48] sm:$0xf] (%p51_p3) }
  0x10   : > { %225 = vst [vmem:[%s202_s30] sm:$0xf] (%p51_p3), %v224_v0  ;;  %227 = vst [vmem:[%s202_s30 + $0x4] sm:$0xf] (%p51_p3), %v226_v1  ;;  %v230_v3 = vld [vmem:[%s1318_s29 + $0x6c] sm:$0xf] (%p51_p3) }
  0x11   : > { %v232_v4 = vld [vmem:[%s1318_s29 + $0x90] sm:$0xf]  ;;  %229 = vst [vmem:[%s202_s30 + $0x8] sm:$0xf] %v228_v2  ;;  %231 = vst [vmem:[%s202_s30 + $0xc] sm:$0xf] %v230_v3 }
  0x12   : > { %233 = vst [vmem:[%s202_s30 + $0x10] sm:$0xf] %v232_v4  ;;  %v234_v5 = vld [vmem:[%s1318_s29 + $0xb4] sm:$0xf]  ;;  %v236_v6 = vld [vmem:[%s1318_s29 + $0xd8] sm:$0xf] }
  0x13   : > { %v238_v7 = vld [vmem:[%s1318_s29 + $0xfc] sm:$0xf]  ;;  %235 = vst [vmem:[%s202_s30 + $0x14] sm:$0xf] %v234_v5  ;;  %237 = vst [vmem:[%s202_s30 + $0x18] sm:$0xf] %v236_v6 }
  0x14   : > { %239 = vst [vmem:[%s202_s30 + $0x1c] sm:$0xf] %v238_v7  ;;  %v240_v8 = vld [vmem:[%s1318_s29 + $0x120] sm:$0xf]  ;;  %v242_v9 = vld [vmem:[%s1318_s29 + $0x144] sm:$0xf] }
  0x15   : > { %v244_v10 = vld [vmem:[%s1318_s29 + $0x168] sm:$0xf]  ;;  %241 = vst [vmem:[%s202_s30 + $0x20] sm:$0xf] %v240_v8  ;;  %243 = vst [vmem:[%s202_s30 + $0x24] sm:$0xf] %v242_v9 }
  0x16   : > { %245 = vst [vmem:[%s202_s30 + $0x28] sm:$0xf] %v244_v10  ;;  %v246_v11 = vld [vmem:[%s1318_s29 + $0x18c] sm:$0xf]  ;;  %v248_v12 = vld [vmem:[%s1318_s29 + $0x1b0] sm:$0xf] }
  0x17   : > { %v250_v13 = vld [vmem:[%s1318_s29 + $0x1d4] sm:$0xf]  ;;  %247 = vst [vmem:[%s202_s30 + $0x2c] sm:$0xf] %v246_v11  ;;  %249 = vst [vmem:[%s202_s30 + $0x30] sm:$0xf] %v248_v12 }
  0x18   : > { %251 = vst [vmem:[%s202_s30 + $0x34] sm:$0xf] %v250_v13  ;;  %v252_v14 = vld [vmem:[%s1318_s29 + $0x1f8] sm:$0xf]  ;;  %v254_v15 = vld [vmem:[%s1318_s29 + $0x21c] sm:$0xf] }
  0x19   : > { %253 = vst [vmem:[%s202_s30 + $0x38] sm:$0xf] %v252_v14  ;;  %255 = vst [vmem:[%s202_s30 + $0x3c] sm:$0xf] %v254_v15 }
  0x1a PF: > { %p981_p6 = scmp.ge.s32.totalorder %s1247_s19, 1  ;;  %p322_p7 = scmp.lt.s32.totalorder %s1247_s19, 10 }
  0x1c   : > { %p323_p8 = pnand %p981_p6, %p322_p7 }
  0x1d   : > { %s329_s5 = sand.u32 (!%p323_p8), 1, %s1231_s15   ;;  %s983_s6 = sshll.u32 (!%p323_p8), %s1239_s17, 4 }
  0x1e   : > { %326 = sbr.rel (%p323_p8) target bundleno = 313 (0x139), region = 73  ;;  %s982_s7 = sshll.u32 (!%p323_p8), %s329_s5, 6 }
  0x1f   : > { %p373_p9 = scmp.lt.s32.totalorder (!%p323_p8), %s983_s6, 143  ;;  %s1345_s12 = scalar_lea.vmem (!%p323_p8), [#allocation3], %s982_s7 }
  0x20   : > { %p985_p10 = scmp.ne.s32.totalorder (!%p323_p8), %s1239_s17, 0 }
  0x23   : > { %s1458_s6 = smov (!%p373_p9, %s983_s6), 143  ;;  %400 = sbr.rel (%p985_p10) target bundleno = 49 (0x31), region = 81 }
  0x24   : > { %s984_s8 = sshll.u32 %s1458_s6, 2 }
  0x25   : > { %s1343_s11 = scalar_lea.vmem %s1447_s1, %s984_s8 }
  0x28   : > { %v1249_v16 = vmov 0.0  }
  0x29   : > { %401 = vst [vmem:[#allocation2 + $0x30] sm:$0xff] %v1249_v16  ;;  %402 = vst [vmem:[#allocation2] sm:$0xff] %v1249_v16 }
  0x2a   : > { %403 = vst [vmem:[#allocation2 + $0x58] sm:$0xff] %v1249_v16  ;;  %404 = vst [vmem:[#allocation2 + $0x18] sm:$0xff] %v1249_v16 }
  0x2b   : > { %405 = vst [vmem:[#allocation2 + $0x50] sm:$0xff] %v1249_v16  ;;  %406 = vst [vmem:[#allocation2 + $0x68] sm:$0xff] %v1249_v16 }
  0x2c   : > { %407 = vst [vmem:[#allocation2 + $0x8] sm:$0xff] %v1249_v16  ;;  %408 = vst [vmem:[#allocation2 + $0x48] sm:$0xff] %v1249_v16 }
  0x2d   : > { %409 = vst [vmem:[#allocation2 + $0x40] sm:$0xff] %v1249_v16  ;;  %410 = vst [vmem:[#allocation2 + $0x20] sm:$0xff] %v1249_v16 }
  0x2e   : > { %411 = vst [vmem:[#allocation2 + $0x10] sm:$0xff] %v1249_v16  ;;  %412 = vst [vmem:[#allocation2 + $0x38] sm:$0xff] %v1249_v16 }
  0x2f   : > { %413 = vst [vmem:[#allocation2 + $0x60] sm:$0xff] %v1249_v16  ;;  %414 = vst [vmem:[#allocation2 + $0x70] sm:$0xff] %v1249_v16 }
  0x30   : > { %415 = vst [vmem:[#allocation2 + $0x78] sm:$0xff] %v1249_v16  ;;  %416 = vst [vmem:[#allocation2 + $0x28] sm:$0xff] %v1249_v16 }
  0x31 PF: > { %v1193_v17 = vld [vmem:[%s1343_s11 + $0x38] sm:$0xff]   ;;  %v1194_v18 = vld [vmem:[%s1343_s11 + $0x30] sm:$0xff]   ;;  %v1195_v19 = vld [vmem:[%s1343_s11 + $0x28] sm:$0xff]   ;;  %p1002_p11 = scmp.ne.s32.totalorder %s1239_s17, 8 }
  0x32   : > { %1104 = vmatprep.subr.bf16.mxu0 %v1193_v17  ;;  %1136 = vmatprep.subr.bf16.mxu1 %v1193_v17  ;;  %v1196_v20 = vld [vmem:[%s1343_s11 + $0x20] sm:$0xff]   ;;  %v1197_v23 = vld [vmem:[%s1343_s11 + $0x18] sm:$0xff]   ;;  %v1198_v24 = vld [vmem:[%s1343_s11 + $0x10] sm:$0xff]  }
  0x33   : > { %1105 = vmatpush3.bf16.msra.mxu0 %v1193_v17  ;;  %1144 = vmatpush3.bf16.msra.mxu1 %v1193_v17  ;;  %v1201_v21 = vld [vmem:[%s1345_s12] sm:$0xff]   ;;  %v1199_v25 = vld [vmem:[%s1343_s11 + $0x8] sm:$0xff]   ;;  %v1205_v29 = vld [vmem:[%s1345_s12 + $0x10] sm:$0xff]  }
  0x34   : > { %1106 = vmatprep.subr.bf16.mxu0 %v1194_v18  ;;  %1137 = vmatprep.subr.bf16.mxu1 %v1194_v18  ;;  %v1202_v22 = vld [vmem:[%s1345_s12 + $0x20] sm:$0xff]   ;;  %v1203_v27 = vld [vmem:[%s1345_s12 + $0x8] sm:$0xff]   ;;  %v1206_v30 = vld [vmem:[%s1345_s12 + $0x30] sm:$0xff]  }
  0x35   : > { %1120 = vmatprep.mubr.bf16.mxu0 %v1201_v21  ;;  %1128 = vmatprep.mubr.bf16.mxu1 %v1202_v22  ;;  %v1200_v26 = vld [vmem:[%s1343_s11] sm:$0xff]   ;;  %v1204_v28 = vld [vmem:[%s1345_s12 + $0x28] sm:$0xff]   ;;  %v1207_v31 = vld [vmem:[%s1345_s12 + $0x18] sm:$0xff]  }
  0x36   : > { %v1208_v32 = vld [vmem:[%s1345_s12 + $0x38] sm:$0xff]   ;;  %v427_v34 = vld [vmem:[#allocation2 + $0x10] sm:$0xff]  ;;  %v425_v38 = vld [vmem:[#allocation2 + $0x40] sm:$0xff] }
  0x37   : > { %1107 = vmatpush3.bf16.msra.mxu0 %v1194_v18  ;;  %1145 = vmatpush3.bf16.msra.mxu1 %v1194_v18  ;;  %v419_v33 = vld [vmem:[#allocation2 + $0x58] sm:$0xff]  ;;  %v417_v37 = vld [vmem:[#allocation2 + $0x30] sm:$0xff]  ;;  %v418_v49 = vld [vmem:[#allocation2] sm:$0xff] }
  0x38   : > { %1108 = vmatprep.subr.bf16.mxu0 %v1195_v19  ;;  %1138 = vmatprep.subr.bf16.mxu1 %v1195_v19  ;;  %v420_v43 = vld [vmem:[#allocation2 + $0x18] sm:$0xff]  ;;  %v426_v50 = vld [vmem:[#allocation2 + $0x20] sm:$0xff]  ;;  %v423_v55 = vld [vmem:[#allocation2 + $0x8] sm:$0xff] }
  0x39   : > { %v428_v44 = vld [vmem:[#allocation2 + $0x38] sm:$0xff]  ;;  %v421_v61 = vld [vmem:[#allocation2 + $0x50] sm:$0xff]  ;;  %v429_v62 = vld [vmem:[#allocation2 + $0x60] sm:$0xff] }
  0x3a   : > { %v431_v56 = vld [vmem:[#allocation2 + $0x78] sm:$0xff]  ;;  %v424_v3 = vld [vmem:[#allocation2 + $0x48] sm:$0xff]  ;;  %v430_v10 = vld [vmem:[#allocation2 + $0x70] sm:$0xff] }
  0x3b   : > { %1109 = vmatpush3.bf16.msra.mxu0 %v1195_v19  ;;  %1146 = vmatpush3.bf16.msra.mxu1 %v1195_v19  ;;  %v432_v4 = vld [vmem:[#allocation2 + $0x28] sm:$0xff] }
  0x3c   : > { %1110 = vmatprep.subr.bf16.mxu0 %v1196_v20  ;;  %1139 = vmatprep.subr.bf16.mxu1 %v1196_v20  ;;  %v422_v9 = vld [vmem:[#allocation2 + $0x68] sm:$0xff] }
  0x3f   : > { %1111 = vmatpush3.bf16.msra.mxu0 %v1196_v20  ;;  %1147 = vmatpush3.bf16.msra.mxu1 %v1196_v20 }
  0x40   : > { %1112 = vmatprep.subr.bf16.mxu0 %v1197_v23  ;;  %1140 = vmatprep.subr.bf16.mxu1 %v1197_v23 }
  0x43   : > { %1113 = vmatpush3.bf16.msra.mxu0 %v1197_v23  ;;  %1148 = vmatpush3.bf16.msra.mxu1 %v1197_v23 }
  0x44   : > { %1114 = vmatprep.subr.bf16.mxu0 %v1198_v24  ;;  %1141 = vmatprep.subr.bf16.mxu1 %v1198_v24 }
  0x47   : > { %1115 = vmatpush3.bf16.msra.mxu0 %v1198_v24  ;;  %1149 = vmatpush3.bf16.msra.mxu1 %v1198_v24 }
  0x48   : > { %1116 = vmatprep.subr.bf16.mxu0 %v1199_v25  ;;  %1142 = vmatprep.subr.bf16.mxu1 %v1199_v25 }
  0x4b   : > { %1117 = vmatpush3.bf16.msra.mxu0 %v1199_v25  ;;  %1150 = vmatpush3.bf16.msra.mxu1 %v1199_v25 }
  0x4c   : > { %1118 = vmatprep.subr.bf16.mxu0 %v1200_v26  ;;  %1143 = vmatprep.subr.bf16.mxu1 %v1200_v26 }
  0x4f   : > { %1119 = vmatpush3.bf16.msra.mxu0 %v1200_v26  ;;  %1151 = vmatpush3.bf16.msra.mxu1 %v1200_v26 }
  0x52   : > { %1121 = vmatmul.mubr.bf16.vlgmr.msra.gmra.mxu0 %v1203_v27  ;;  %1129 = vmatmul.mubr.bf16.vlgmr.msra.gmra.mxu1 %v1204_v28 }
  0x53   : > { %1124 = vmatprep.mubr.bf16.mxu0 %v1205_v29  ;;  %1132 = vmatprep.mubr.bf16.mxu1 %v1206_v30 }
  0x5a   : > { %1125 = vmatmul.mubr.bf16.gmra.mxu0 %v1207_v31  ;;  %1133 = vmatmul.mubr.bf16.gmra.mxu1 %v1208_v32 }
 0x112   : > { %v1122_v35 = vpop.f32.mrf.mxu0  ;;  %v1130_v36 = vpop.f32.mrf.mxu1 }
 0x113   : > { %v660_v39 = vadd.f32 %v1122_v35, %v419_v33  ;;  %v668_v40 = vadd.f32 %v1130_v36, %v427_v34 }
 0x114   : > { %v595_v41 = vpop.f32.mrf.mxu0  ;;  %v627_v42 = vpop.f32.mrf.mxu1 }
 0x115   : > { %676 = vst [vmem:[#allocation2 + $0x58] sm:$0xff] %v660_v39  ;;  %684 = vst [vmem:[#allocation2 + $0x10] sm:$0xff] %v668_v40  ;;  %v658_v45 = vadd.f32 %v595_v41, %v417_v37  ;;  %v666_v46 = vadd.f32 %v627_v42, %v425_v38 }
 0x116   : > { %v1123_v47 = vpop.f32.mrf.mxu0  ;;  %v1131_v48 = vpop.f32.mrf.mxu1 }
 0x117   : > { %674 = vst [vmem:[#allocation2 + $0x30] sm:$0xff] %v658_v45  ;;  %682 = vst [vmem:[#allocation2 + $0x40] sm:$0xff] %v666_v46  ;;  %v661_v51 = vadd.f32 %v1123_v47, %v420_v43  ;;  %v669_v52 = vadd.f32 %v1131_v48, %v428_v44 }
 0x118   : > { %v598_v53 = vpop.f32.mrf.mxu0  ;;  %v630_v54 = vpop.f32.mrf.mxu1 }
 0x119   : > { %677 = vst [vmem:[#allocation2 + $0x18] sm:$0xff] %v661_v51  ;;  %685 = vst [vmem:[#allocation2 + $0x38] sm:$0xff] %v669_v52  ;;  %v659_v57 = vadd.f32 %v598_v53, %v418_v49  ;;  %v667_v58 = vadd.f32 %v630_v54, %v426_v50 }
 0x11a   : > { %v1126_v59 = vpop.f32.mrf.mxu0  ;;  %v1134_v60 = vpop.f32.mrf.mxu1 }
 0x11b   : > { %675 = vst [vmem:[#allocation2] sm:$0xff] %v659_v57  ;;  %683 = vst [vmem:[#allocation2 + $0x20] sm:$0xff] %v667_v58  ;;  %v664_v63 = vadd.f32 %v1126_v59, %v423_v55  ;;  %v672_v0 = vadd.f32 %v1134_v60, %v431_v56 }
 0x11c   : > { %v611_v1 = vpop.f32.mrf.mxu0  ;;  %v643_v2 = vpop.f32.mrf.mxu1 }
 0x11d   : > { %680 = vst [vmem:[#allocation2 + $0x8] sm:$0xff] %v664_v63  ;;  %688 = vst [vmem:[#allocation2 + $0x78] sm:$0xff] %v672_v0  ;;  %v662_v5 = vadd.f32 %v611_v1, %v421_v61  ;;  %v670_v6 = vadd.f32 %v643_v2, %v429_v62 }
 0x11e   : > { %v1127_v7 = vpop.f32.mrf.mxu0  ;;  %v1135_v8 = vpop.f32.mrf.mxu1 }
 0x11f   : > { %678 = vst [vmem:[#allocation2 + $0x50] sm:$0xff] %v662_v5  ;;  %686 = vst [vmem:[#allocation2 + $0x60] sm:$0xff] %v670_v6  ;;  %v665_v11 = vadd.f32 %v1127_v7, %v424_v3  ;;  %v673_v12 = vadd.f32 %v1135_v8, %v432_v4  ;;  %693 = sbr.rel (%p1002_p11) target bundleno = 313 (0x139), region = 85 }
 0x120   : > { %v614_v13 = vpop.f32.mrf.mxu0  ;;  %v646_v14 = vpop.f32.mrf.mxu1 }
 0x121   : > { %681 = vst [vmem:[#allocation2 + $0x48] sm:$0xff] %v665_v11  ;;  %689 = vst [vmem:[#allocation2 + $0x28] sm:$0xff] %v673_v12  ;;  %v663_v15 = vadd.f32 %v614_v13, %v422_v9  ;;  %v671_v16 = vadd.f32 %v646_v14, %v430_v10 }
 0x123   : > { %679 = vst [vmem:[#allocation2 + $0x68] sm:$0xff] %v663_v15  ;;  %687 = vst [vmem:[#allocation2 + $0x70] sm:$0xff] %v671_v16 }
 0x124   : > { %v694_v17 = vld [vmem:[#allocation2 + $0x30] sm:$0xff]  ;;  %v695_v18 = vld [vmem:[#allocation2] sm:$0xff]  ;;  %v696_v23 = vld [vmem:[#allocation2 + $0x58] sm:$0xff] }
 0x125   : > { %v1368_v19 = vld [vmem:[%s1448_s2] ss:$0 sm:$0xff]  ;;  %v697_v24 = vld [vmem:[#allocation2 + $0x18] sm:$0xff]  ;;  %v700_v29 = vld [vmem:[#allocation2 + $0x8] sm:$0xff] }
 0x126   : > { %v717_v20 = vmul.f32 %v1368_v19, %v694_v17  ;;  %v718_v21 = vmul.f32 %v1368_v19, %v695_v18  ;;  %v1375_v22 = vld [vmem:[%s1449_s3] ss:$0 sm:$0xff]  ;;  %v719_v25 = vmul.f32 %v1368_v19, %v696_v23  ;;  %v720_v26 = vmul.f32 %v1368_v19, %v697_v24  ;;  %v698_v27 = vld [vmem:[#allocation2 + $0x50] sm:$0xff]  ;;  %v705_v50 = vld [vmem:[#allocation2 + $0x38] sm:$0xff] }
 0x127   : > { %v721_v32 = vmul.f32 %v1368_v19, %v698_v27  ;;  %v723_v37 = vmul.f32 %v1368_v19, %v700_v29  ;;  %v702_v39 = vld [vmem:[#allocation2 + $0x40] sm:$0xff]  ;;  %v704_v49 = vld [vmem:[#allocation2 + $0x10] sm:$0xff]  ;;  %v708_v61 = vld [vmem:[#allocation2 + $0x78] sm:$0xff]  ;;  %v728_v1 = vmul.f32 %v1368_v19, %v705_v50 }
 0x128   : > { %v740_v30 = vadd.f32 %v1375_v22, %v717_v20  ;;  %v741_v31 = vadd.f32 %v1375_v22, %v718_v21  ;;  %v701_v34 = vld [vmem:[#allocation2 + $0x48] sm:$0xff]  ;;  %v742_v35 = vadd.f32 %v1375_v22, %v719_v25  ;;  %v743_v36 = vadd.f32 %v1375_v22, %v720_v26  ;;  %v703_v44 = vld [vmem:[#allocation2 + $0x20] sm:$0xff] }
 0x129   : > { %v724_v38 = vmul.f32 %v1368_v19, %v701_v34  ;;  %v744_v42 = vadd.f32 %v1375_v22, %v721_v32  ;;  %v746_v47 = vadd.f32 %v1375_v22, %v723_v37  ;;  %v725_v54 = vmul.f32 %v1368_v19, %v702_v39  ;;  %v706_v55 = vld [vmem:[#allocation2 + $0x60] sm:$0xff]  ;;  %v709_v2 = vld [vmem:[#allocation2 + $0x28] sm:$0xff] }
 0x12a   : > { %v699_v28 = vld [vmem:[#allocation2 + $0x68] sm:$0xff]  ;;  %v756_v40 = vmax.f32 %v740_v30, 0.0  ;;  %v757_v41 = vmax.f32 %v741_v31, 0.0  ;;  %v758_v45 = vmax.f32 %v742_v35, 0.0  ;;  %v759_v46 = vmax.f32 %v743_v36, 0.0  ;;  %v707_v56 = vld [vmem:[#allocation2 + $0x70] sm:$0xff] }
 0x12b   : > { %v722_v33 = vmul.f32 %v1368_v19, %v699_v28  ;;  %v747_v48 = vadd.f32 %v1375_v22, %v724_v38  ;;  %v760_v52 = vmax.f32 %v744_v42, 0.0  ;;  %v762_v58 = vmax.f32 %v746_v47, 0.0 }
 0x12c   : > { %v1044_v51 = vpack.c.bf16 %v757_v41, %v756_v40  ;;  %v1049_v57 = vpack.c.bf16 %v759_v46, %v758_v45  ;;  %v726_v60 = vmul.f32 %v1368_v19, %v703_v44  ;;  %v748_v63 = vadd.f32 %v1375_v22, %v725_v54 }
 0x12d   : > { %v745_v43 = vadd.f32 %v1375_v22, %v722_v33  ;;  %v763_v59 = vmax.f32 %v747_v48, 0.0  ;;  %v727_v0 = vmul.f32 %v1368_v19, %v704_v49  ;;  %v729_v5 = vmul.f32 %v1368_v19, %v706_v55 }
 0x12e   : > { %1045 = vst [vmem:[%s1450_s4] sm:$0xff] %v1044_v51   ;;  %1081 = vst [vmem:[%s1450_s4 + $0x8] sm:$0xff] %v1049_v57   ;;  %v749_v4 = vadd.f32 %v1375_v22, %v726_v60  ;;  %v730_v6 = vmul.f32 %v1368_v19, %v707_v56  ;;  %v764_v7 = vmax.f32 %v748_v63, 0.0  ;;  %v751_v9 = vadd.f32 %v1375_v22, %v728_v1 }
 0x12f   : > { %v761_v53 = vmax.f32 %v745_v43, 0.0  ;;  %v1059_v3 = vpack.c.bf16 %v763_v59, %v762_v58  ;;  %v750_v8 = vadd.f32 %v1375_v22, %v727_v0  ;;  %v731_v10 = vmul.f32 %v1368_v19, %v708_v61 }
 0x130   : > { %v765_v11 = vmax.f32 %v749_v4, 0.0  ;;  %v752_v12 = vadd.f32 %v1375_v22, %v729_v5  ;;  %v753_v13 = vadd.f32 %v1375_v22, %v730_v6  ;;  %v732_v14 = vmul.f32 %v1368_v19, %v709_v2 }
 0x131   : > { %v1054_v62 = vpack.c.bf16 %v761_v53, %v760_v52  ;;  %1083 = vst [vmem:[%s1450_s4 + $0x18] sm:$0xff] %v1059_v3   ;;  %v766_v15 = vmax.f32 %v750_v8, 0.0  ;;  %v767_v16 = vmax.f32 %v751_v9, 0.0  ;;  %v754_v17 = vadd.f32 %v1375_v22, %v731_v10 }
 0x132   : > { %v1064_v18 = vpack.c.bf16 %v765_v11, %v764_v7  ;;  %v768_v20 = vmax.f32 %v752_v12, 0.0  ;;  %v769_v21 = vmax.f32 %v753_v13, 0.0  ;;  %v755_v23 = vadd.f32 %v1375_v22, %v732_v14 }
 0x133   : > { %1082 = vst [vmem:[%s1450_s4 + $0x10] sm:$0xff] %v1054_v62   ;;  %v1069_v24 = vpack.c.bf16 %v767_v16, %v766_v15  ;;  %v770_v25 = vmax.f32 %v754_v17, 0.0 }
 0x134   : > { %1084 = vst [vmem:[%s1450_s4 + $0x20] sm:$0xff] %v1064_v18   ;;  %v1074_v26 = vpack.c.bf16 %v769_v21, %v768_v20  ;;  %v771_v27 = vmax.f32 %v755_v23, 0.0 }
 0x135   : > { %1085 = vst [vmem:[%s1450_s4 + $0x28] sm:$0xff] %v1069_v24  }
 0x136   : > { %1086 = vst [vmem:[%s1450_s4 + $0x30] sm:$0xff] %v1074_v26   ;;  %v1079_v19 = vpack.c.bf16 %v771_v27, %v770_v25 }
 0x138   : > { %1087 = vst [vmem:[%s1450_s4 + $0x38] sm:$0xff] %v1079_v19  }
 0x139 PF: > { %s14_s19 = sadd.s32 1, %s1247_s19   ;;  %s1451_s15 = smov %s1235_s16 }
 0x13a   : > { %p11_p12 = scmp.ge.s32.totalorder %s14_s19, 11   ;;  %s1452_s16 = smov %s1310_s23 }
 0x13b   : > { %s1453_s17 = smov %s1243_s18  ;;  %s1454_s18 = smov %s1456_s20 }
 0x13c   :  { %13 = sbr.rel (!%p11_p12) target bundleno = 3 (0x3), region = 129 }

// kernel: bottleneck_forward.7
= control target key start
LH: loop header
LB: loop body
LE: loop exit
PB: predicated region body
PF: predicated region fallthrough
CT: control target
= control target key end

     0   :  { %10 = vsyncpa [#allocation6], 0  ;;  %s2038_s0 = inlined_call_operand.vmem [shape: bf16[128,128], index: 0, kind: input, shape index: {}]   ;;  %s2039_s1 = inlined_call_operand.vmem [shape: bf16[128,512], index: 1, kind: input, shape index: {}]   ;;  %s2040_s2 = inlined_call_operand.vmem [shape: f32[1,512], index: 2, kind: input, shape index: {}]   ;;  %s2041_s3 = inlined_call_operand.vmem [shape: f32[1,512], index: 3, kind: input, shape index: {}]   ;;  %s2042_s4 = inlined_call_operand.vmem [shape: f32[128,512], index: 4, kind: input, shape index: {}]   ;;  %s2043_s5 = inlined_call_operand.hbm [shape: f32[128,512], index: 5, kind: output, shape index: {}]  }
   0x1   :  { %12 = vsyncpa [#allocation6 + $0x1], 0  ;;  %s1614_s18 = smov 0   ;;  %s1616_s19 = smov 0  }
   0x2   :  { %s1618_s20 = smov 0   ;;  %s1620_s21 = smov 0  }
   0x3   :  { %s1622_s22 = smov 0   ;;  %s1624_s23 = smov 0  }
   0x4 LB: > { %s1345_s24 = sadd.s32 4294967295, %s1577_s23   ;;  %s1346_s25 = sadd.s32 4294967294, %s1577_s23   ;;  %s1577_s23 = sphi %s1624_s23, %s18_s23   ;;  %s1573_s22 = sphi %s1622_s22, %s2051_s22   ;;  %s1569_s21 = sphi %s1620_s21, %s2050_s21   ;;  %s1565_s20 = sphi %s1618_s20, %s2049_s20   ;;  %s1561_s19 = sphi %s1616_s19, %s2048_s19   ;;  %s1557_s18 = sphi %s1614_s18, %s2047_s18  }
   0x5   : > { %s33_s26 = sadd.s32 1, %s1573_s22  ;;  %s74_s27 = sadd.s32 1, %s1565_s20 }
   0x6   : > { %p35_p0 = scmp.ge.s32.totalorder %s33_s26, 2  ;;  %p81_p1 = scmp.ne.s32.totalorder %s1565_s20, %s1561_s19 }
   0x7   : > { %p82_p2 = scmp.eq.s32.totalorder %s1577_s23, 0  ;;  %p193_p3 = scmp.eq.s32.totalorder %s1345_s24, 1 }
   0x8   : > { %s2053_s26 = smov (%p35_p0, %s33_s26), 0  ;;  %p198_p6 = scmp.ne.s32.totalorder %s1561_s19, %s1557_s18 }
   0x9   : > { %p1653_p4 = por %p82_p2, %p81_p1  ;;  %p1657_p5 = por %p193_p3, %p81_p1 }
   0xa   : > { %s70_s30 = ssub.s32 %s1573_s22, %s2053_s26  ;;  %p199_p8 = scmp.eq.s32.totalorder %s1346_s25, 1 }
   0xb   : > { %p72_p7 = scmp.eq.s32.totalorder %s70_s30, 0  ;;  %p1349_p10 = scmp.ge.s32.totalorder %s1577_s23, 2 }
   0xc   : > { %p1668_p9 = por %p199_p8, %p198_p6 }
   0xd   : > { %s1666_s6 = scalar_select %p72_p7, %s1565_s20, %s74_s27  }
   0xe   : > { %227 = sbr.rel (%p1349_p10) target bundleno = 51 (0x33), region = 20 }
  0x13   : > { %230 = sbr.rel (!%p1653_p4) target bundleno = 31 (0x1f), region = 24  ;;  %s232_s8 = sand.u32 (%p1653_p4), 1, %s1565_s20  }
  0x14   : > { %s1391_s9 = sshll.u32 (%p1653_p4), %s1573_s22, 3  ;;  %s1350_s10 = sshll.u32 (%p1653_p4), %s232_s8, 7 }
  0x15   : > { %s1682_s13 = scalar_lea.vmem (%p1653_p4), %s2039_s1, %s1391_s9  ;;  %s234_s14 = scalar_lea.vmem (%p1653_p4), [#allocation3], %s1350_s10 }
  0x16   : > { %v299_v0 = vld [vmem:[%s1682_s13] sm:$0xff] (%p1653_p4)  ;;  %v301_v1 = vld [vmem:[%s1682_s13 + $0x10] sm:$0xff] (%p1653_p4) }
  0x17   : > { %v303_v2 = vld [vmem:[%s1682_s13 + $0x20] sm:$0xff] (%p1653_p4)  ;;  %300 = vst [vmem:[%s234_s14] sm:$0xff] (%p1653_p4), %v299_v0  ;;  %302 = vst [vmem:[%s234_s14 + $0x8] sm:$0xff] (%p1653_p4), %v301_v1  ;;  %v305_v3 = vld [vmem:[%s1682_s13 + $0x30] sm:$0xff] (%p1653_p4) }
  0x18   : > { %304 = vst [vmem:[%s234_s14 + $0x10] sm:$0xff] %v303_v2  ;;  %v307_v4 = vld [vmem:[%s1682_s13 + $0x40] sm:$0xff]  ;;  %v309_v5 = vld [vmem:[%s1682_s13 + $0x50] sm:$0xff]  ;;  %306 = vst [vmem:[%s234_s14 + $0x18] sm:$0xff] %v305_v3 }
  0x19   : > { %308 = vst [vmem:[%s234_s14 + $0x20] sm:$0xff] %v307_v4  ;;  %310 = vst [vmem:[%s234_s14 + $0x28] sm:$0xff] %v309_v5  ;;  %v311_v6 = vld [vmem:[%s1682_s13 + $0x60] sm:$0xff]  ;;  %v313_v7 = vld [vmem:[%s1682_s13 + $0x70] sm:$0xff] }
  0x1a   : > { %v315_v8 = vld [vmem:[%s1682_s13 + $0x80] sm:$0xff]  ;;  %312 = vst [vmem:[%s234_s14 + $0x30] sm:$0xff] %v311_v6  ;;  %314 = vst [vmem:[%s234_s14 + $0x38] sm:$0xff] %v313_v7  ;;  %v317_v9 = vld [vmem:[%s1682_s13 + $0x90] sm:$0xff] }
  0x1b   : > { %316 = vst [vmem:[%s234_s14 + $0x40] sm:$0xff] %v315_v8  ;;  %v319_v10 = vld [vmem:[%s1682_s13 + $0xa0] sm:$0xff]  ;;  %v321_v11 = vld [vmem:[%s1682_s13 + $0xb0] sm:$0xff]  ;;  %318 = vst [vmem:[%s234_s14 + $0x48] sm:$0xff] %v317_v9 }
  0x1c   : > { %320 = vst [vmem:[%s234_s14 + $0x50] sm:$0xff] %v319_v10  ;;  %322 = vst [vmem:[%s234_s14 + $0x58] sm:$0xff] %v321_v11  ;;  %v323_v12 = vld [vmem:[%s1682_s13 + $0xc0] sm:$0xff]  ;;  %v325_v13 = vld [vmem:[%s1682_s13 + $0xd0] sm:$0xff] }
  0x1d   : > { %v327_v14 = vld [vmem:[%s1682_s13 + $0xe0] sm:$0xff]  ;;  %324 = vst [vmem:[%s234_s14 + $0x60] sm:$0xff] %v323_v12  ;;  %326 = vst [vmem:[%s234_s14 + $0x68] sm:$0xff] %v325_v13  ;;  %v329_v15 = vld [vmem:[%s1682_s13 + $0xf0] sm:$0xff] }
  0x1e   : > { %328 = vst [vmem:[%s234_s14 + $0x70] sm:$0xff] %v327_v14  ;;  %330 = vst [vmem:[%s234_s14 + $0x78] sm:$0xff] %v329_v15 }
  0x1f PF: > { %352 = sbr.rel (!%p1653_p4) target bundleno = 51 (0x33), region = 70  ;;  %s354_s15 = sand.u32 (%p1653_p4), 1, %s1565_s20  }
  0x20   : > { %s1392_s16 = sshll.u32 (%p1653_p4), %s1573_s22, 4  ;;  %s1353_s17 = sshll.u32 (%p1653_p4), %s354_s15, 8 }
  0x21   : > { %s1707_s27 = scalar_lea.vmem (%p1653_p4), %s2042_s4, %s1392_s16  ;;  %s1712_s28 = scalar_lea.vmem (%p1653_p4), [#allocation4], %s1353_s17 }
  0x22   : > { %v375_v16 = vld [vmem:[%s1707_s27] sm:$0xff] (%p1653_p4)  ;;  %v377_v17 = vld [vmem:[%s1707_s27 + $0x8] sm:$0xff] (%p1653_p4) }
  0x23   : > { %v379_v18 = vld [vmem:[%s1707_s27 + $0x20] sm:$0xff] (%p1653_p4)  ;;  %376 = vst [vmem:[%s1712_s28] sm:$0xff] (%p1653_p4), %v375_v16  ;;  %378 = vst [vmem:[%s1712_s28 + $0x8] sm:$0xff] (%p1653_p4), %v377_v17  ;;  %v381_v19 = vld [vmem:[%s1707_s27 + $0x28] sm:$0xff] (%p1653_p4) }
  0x24   : > { %380 = vst [vmem:[%s1712_s28 + $0x10] sm:$0xff] %v379_v18  ;;  %v383_v20 = vld [vmem:[%s1707_s27 + $0x40] sm:$0xff]  ;;  %v385_v21 = vld [vmem:[%s1707_s27 + $0x48] sm:$0xff]  ;;  %382 = vst [vmem:[%s1712_s28 + $0x18] sm:$0xff] %v381_v19 }
  0x25   : > { %384 = vst [vmem:[%s1712_s28 + $0x20] sm:$0xff] %v383_v20  ;;  %386 = vst [vmem:[%s1712_s28 + $0x28] sm:$0xff] %v385_v21  ;;  %v387_v22 = vld [vmem:[%s1707_s27 + $0x60] sm:$0xff]  ;;  %v389_v23 = vld [vmem:[%s1707_s27 + $0x68] sm:$0xff] }
  0x26   : > { %v391_v24 = vld [vmem:[%s1707_s27 + $0x80] sm:$0xff]  ;;  %388 = vst [vmem:[%s1712_s28 + $0x30] sm:$0xff] %v387_v22  ;;  %390 = vst [vmem:[%s1712_s28 + $0x38] sm:$0xff] %v389_v23  ;;  %v393_v25 = vld [vmem:[%s1707_s27 + $0x88] sm:$0xff] }
  0x27   : > { %392 = vst [vmem:[%s1712_s28 + $0x40] sm:$0xff] %v391_v24  ;;  %v395_v26 = vld [vmem:[%s1707_s27 + $0xa0] sm:$0xff]  ;;  %v397_v27 = vld [vmem:[%s1707_s27 + $0xa8] sm:$0xff]  ;;  %394 = vst [vmem:[%s1712_s28 + $0x48] sm:$0xff] %v393_v25 }
  0x28   : > { %396 = vst [vmem:[%s1712_s28 + $0x50] sm:$0xff] %v395_v26  ;;  %398 = vst [vmem:[%s1712_s28 + $0x58] sm:$0xff] %v397_v27  ;;  %v399_v28 = vld [vmem:[%s1707_s27 + $0xc0] sm:$0xff]  ;;  %v401_v29 = vld [vmem:[%s1707_s27 + $0xc8] sm:$0xff] }
  0x29   : > { %v403_v30 = vld [vmem:[%s1707_s27 + $0xe0] sm:$0xff]  ;;  %400 = vst [vmem:[%s1712_s28 + $0x60] sm:$0xff] %v399_v28  ;;  %402 = vst [vmem:[%s1712_s28 + $0x68] sm:$0xff] %v401_v29  ;;  %v405_v31 = vld [vmem:[%s1707_s27 + $0xe8] sm:$0xff] }
  0x2a   : > { %404 = vst [vmem:[%s1712_s28 + $0x70] sm:$0xff] %v403_v30  ;;  %v407_v32 = vld [vmem:[%s1707_s27 + $0x100] sm:$0xff]  ;;  %v409_v33 = vld [vmem:[%s1707_s27 + $0x108] sm:$0xff]  ;;  %406 = vst [vmem:[%s1712_s28 + $0x78] sm:$0xff] %v405_v31 }
  0x2b   : > { %408 = vst [vmem:[%s1712_s28 + $0x80] sm:$0xff] %v407_v32  ;;  %410 = vst [vmem:[%s1712_s28 + $0x88] sm:$0xff] %v409_v33  ;;  %v411_v34 = vld [vmem:[%s1707_s27 + $0x120] sm:$0xff]  ;;  %v413_v35 = vld [vmem:[%s1707_s27 + $0x128] sm:$0xff] }
  0x2c   : > { %v415_v36 = vld [vmem:[%s1707_s27 + $0x140] sm:$0xff]  ;;  %412 = vst [vmem:[%s1712_s28 + $0x90] sm:$0xff] %v411_v34  ;;  %414 = vst [vmem:[%s1712_s28 + $0x98] sm:$0xff] %v413_v35  ;;  %v417_v37 = vld [vmem:[%s1707_s27 + $0x148] sm:$0xff] }
  0x2d   : > { %416 = vst [vmem:[%s1712_s28 + $0xa0] sm:$0xff] %v415_v36  ;;  %v419_v38 = vld [vmem:[%s1707_s27 + $0x160] sm:$0xff]  ;;  %v421_v39 = vld [vmem:[%s1707_s27 + $0x168] sm:$0xff]  ;;  %418 = vst [vmem:[%s1712_s28 + $0xa8] sm:$0xff] %v417_v37 }
  0x2e   : > { %420 = vst [vmem:[%s1712_s28 + $0xb0] sm:$0xff] %v419_v38  ;;  %422 = vst [vmem:[%s1712_s28 + $0xb8] sm:$0xff] %v421_v39  ;;  %v423_v40 = vld [vmem:[%s1707_s27 + $0x180] sm:$0xff]  ;;  %v425_v41 = vld [vmem:[%s1707_s27 + $0x188] sm:$0xff] }
  0x2f   : > { %v427_v42 = vld [vmem:[%s1707_s27 + $0x1a0] sm:$0xff]  ;;  %424 = vst [vmem:[%s1712_s28 + $0xc0] sm:$0xff] %v423_v40  ;;  %426 = vst [vmem:[%s1712_s28 + $0xc8] sm:$0xff] %v425_v41  ;;  %v429_v43 = vld [vmem:[%s1707_s27 + $0x1a8] sm:$0xff] }
  0x30   : > { %428 = vst [vmem:[%s1712_s28 + $0xd0] sm:$0xff] %v427_v42  ;;  %v431_v44 = vld [vmem:[%s1707_s27 + $0x1c0] sm:$0xff]  ;;  %v433_v45 = vld [vmem:[%s1707_s27 + $0x1c8] sm:$0xff]  ;;  %430 = vst [vmem:[%s1712_s28 + $0xd8] sm:$0xff] %v429_v43 }
  0x31   : > { %432 = vst [vmem:[%s1712_s28 + $0xe0] sm:$0xff] %v431_v44  ;;  %434 = vst [vmem:[%s1712_s28 + $0xe8] sm:$0xff] %v433_v45  ;;  %v435_v46 = vld [vmem:[%s1707_s27 + $0x1e0] sm:$0xff]  ;;  %v437_v47 = vld [vmem:[%s1707_s27 + $0x1e8] sm:$0xff] }
  0x32   : > { %436 = vst [vmem:[%s1712_s28 + $0xf0] sm:$0xff] %v435_v46  ;;  %438 = vst [vmem:[%s1712_s28 + $0xf8] sm:$0xff] %v437_v47 }
  0x33 PF: > { %p1356_p11 = scmp.ge.s32.totalorder %s1577_s23, 1  ;;  %p443_p12 = scmp.lt.s32.totalorder %s1577_s23, 3 }
  0x35   : > { %p444_p13 = pnand %p1356_p11, %p443_p12 }
  0x36   : > { %s1778_s30 = sand.u32 (!%p444_p13), 1, %s1561_s19   ;;  %s1360_s12 = sshll.u32 (!%p444_p13), %s1569_s21, 1 }
  0x37   : > { %447 = sbr.rel (%p444_p13) target bundleno = 342 (0x156), region = 93  ;;  %s1357_s8 = sshll.u32 (!%p444_p13), %s1778_s30, 7 }
  0x38   : > { %s1783_s9 = scalar_lea.vmem (!%p444_p13), [#allocation3], %s1357_s8  ;;  %p516_p0 = scmp.lt.s32.totalorder (!%p444_p13), %s1360_s12, 3 }
  0x39   : > { %s1358_s25 = sshll.u32 (!%p444_p13), %s1778_s30, 8  ;;  %s1393_s8 = sshll.u32 (!%p444_p13), %s1569_s21, 8 }
  0x3a   : > { %s1851_s27 = scalar_lea.vmem (!%p444_p13), [#allocation4], %s1358_s25  ;;  %s1873_s28 = scalar_lea.vmem (!%p444_p13), [#allocation5], %s1358_s25 }
  0x3b   : > { %s1984_s21 = scalar_lea.hbm (!%p444_p13), %s2043_s5, %s1393_s8  ;;  %s1580_s14 = smov (!%p444_p13), [#allocation5]  }
  0x3c   : > { %v1579_v48 = vmov 0   ;;  %v1469_v49 = vld [vmem:[%s1783_s9 + $0x74] ss:$8 sps:$4 sm:$0xff]   ;;  %v1471_v50 = vld [vmem:[%s1783_s9 + $0x70] ss:$8 sps:$4 sm:$0xff]   ;;  %v1493_v1 = vld [vmem:[%s2038_s0] sm:$0xff]   ;;  %v972_v9 = vlaneseq }
  0x3d   : > { %790 = vmatprep.mubr.bf16.mxu0 %v1579_v48  ;;  %830 = vmatprep.mubr.bf16.mxu1 %v1579_v48  ;;  %v1472_v51 = vld [vmem:[%s1783_s9 + $0x64] ss:$8 sps:$4 sm:$0xff]   ;;  %v1474_v52 = vld [vmem:[%s1783_s9 + $0x60] ss:$8 sps:$4 sm:$0xff]   ;;  %v1475_v53 = vld [vmem:[%s1783_s9 + $0x54] ss:$8 sps:$4 sm:$0xff]  }
  0x3e   : > { %758 = vmatprep.subr.bf16.mxu0 %v1469_v49  ;;  %1394 = vmatprep.subr.bf16.mxu1 %v1469_v49  ;;  %v1477_v54 = vld [vmem:[%s1783_s9 + $0x50] ss:$8 sps:$4 sm:$0xff]   ;;  %v1478_v55 = vld [vmem:[%s1783_s9 + $0x44] ss:$8 sps:$4 sm:$0xff]   ;;  %v1480_v56 = vld [vmem:[%s1783_s9 + $0x40] ss:$8 sps:$4 sm:$0xff]  }
  0x3f   : > { %759 = vmatpush1.bf16.msra.mxu0 %v1471_v50  ;;  %1402 = vmatpush1.bf16.msra.mxu1 %v1471_v50  ;;  %v1481_v57 = vld [vmem:[%s1783_s9 + $0x34] ss:$8 sps:$4 sm:$0xff]   ;;  %v1483_v58 = vld [vmem:[%s1783_s9 + $0x30] ss:$8 sps:$4 sm:$0xff]   ;;  %v1484_v59 = vld [vmem:[%s1783_s9 + $0x24] ss:$8 sps:$4 sm:$0xff]  }
  0x40   : > { %760 = vmatprep.subr.bf16.mxu0 %v1472_v51  ;;  %1395 = vmatprep.subr.bf16.mxu1 %v1472_v51  ;;  %v1486_v60 = vld [vmem:[%s1783_s9 + $0x20] ss:$8 sps:$4 sm:$0xff]   ;;  %v1487_v61 = vld [vmem:[%s1783_s9 + $0x14] ss:$8 sps:$4 sm:$0xff]   ;;  %v1489_v62 = vld [vmem:[%s1783_s9 + $0x10] ss:$8 sps:$4 sm:$0xff]  }
  0x41   : > { %v1490_v63 = vld [vmem:[%s1783_s9 + $0x4] ss:$8 sps:$4 sm:$0xff]   ;;  %v1492_v0 = vld [vmem:[%s1783_s9] ss:$8 sps:$4 sm:$0xff]   ;;  %v1497_v5 = vld [vmem:[%s2038_s0 + $0x10] sm:$0xff]   ;;  %s2055_s12 = smov (!%p516_p0, %s1360_s12), 3 }
  0x42   : > { %v1494_v2 = vld [vmem:[%s2038_s0 + $0x20] sm:$0xff]   ;;  %v1495_v3 = vld [vmem:[%s2038_s0 + $0x8] sm:$0xff]   ;;  %v1498_v6 = vld [vmem:[%s2038_s0 + $0x30] sm:$0xff]   ;;  %v973_v10 = vshrl.u32 %v972_v9, 7  ;;  %s518_s15 = scalar_lea.vmem %s2040_s2, %s2055_s12  ;;  %s523_s24 = scalar_lea.vmem %s2041_s3, %s2055_s12 }
  0x43   : > { %761 = vmatpush1.bf16.msra.mxu0 %v1474_v52  ;;  %1403 = vmatpush1.bf16.msra.mxu1 %v1474_v52  ;;  %v1496_v4 = vld [vmem:[%s2038_s0 + $0x28] sm:$0xff]   ;;  %v1499_v7 = vld [vmem:[%s2038_s0 + $0x18] sm:$0xff]   ;;  %v970_v12 = vld [vmem:[%s518_s15] sm:$0x3]  ;;  %s1203_s9 = sshll.u32 %s1873_s28, 4  ;;  %s1187_s12 = scalar_lea.sflag [#allocation6], %s1778_s30  ;;  %s1986_s9 = int_to_ptr.vmem [resolvable:$true] %s1203_s9 }
  0x44   : > { %762 = vmatprep.subr.bf16.mxu0 %v1475_v53  ;;  %1396 = vmatprep.subr.bf16.mxu1 %v1475_v53  ;;  %v1500_v8 = vld [vmem:[%s2038_s0 + $0x38] sm:$0xff]   ;;  %v974_v11 = vsub.s32 0, %v973_v10  ;;  %v978_v13 = vsub.s32 1, %v973_v10  ;;  %v1014_v14 = vld [vmem:[%s523_s24] sm:$0x3]  ;;  %v1059_v31 = vld [vmem:[%s1851_s27 + $0x8] sm:$0xff] }
  0x45   : > { %v1058_v23 = vld [vmem:[%s1851_s27] sm:$0xff]  ;;  %v1075_v32 = vld [vmem:[%s1851_s27 + $0x88] sm:$0xff]  ;;  %v1060_v47 = vld [vmem:[%s1851_s27 + $0x10] sm:$0xff]  ;;  %s1501_s13 = scalar_lea.vmem %s1986_s9, 4096  ;;  %s1505_s15 = sshll.u32 %s1580_s14, 4  ;;  %s1506_s15 = int_to_ptr.vmem [resolvable:$false] %s1505_s15 }
  0x46   : > { %v1839_v15 = vrot.slane %v970_v12, %v974_v11  ;;  %v1841_v16 = vrot.slane %v1014_v14, %v974_v11  ;;  %v1843_v17 = vrot.slane %v970_v12, %v978_v13  ;;  %v1847_v22 = vrot.slane %v1014_v14, %v978_v13  ;;  %v1074_v24 = vld [vmem:[%s1851_s27 + $0x80] sm:$0xff]  ;;  %v1063_v13 = vld [vmem:[%s1851_s27 + $0x28] sm:$0xff]  ;;  %p1502_p1 = scmp.ne.s32.totalorder %s1986_s9, %s1501_s13  ;;  %s1507_s16 = scalar_lea.vmem %s1506_s15, 8192 }
  0x47   : > { %763 = vmatpush1.bf16.msra.mxu0 %v1477_v54  ;;  %1404 = vmatpush1.bf16.msra.mxu1 %v1477_v54  ;;  %v1079_v14 = vld [vmem:[%s1851_s27 + $0xa8] sm:$0xff]  ;;  %p1508_p4 = scmp.lt.s32.totalorder %s1986_s9, %s1506_s15  ;;  %p1509_p6 = scmp.lt.s32.totalorder %s1507_s16, %s1501_s13 }
  0x48   : > { %764 = vmatprep.subr.bf16.mxu0 %v1478_v55  ;;  %1397 = vmatprep.subr.bf16.mxu1 %v1478_v55  ;;  %p1503_p2 = pnand %p1502_p1, %p1657_p5 }
  0x49   : > { %p1510_p7 = por %p1509_p6, %p1508_p4 }
  0x4a   : > { %p1504_p3 = pneg %p1503_p2 }
  0x4b   : > { %765 = vmatpush1.bf16.msra.mxu0 %v1480_v56  ;;  %1405 = vmatpush1.bf16.msra.mxu1 %v1480_v56 }
  0x4c   : > { %766 = vmatprep.subr.bf16.mxu0 %v1481_v57  ;;  %1398 = vmatprep.subr.bf16.mxu1 %v1481_v57  ;;  %v1061_v57 = vld [vmem:[%s1851_s27 + $0x18] sm:$0xff]  ;;  %p1511_p8 = pnand %p1510_p7, %p1504_p3 }
  0x4f   : > { %767 = vmatpush1.bf16.msra.mxu0 %v1483_v58  ;;  %1406 = vmatpush1.bf16.msra.mxu1 %v1483_v58  ;;  %v1077_v58 = vld [vmem:[%s1851_s27 + $0x98] sm:$0xff] }
  0x50   : > { %768 = vmatprep.subr.bf16.mxu0 %v1484_v59  ;;  %1399 = vmatprep.subr.bf16.mxu1 %v1484_v59 }
  0x53   : > { %769 = vmatpush1.bf16.msra.mxu0 %v1486_v60  ;;  %1407 = vmatpush1.bf16.msra.mxu1 %v1486_v60 }
  0x54   : > { %770 = vmatprep.subr.bf16.mxu0 %v1487_v61  ;;  %1400 = vmatprep.subr.bf16.mxu1 %v1487_v61 }
  0x57   : > { %771 = vmatpush1.bf16.msra.mxu0 %v1489_v62  ;;  %1408 = vmatpush1.bf16.msra.mxu1 %v1489_v62 }
  0x58   : > { %772 = vmatprep.subr.bf16.mxu0 %v1490_v63  ;;  %1401 = vmatprep.subr.bf16.mxu1 %v1490_v63 }
  0x5b   : > { %773 = vmatpush1.bf16.msra.mxu0 %v1492_v0  ;;  %1409 = vmatpush1.bf16.msra.mxu1 %v1492_v0 }
  0x5e   : > { %791 = vmatmul.mubr.bf16.vlgmr.msra.gmra.mxu0 %v1493_v1  ;;  %831 = vmatmul.mubr.bf16.vlgmr.msra.gmra.mxu1 %v1494_v2  ;;  %v1062_v1 = vld [vmem:[%s1851_s27 + $0x20] sm:$0xff] }
  0x5f   : > { %800 = vmatprep.mubr.bf16.mxu0 %v1579_v48  ;;  %840 = vmatprep.mubr.bf16.mxu1 %v1579_v48  ;;  %v1078_v2 = vld [vmem:[%s1851_s27 + $0xa0] sm:$0xff] }
  0x66   : > { %801 = vmatmul.mubr.bf16.gmra.mxu0 %v1495_v3  ;;  %841 = vmatmul.mubr.bf16.gmra.mxu1 %v1496_v4 }
  0x67   : > { %810 = vmatprep.mubr.bf16.mxu0 %v1579_v48  ;;  %850 = vmatprep.mubr.bf16.mxu1 %v1579_v48 }
  0x6e   : > { %811 = vmatmul.mubr.bf16.gmra.mxu0 %v1497_v5  ;;  %851 = vmatmul.mubr.bf16.gmra.mxu1 %v1498_v6 }
  0x6f   : > { %820 = vmatprep.mubr.bf16.mxu0 %v1579_v48  ;;  %860 = vmatprep.mubr.bf16.mxu1 %v1579_v48  ;;  %v1076_v48 = vld [vmem:[%s1851_s27 + $0x90] sm:$0xff] }
  0x76   : > { %821 = vmatmul.mubr.bf16.gmra.mxu0 %v1499_v7  ;;  %861 = vmatmul.mubr.bf16.gmra.mxu1 %v1500_v8 }
 0x11e   : > { %v792_v18 = vpop.f32.mrf.mxu0  ;;  %v832_v19 = vpop.f32.mrf.mxu1 }
 0x11f   : > { %v982_v20 = vmul.f32 %v1839_v15, %v792_v18  ;;  %v998_v21 = vmul.f32 %v1839_v15, %v832_v19 }
 0x120   : > { %v794_v25 = vpop.f32.mrf.mxu0  ;;  %v834_v26 = vpop.f32.mrf.mxu1 }
 0x121   : > { %v1026_v27 = vadd.f32 %v1841_v16, %v982_v20  ;;  %v1042_v28 = vadd.f32 %v1841_v16, %v998_v21  ;;  %v983_v29 = vmul.f32 %v1843_v17, %v794_v25  ;;  %v999_v30 = vmul.f32 %v1843_v17, %v834_v26 }
 0x122   : > { %v796_v33 = vpop.f32.mrf.mxu0  ;;  %v836_v34 = vpop.f32.mrf.mxu1 }
 0x123   : > { %v1090_v35 = vadd.f32 %v1058_v23, %v1026_v27  ;;  %v1106_v36 = vadd.f32 %v1074_v24, %v1042_v28  ;;  %v1027_v37 = vadd.f32 %v1847_v22, %v983_v29  ;;  %v1043_v38 = vadd.f32 %v1847_v22, %v999_v30 }
 0x124   : > { %v984_v39 = vmul.f32 %v1839_v15, %v796_v33  ;;  %v1000_v40 = vmul.f32 %v1839_v15, %v836_v34  ;;  %v798_v41 = vpop.f32.mrf.mxu0  ;;  %v838_v42 = vpop.f32.mrf.mxu1 }
 0x125   : > { %v1122_v43 = vmax.f32 %v1090_v35, 0.0  ;;  %v1138_v44 = vmax.f32 %v1106_v36, 0.0  ;;  %v1091_v45 = vadd.f32 %v1059_v31, %v1027_v37  ;;  %v1107_v46 = vadd.f32 %v1075_v32, %v1043_v38  ;;  %v1064_v35 = vld [vmem:[%s1851_s27 + $0x30] sm:$0xff] }
 0x126   : > { %v1028_v49 = vadd.f32 %v1841_v16, %v984_v39  ;;  %v1044_v50 = vadd.f32 %v1841_v16, %v1000_v40  ;;  %v985_v51 = vmul.f32 %v1843_v17, %v798_v41  ;;  %v1001_v52 = vmul.f32 %v1843_v17, %v838_v42  ;;  %v802_v53 = vpop.f32.mrf.mxu0  ;;  %v842_v54 = vpop.f32.mrf.mxu1  ;;  %v1080_v36 = vld [vmem:[%s1851_s27 + $0xb0] sm:$0xff] }
 0x127   : > { %1154 = vst [vmem:[%s1873_s28] sm:$0xff] %v1122_v43  ;;  %1170 = vst [vmem:[%s1873_s28 + $0x80] sm:$0xff] %v1138_v44  ;;  %v1123_v55 = vmax.f32 %v1091_v45, 0.0  ;;  %v1139_v56 = vmax.f32 %v1107_v46, 0.0  ;;  %v986_v59 = vmul.f32 %v1839_v15, %v802_v53  ;;  %v1002_v60 = vmul.f32 %v1839_v15, %v842_v54  ;;  %v1065_v45 = vld [vmem:[%s1851_s27 + $0x38] sm:$0xff]  ;;  %v1066_v53 = vld [vmem:[%s1851_s27 + $0x40] sm:$0xff] }
 0x128   : > { %v1092_v61 = vadd.f32 %v1060_v47, %v1028_v49  ;;  %v1108_v62 = vadd.f32 %v1076_v48, %v1044_v50  ;;  %v1029_v63 = vadd.f32 %v1847_v22, %v985_v51  ;;  %v1045_v0 = vadd.f32 %v1847_v22, %v1001_v52  ;;  %v804_v3 = vpop.f32.mrf.mxu0  ;;  %v844_v4 = vpop.f32.mrf.mxu1  ;;  %v1081_v46 = vld [vmem:[%s1851_s27 + $0xb8] sm:$0xff]  ;;  %v1082_v54 = vld [vmem:[%s1851_s27 + $0xc0] sm:$0xff] }
 0x129   : > { %1155 = vst [vmem:[%s1873_s28 + $0x8] sm:$0xff] %v1123_v55  ;;  %1171 = vst [vmem:[%s1873_s28 + $0x88] sm:$0xff] %v1139_v56  ;;  %v1030_v5 = vadd.f32 %v1841_v16, %v986_v59  ;;  %v1046_v6 = vadd.f32 %v1841_v16, %v1002_v60  ;;  %v987_v7 = vmul.f32 %v1843_v17, %v804_v3 }
 0x12a   : > { %v1003_v8 = vmul.f32 %v1843_v17, %v844_v4  ;;  %v1124_v9 = vmax.f32 %v1092_v61, 0.0  ;;  %v1140_v10 = vmax.f32 %v1108_v62, 0.0  ;;  %v1093_v11 = vadd.f32 %v1061_v57, %v1029_v63  ;;  %v806_v18 = vpop.f32.mrf.mxu0  ;;  %v846_v19 = vpop.f32.mrf.mxu1 }
 0x12b   : > { %v1109_v12 = vadd.f32 %v1077_v58, %v1045_v0  ;;  %v1094_v20 = vadd.f32 %v1062_v1, %v1030_v5  ;;  %v1110_v21 = vadd.f32 %v1078_v2, %v1046_v6  ;;  %v1031_v23 = vadd.f32 %v1847_v22, %v987_v7  ;;  %v1067_v1 = vld [vmem:[%s1851_s27 + $0x48] sm:$0xff] }
 0x12c   : > { %v1047_v24 = vadd.f32 %v1847_v22, %v1003_v8  ;;  %1156 = vst [vmem:[%s1873_s28 + $0x10] sm:$0xff] %v1124_v9  ;;  %1172 = vst [vmem:[%s1873_s28 + $0x90] sm:$0xff] %v1140_v10  ;;  %v1125_v25 = vmax.f32 %v1093_v11, 0.0  ;;  %v988_v27 = vmul.f32 %v1839_v15, %v806_v18  ;;  %v1004_v28 = vmul.f32 %v1839_v15, %v846_v19  ;;  %v808_v29 = vpop.f32.mrf.mxu0  ;;  %v848_v30 = vpop.f32.mrf.mxu1  ;;  %v1083_v2 = vld [vmem:[%s1851_s27 + $0xc8] sm:$0xff] }
 0x12d   : > { %v1141_v26 = vmax.f32 %v1109_v12, 0.0  ;;  %v1126_v31 = vmax.f32 %v1094_v20, 0.0  ;;  %v1142_v32 = vmax.f32 %v1110_v21, 0.0  ;;  %v1095_v33 = vadd.f32 %v1063_v13, %v1031_v23  ;;  %v1068_v23 = vld [vmem:[%s1851_s27 + $0x50] sm:$0xff] }
 0x12e   : > { %v1111_v34 = vadd.f32 %v1079_v14, %v1047_v24  ;;  %1157 = vst [vmem:[%s1873_s28 + $0x18] sm:$0xff] %v1125_v25  ;;  %v1032_v37 = vadd.f32 %v1841_v16, %v988_v27  ;;  %v1048_v38 = vadd.f32 %v1841_v16, %v1004_v28  ;;  %v989_v39 = vmul.f32 %v1843_v17, %v808_v29  ;;  %v812_v41 = vpop.f32.mrf.mxu0  ;;  %v852_v42 = vpop.f32.mrf.mxu1  ;;  %v1084_v24 = vld [vmem:[%s1851_s27 + $0xd0] sm:$0xff] }
 0x12f   : > { %1173 = vst [vmem:[%s1873_s28 + $0x98] sm:$0xff] %v1141_v26  ;;  %v1005_v40 = vmul.f32 %v1843_v17, %v848_v30  ;;  %1158 = vst [vmem:[%s1873_s28 + $0x20] sm:$0xff] %v1126_v31  ;;  %v1127_v43 = vmax.f32 %v1095_v33, 0.0  ;;  %v990_v47 = vmul.f32 %v1839_v15, %v812_v41  ;;  %v1006_v48 = vmul.f32 %v1839_v15, %v852_v42  ;;  %v1069_v33 = vld [vmem:[%s1851_s27 + $0x58] sm:$0xff]  ;;  %v1070_v41 = vld [vmem:[%s1851_s27 + $0x60] sm:$0xff] }
 0x130   : > { %1174 = vst [vmem:[%s1873_s28 + $0xa0] sm:$0xff] %v1142_v32  ;;  %v1143_v44 = vmax.f32 %v1111_v34, 0.0  ;;  %v1096_v49 = vadd.f32 %v1064_v35, %v1032_v37  ;;  %v1112_v50 = vadd.f32 %v1080_v36, %v1048_v38  ;;  %v1033_v51 = vadd.f32 %v1847_v22, %v989_v39  ;;  %v814_v55 = vpop.f32.mrf.mxu0  ;;  %v854_v56 = vpop.f32.mrf.mxu1  ;;  %v1085_v34 = vld [vmem:[%s1851_s27 + $0xd8] sm:$0xff]  ;;  %v1086_v42 = vld [vmem:[%s1851_s27 + $0xe0] sm:$0xff] }
 0x131   : > { %v1049_v52 = vadd.f32 %v1847_v22, %v1005_v40  ;;  %1159 = vst [vmem:[%s1873_s28 + $0x28] sm:$0xff] %v1127_v43  ;;  %v1034_v57 = vadd.f32 %v1841_v16, %v990_v47  ;;  %v1050_v58 = vadd.f32 %v1841_v16, %v1006_v48  ;;  %v991_v59 = vmul.f32 %v1843_v17, %v814_v55 }
 0x132   : > { %1175 = vst [vmem:[%s1873_s28 + $0xa8] sm:$0xff] %v1143_v44  ;;  %v1007_v60 = vmul.f32 %v1843_v17, %v854_v56  ;;  %v1128_v61 = vmax.f32 %v1096_v49, 0.0  ;;  %v1144_v62 = vmax.f32 %v1112_v50, 0.0  ;;  %v1097_v63 = vadd.f32 %v1065_v45, %v1033_v51  ;;  %v816_v3 = vpop.f32.mrf.mxu0  ;;  %v856_v4 = vpop.f32.mrf.mxu1 }
 0x133   : > { %v1113_v0 = vadd.f32 %v1081_v46, %v1049_v52  ;;  %v1098_v5 = vadd.f32 %v1066_v53, %v1034_v57  ;;  %v1114_v6 = vadd.f32 %v1082_v54, %v1050_v58  ;;  %v1035_v7 = vadd.f32 %v1847_v22, %v991_v59  ;;  %v1071_v53 = vld [vmem:[%s1851_s27 + $0x68] sm:$0xff] }
 0x134   : > { %v1051_v8 = vadd.f32 %v1847_v22, %v1007_v60  ;;  %1160 = vst [vmem:[%s1873_s28 + $0x30] sm:$0xff] %v1128_v61  ;;  %1176 = vst [vmem:[%s1873_s28 + $0xb0] sm:$0xff] %v1144_v62  ;;  %v1129_v9 = vmax.f32 %v1097_v63, 0.0  ;;  %v992_v11 = vmul.f32 %v1839_v15, %v816_v3  ;;  %v1008_v12 = vmul.f32 %v1839_v15, %v856_v4  ;;  %v818_v13 = vpop.f32.mrf.mxu0  ;;  %v858_v14 = vpop.f32.mrf.mxu1  ;;  %v1087_v54 = vld [vmem:[%s1851_s27 + $0xe8] sm:$0xff] }
 0x135   : > { %v1145_v10 = vmax.f32 %v1113_v0, 0.0  ;;  %v1130_v18 = vmax.f32 %v1098_v5, 0.0  ;;  %v1146_v19 = vmax.f32 %v1114_v6, 0.0  ;;  %v1099_v20 = vadd.f32 %v1067_v1, %v1035_v7  ;;  %v1072_v7 = vld [vmem:[%s1851_s27 + $0x70] sm:$0xff] }
 0x136   : > { %v1115_v21 = vadd.f32 %v1083_v2, %v1051_v8  ;;  %1161 = vst [vmem:[%s1873_s28 + $0x38] sm:$0xff] %v1129_v9  ;;  %v1036_v25 = vadd.f32 %v1841_v16, %v992_v11  ;;  %v1052_v26 = vadd.f32 %v1841_v16, %v1008_v12  ;;  %v993_v27 = vmul.f32 %v1843_v17, %v818_v13  ;;  %v822_v29 = vpop.f32.mrf.mxu0  ;;  %v862_v30 = vpop.f32.mrf.mxu1  ;;  %v1088_v8 = vld [vmem:[%s1851_s27 + $0xf0] sm:$0xff] }
 0x137   : > { %1177 = vst [vmem:[%s1873_s28 + $0xb8] sm:$0xff] %v1145_v10  ;;  %v1009_v28 = vmul.f32 %v1843_v17, %v858_v14  ;;  %1162 = vst [vmem:[%s1873_s28 + $0x40] sm:$0xff] %v1130_v18  ;;  %v1131_v31 = vmax.f32 %v1099_v20, 0.0  ;;  %v994_v35 = vmul.f32 %v1839_v15, %v822_v29  ;;  %v1010_v36 = vmul.f32 %v1839_v15, %v862_v30  ;;  %v1073_v14 = vld [vmem:[%s1851_s27 + $0x78] sm:$0xff] }
 0x138   : > { %1178 = vst [vmem:[%s1873_s28 + $0xc0] sm:$0xff] %v1146_v19  ;;  %v1147_v32 = vmax.f32 %v1115_v21, 0.0  ;;  %v1100_v37 = vadd.f32 %v1068_v23, %v1036_v25  ;;  %v1116_v38 = vadd.f32 %v1084_v24, %v1052_v26  ;;  %v1037_v39 = vadd.f32 %v1847_v22, %v993_v27  ;;  %v824_v43 = vpop.f32.mrf.mxu0  ;;  %v864_v44 = vpop.f32.mrf.mxu1  ;;  %v1089_v18 = vld [vmem:[%s1851_s27 + $0xf8] sm:$0xff] }
 0x139   : > { %v1053_v40 = vadd.f32 %v1847_v22, %v1009_v28  ;;  %1163 = vst [vmem:[%s1873_s28 + $0x48] sm:$0xff] %v1131_v31  ;;  %v1038_v45 = vadd.f32 %v1841_v16, %v994_v35  ;;  %v1054_v46 = vadd.f32 %v1841_v16, %v1010_v36  ;;  %v995_v47 = vmul.f32 %v1843_v17, %v824_v43 }
 0x13a   : > { %1179 = vst [vmem:[%s1873_s28 + $0xc8] sm:$0xff] %v1147_v32  ;;  %v1011_v48 = vmul.f32 %v1843_v17, %v864_v44  ;;  %v1132_v49 = vmax.f32 %v1100_v37, 0.0  ;;  %v1148_v50 = vmax.f32 %v1116_v38, 0.0  ;;  %v1101_v51 = vadd.f32 %v1069_v33, %v1037_v39  ;;  %v826_v55 = vpop.f32.mrf.mxu0  ;;  %v866_v56 = vpop.f32.mrf.mxu1 }
 0x13b   : > { %v1117_v52 = vadd.f32 %v1085_v34, %v1053_v40  ;;  %v1102_v57 = vadd.f32 %v1070_v41, %v1038_v45  ;;  %v1118_v58 = vadd.f32 %v1086_v42, %v1054_v46  ;;  %v1039_v59 = vadd.f32 %v1847_v22, %v995_v47 }
 0x13c   : > { %v1055_v60 = vadd.f32 %v1847_v22, %v1011_v48  ;;  %1164 = vst [vmem:[%s1873_s28 + $0x50] sm:$0xff] %v1132_v49  ;;  %1180 = vst [vmem:[%s1873_s28 + $0xd0] sm:$0xff] %v1148_v50  ;;  %v1133_v61 = vmax.f32 %v1101_v51, 0.0  ;;  %v996_v63 = vmul.f32 %v1839_v15, %v826_v55  ;;  %v1012_v0 = vmul.f32 %v1839_v15, %v866_v56  ;;  %v828_v1 = vpop.f32.mrf.mxu0  ;;  %v868_v2 = vpop.f32.mrf.mxu1 }
 0x13d   : > { %v1149_v62 = vmax.f32 %v1117_v52, 0.0  ;;  %v1134_v3 = vmax.f32 %v1102_v57, 0.0  ;;  %v1150_v4 = vmax.f32 %v1118_v58, 0.0  ;;  %v1103_v5 = vadd.f32 %v1071_v53, %v1039_v59 }
 0x13e   : > { %v1119_v6 = vadd.f32 %v1087_v54, %v1055_v60  ;;  %1165 = vst [vmem:[%s1873_s28 + $0x58] sm:$0xff] %v1133_v61  ;;  %v1040_v9 = vadd.f32 %v1841_v16, %v996_v63  ;;  %v1056_v15 = vadd.f32 %v1841_v16, %v1012_v0  ;;  %v997_v10 = vmul.f32 %v1843_v17, %v828_v1 }
 0x13f   : > { %1181 = vst [vmem:[%s1873_s28 + $0xd8] sm:$0xff] %v1149_v62  ;;  %v1013_v11 = vmul.f32 %v1843_v17, %v868_v2  ;;  %1166 = vst [vmem:[%s1873_s28 + $0x60] sm:$0xff] %v1134_v3  ;;  %v1135_v12 = vmax.f32 %v1103_v5, 0.0 }
 0x140   : > { %1182 = vst [vmem:[%s1873_s28 + $0xe0] sm:$0xff] %v1150_v4  ;;  %v1151_v13 = vmax.f32 %v1119_v6, 0.0  ;;  %v1104_v19 = vadd.f32 %v1072_v7, %v1040_v9  ;;  %v1120_v20 = vadd.f32 %v1088_v8, %v1056_v15  ;;  %v1041_v21 = vadd.f32 %v1847_v22, %v997_v10 }
 0x141   : > { %v1057_v16 = vadd.f32 %v1847_v22, %v1013_v11  ;;  %1167 = vst [vmem:[%s1873_s28 + $0x68] sm:$0xff] %v1135_v12 }
 0x142   : > { %1183 = vst [vmem:[%s1873_s28 + $0xe8] sm:$0xff] %v1151_v13  ;;  %v1136_v17 = vmax.f32 %v1104_v19, 0.0  ;;  %v1152_v23 = vmax.f32 %v1120_v20, 0.0  ;;  %v1105_v24 = vadd.f32 %v1073_v14, %v1041_v21 }
 0x143   : > { %v1121_v25 = vadd.f32 %v1089_v18, %v1057_v16 }
 0x144   : > { %1168 = vst [vmem:[%s1873_s28 + $0x70] sm:$0xff] %v1136_v17  ;;  %1184 = vst [vmem:[%s1873_s28 + $0xf0] sm:$0xff] %v1152_v23  ;;  %v1137_v22 = vmax.f32 %v1105_v24, 0.0 }
 0x145   : > { %v1153_v26 = vmax.f32 %v1121_v25, 0.0 }
 0x146   : > { %1169 = vst [vmem:[%s1873_s28 + $0x78] sm:$0xff] %v1137_v22 }
 0x147   : > { %1185 = vst [vmem:[%s1873_s28 + $0xf8] sm:$0xff] %v1153_v26 }
 0x148   : > { %1514 = shalt.err (!%p1511_p8)
}
 0x149   : > { %s1515_s17 = scalar_lea.hbm %s1984_s21, 4096  ;;  %s1519_s27 = scalar_lea.hbm %s2043_s5, 8192 }
 0x14a   : > { %p1516_p11 = scmp.ne.s32.totalorder %s1984_s21, %s1515_s17  ;;  %p1520_p0 = scmp.lt.s32.totalorder %s1984_s21, %s2043_s5 }
 0x14b   : > { %p1521_p1 = scmp.lt.s32.totalorder %s1519_s27, %s1515_s17 }
 0x14c   : > { %p1517_p12 = pnand %p1516_p11, %p1657_p5 }
 0x14d   : > { %p1522_p2 = por %p1521_p1, %p1520_p0 }
 0x14e   : > { %p1518_p13 = pneg %p1517_p12 }
 0x150   : > { %p1523_p3 = pnand %p1522_p2, %p1518_p13 }
 0x152   : > { %1526 = shalt.err (!%p1523_p3)
}
 0x153   : > { %s1581_s10 = smov 256   ;;  %s1582_s11 = smov 512  }
 0x154   : > { %s1583_s13 = smov 16  }
 0x155   : > { %1410 = dma.vmem_to_hbm [thread:$0]  (%p1657_p5), %s1986_s9, 4096, %s1984_s21, %s1187_s12, %s1581_s10, %s1582_s11, %s1583_s13  }
 0x156 PF: > { %s1218_s14 = sand.u32 1, %s1557_s18   ;;  %p1413_p4 = pnand %p1349_p10, %p1668_p9 }
 0x157   : > { %s1219_s15 = scalar_lea.sflag [#allocation6], %s1218_s14 }
 0x158   : > { %p1414_p6 = pneg %p1413_p4 }
 0x15a   : > { %1552 = dma.done.wait (%p1414_p6), %s1219_s15, 4096  }
 0x15b   : > { %1554 = vsyncadd (%p1414_p6), %s1219_s15, 4294963200  ;;  %s18_s23 = sadd.s32 1, %s1577_s23   ;;  %s2047_s18 = smov %s1561_s19 }
 0x15c   : > { %p15_p7 = scmp.ge.s32.totalorder %s18_s23, 4   ;;  %s2048_s19 = smov %s1565_s20 }
 0x15d   : > { %s2049_s20 = smov %s1666_s6  ;;  %s2050_s21 = smov %s1573_s22 }
 0x15e   : > { %s2051_s22 = smov %s2053_s26  ;;  %17 = sbr.rel (!%p15_p7) target bundleno = 4 (0x4), region = 166 }
 0x163   :  { %1224 = vsyncpa [#allocation6], 1 }
 0x164   :  { %1226 = vsyncpa [#allocation6 + $0x1], 1 }

// kernel: bottleneck_forward.6
= control target key start
LH: loop header
LB: loop body
LE: loop exit
PB: predicated region body
PF: predicated region fallthrough
CT: control target
= control target key end

     0   :  { %s1631_s15 = smov 0   ;;  %s1633_s16 = smov 0   ;;  %s2036_s0 = inlined_call_operand.vmem [shape: bf16[128,256], index: 0, kind: input, shape index: {}]   ;;  %s2037_s1 = inlined_call_operand.vmem [shape: bf16[256,512], index: 1, kind: input, shape index: {}]   ;;  %s2038_s2 = inlined_call_operand.vmem [shape: f32[1,512], index: 2, kind: input, shape index: {}]   ;;  %s2039_s3 = inlined_call_operand.vmem [shape: f32[1,512], index: 3, kind: input, shape index: {}]   ;;  %s2040_s4 = inlined_call_operand.vmem [shape: f32[128,512], index: 4, kind: output, shape index: {}]  }
   0x1   :  { %s1635_s17 = smov 0   ;;  %s1637_s18 = smov 0  }
   0x2   :  { %s1639_s19 = smov 0  }
   0x3 LB: > { %s29_s20 = sadd.s32 1, %s1600_s18  ;;  %s1354_s21 = sadd.s32 4294967295, %s1604_s19   ;;  %s1604_s19 = sphi %s1639_s19, %s14_s19   ;;  %s1600_s18 = sphi %s1637_s18, %s2045_s18   ;;  %s1596_s17 = sphi %s1635_s17, %s2044_s17   ;;  %s1592_s16 = sphi %s1633_s16, %s2043_s16   ;;  %s1588_s15 = sphi %s1631_s15, %s2042_s15  }
   0x4   : > { %p31_p0 = scmp.ge.s32.totalorder %s29_s20, 2  ;;  %p77_p1 = scmp.ne.s32.totalorder %s1592_s16, %s1588_s15 }
   0x5   : > { %p78_p2 = scmp.eq.s32.totalorder %s1604_s19, 0  ;;  %p161_p4 = scmp.eq.s32.totalorder %s1354_s21, 1 }
   0x6   : > { %s2047_s20 = smov (%p31_p0, %s29_s20), 0  ;;  %s70_s23 = sadd.s32 1, %s1592_s16 }
   0x7   : > { %p79_p3 = por %p78_p2, %p77_p1  ;;  %s66_s22 = ssub.s32 %s1600_s18, %s2047_s20 }
   0x8   : > { %p68_p5 = scmp.eq.s32.totalorder %s66_s22, 0  ;;  %p1666_p6 = por %p161_p4, %p77_p1 }
   0x9   : > { %p1358_p7 = scmp.ge.s32.totalorder %s1604_s19, 2 }
   0xa   : > { %s1671_s25 = scalar_select %p68_p5, %s1592_s16, %s70_s23  }
   0xb   : > { %198 = sbr.rel (%p1358_p7) target bundleno = 36 (0x24), region = 20 }
  0x10   : > { %201 = sbr.rel (!%p79_p3) target bundleno = 36 (0x24), region = 24  ;;  %s203_s26 = sand.u32 (%p79_p3), 1, %s1592_s16  }
  0x11   : > { %s1420_s27 = sshll.u32 (%p79_p3), %s1600_s18, 3  ;;  %s1359_s28 = sshll.u32 (%p79_p3), %s203_s26, 8 }
  0x12   : > { %s1679_s5 = scalar_lea.vmem (%p79_p3), %s2037_s1, %s1420_s27  ;;  %s1684_s6 = scalar_lea.vmem (%p79_p3), [#allocation3], %s1359_s28 }
  0x13   : > { %v302_v0 = vld [vmem:[%s1679_s5] sm:$0xff] (%p79_p3)  ;;  %v304_v1 = vld [vmem:[%s1679_s5 + $0x10] sm:$0xff] (%p79_p3) }
  0x14   : > { %v306_v2 = vld [vmem:[%s1679_s5 + $0x20] sm:$0xff] (%p79_p3)  ;;  %303 = vst [vmem:[%s1684_s6] sm:$0xff] (%p79_p3), %v302_v0  ;;  %305 = vst [vmem:[%s1684_s6 + $0x8] sm:$0xff] (%p79_p3), %v304_v1  ;;  %v308_v3 = vld [vmem:[%s1679_s5 + $0x30] sm:$0xff] (%p79_p3) }
  0x15   : > { %307 = vst [vmem:[%s1684_s6 + $0x10] sm:$0xff] %v306_v2  ;;  %v310_v4 = vld [vmem:[%s1679_s5 + $0x40] sm:$0xff]  ;;  %v312_v5 = vld [vmem:[%s1679_s5 + $0x50] sm:$0xff]  ;;  %309 = vst [vmem:[%s1684_s6 + $0x18] sm:$0xff] %v308_v3 }
  0x16   : > { %311 = vst [vmem:[%s1684_s6 + $0x20] sm:$0xff] %v310_v4  ;;  %313 = vst [vmem:[%s1684_s6 + $0x28] sm:$0xff] %v312_v5  ;;  %v314_v6 = vld [vmem:[%s1679_s5 + $0x60] sm:$0xff]  ;;  %v316_v7 = vld [vmem:[%s1679_s5 + $0x70] sm:$0xff] }
  0x17   : > { %v318_v8 = vld [vmem:[%s1679_s5 + $0x80] sm:$0xff]  ;;  %315 = vst [vmem:[%s1684_s6 + $0x30] sm:$0xff] %v314_v6  ;;  %317 = vst [vmem:[%s1684_s6 + $0x38] sm:$0xff] %v316_v7  ;;  %v320_v9 = vld [vmem:[%s1679_s5 + $0x90] sm:$0xff] }
  0x18   : > { %319 = vst [vmem:[%s1684_s6 + $0x40] sm:$0xff] %v318_v8  ;;  %v322_v10 = vld [vmem:[%s1679_s5 + $0xa0] sm:$0xff]  ;;  %v324_v11 = vld [vmem:[%s1679_s5 + $0xb0] sm:$0xff]  ;;  %321 = vst [vmem:[%s1684_s6 + $0x48] sm:$0xff] %v320_v9 }
  0x19   : > { %323 = vst [vmem:[%s1684_s6 + $0x50] sm:$0xff] %v322_v10  ;;  %325 = vst [vmem:[%s1684_s6 + $0x58] sm:$0xff] %v324_v11  ;;  %v326_v12 = vld [vmem:[%s1679_s5 + $0xc0] sm:$0xff]  ;;  %v328_v13 = vld [vmem:[%s1679_s5 + $0xd0] sm:$0xff] }
  0x1a   : > { %v330_v14 = vld [vmem:[%s1679_s5 + $0xe0] sm:$0xff]  ;;  %327 = vst [vmem:[%s1684_s6 + $0x60] sm:$0xff] %v326_v12  ;;  %329 = vst [vmem:[%s1684_s6 + $0x68] sm:$0xff] %v328_v13  ;;  %v332_v15 = vld [vmem:[%s1679_s5 + $0xf0] sm:$0xff] }
  0x1b   : > { %331 = vst [vmem:[%s1684_s6 + $0x70] sm:$0xff] %v330_v14  ;;  %v334_v16 = vld [vmem:[%s1679_s5 + $0x100] sm:$0xff]  ;;  %v336_v17 = vld [vmem:[%s1679_s5 + $0x110] sm:$0xff]  ;;  %333 = vst [vmem:[%s1684_s6 + $0x78] sm:$0xff] %v332_v15 }
  0x1c   : > { %335 = vst [vmem:[%s1684_s6 + $0x80] sm:$0xff] %v334_v16  ;;  %337 = vst [vmem:[%s1684_s6 + $0x88] sm:$0xff] %v336_v17  ;;  %v338_v18 = vld [vmem:[%s1679_s5 + $0x120] sm:$0xff]  ;;  %v340_v19 = vld [vmem:[%s1679_s5 + $0x130] sm:$0xff] }
  0x1d   : > { %v342_v20 = vld [vmem:[%s1679_s5 + $0x140] sm:$0xff]  ;;  %339 = vst [vmem:[%s1684_s6 + $0x90] sm:$0xff] %v338_v18  ;;  %341 = vst [vmem:[%s1684_s6 + $0x98] sm:$0xff] %v340_v19  ;;  %v344_v21 = vld [vmem:[%s1679_s5 + $0x150] sm:$0xff] }
  0x1e   : > { %343 = vst [vmem:[%s1684_s6 + $0xa0] sm:$0xff] %v342_v20  ;;  %v346_v22 = vld [vmem:[%s1679_s5 + $0x160] sm:$0xff]  ;;  %v348_v23 = vld [vmem:[%s1679_s5 + $0x170] sm:$0xff]  ;;  %345 = vst [vmem:[%s1684_s6 + $0xa8] sm:$0xff] %v344_v21 }
  0x1f   : > { %347 = vst [vmem:[%s1684_s6 + $0xb0] sm:$0xff] %v346_v22  ;;  %349 = vst [vmem:[%s1684_s6 + $0xb8] sm:$0xff] %v348_v23  ;;  %v350_v24 = vld [vmem:[%s1679_s5 + $0x180] sm:$0xff]  ;;  %v352_v25 = vld [vmem:[%s1679_s5 + $0x190] sm:$0xff] }
  0x20   : > { %v354_v26 = vld [vmem:[%s1679_s5 + $0x1a0] sm:$0xff]  ;;  %351 = vst [vmem:[%s1684_s6 + $0xc0] sm:$0xff] %v350_v24  ;;  %353 = vst [vmem:[%s1684_s6 + $0xc8] sm:$0xff] %v352_v25  ;;  %v356_v27 = vld [vmem:[%s1679_s5 + $0x1b0] sm:$0xff] }
  0x21   : > { %355 = vst [vmem:[%s1684_s6 + $0xd0] sm:$0xff] %v354_v26  ;;  %v358_v28 = vld [vmem:[%s1679_s5 + $0x1c0] sm:$0xff]  ;;  %v360_v29 = vld [vmem:[%s1679_s5 + $0x1d0] sm:$0xff]  ;;  %357 = vst [vmem:[%s1684_s6 + $0xd8] sm:$0xff] %v356_v27 }
  0x22   : > { %359 = vst [vmem:[%s1684_s6 + $0xe0] sm:$0xff] %v358_v28  ;;  %361 = vst [vmem:[%s1684_s6 + $0xe8] sm:$0xff] %v360_v29  ;;  %v362_v30 = vld [vmem:[%s1679_s5 + $0x1e0] sm:$0xff]  ;;  %v364_v31 = vld [vmem:[%s1679_s5 + $0x1f0] sm:$0xff] }
  0x23   : > { %363 = vst [vmem:[%s1684_s6 + $0xf0] sm:$0xff] %v362_v30  ;;  %365 = vst [vmem:[%s1684_s6 + $0xf8] sm:$0xff] %v364_v31 }
  0x24 PF: > { %p1362_p8 = scmp.ge.s32.totalorder %s1604_s19, 1  ;;  %p386_p9 = scmp.lt.s32.totalorder %s1604_s19, 3 }
  0x26   : > { %p387_p10 = pnand %p1362_p8, %p386_p9 }
  0x27   : > { %s393_s7 = sand.u32 (!%p387_p10), 1, %s1588_s15   ;;  %s1365_s5 = sshll.u32 (!%p387_p10), %s1596_s17, 1 }
  0x28   : > { %390 = sbr.rel (%p387_p10) target bundleno = 348 (0x15c), region = 70  ;;  %s1750_s8 = sshll.u32 (!%p387_p10), %s393_s7, 8 }
  0x29   : > { %s1759_s13 = scalar_lea.vmem (!%p387_p10), [#allocation3], %s1750_s8  ;;  %p450_p11 = scmp.lt.s32.totalorder (!%p387_p10), %s1365_s5, 3 }
  0x2d   : > { %v1544_v32 = vld [vmem:[%s2036_s0 + $0x4] ss:$8 sps:$4 sm:$0xff]   ;;  %v1494_v34 = vld [vmem:[%s1759_s13 + $0x74] ss:$8 sps:$4 sm:$0xff]   ;;  %v1496_v35 = vld [vmem:[%s1759_s13 + $0x70] ss:$8 sps:$4 sm:$0xff]   ;;  %v1031_v16 = vlaneseq }
  0x2e   : > { %v1547_v33 = vld [vmem:[%s2036_s0 + $0x44] ss:$8 sps:$4 sm:$0xff]   ;;  %849 = vmatprep.mubr.bf16.mxu0 %v1544_v32  ;;  %817 = vmatprep.subr.bf16.mxu0 %v1494_v34  ;;  %v1499_v37 = vld [vmem:[%s1759_s13 + $0x60] ss:$8 sps:$4 sm:$0xff]   ;;  %v1500_v38 = vld [vmem:[%s1759_s13 + $0x54] ss:$8 sps:$4 sm:$0xff]  }
  0x2f   : > { %889 = vmatprep.mubr.bf16.mxu1 %v1547_v33  ;;  %1422 = vmatprep.subr.bf16.mxu1 %v1494_v34  ;;  %v1497_v36 = vld [vmem:[%s1759_s13 + $0x64] ss:$8 sps:$4 sm:$0xff]   ;;  %v1502_v39 = vld [vmem:[%s1759_s13 + $0x50] ss:$8 sps:$4 sm:$0xff]   ;;  %v1505_v41 = vld [vmem:[%s1759_s13 + $0x40] ss:$8 sps:$4 sm:$0xff]  }
  0x30   : > { %818 = vmatpush1.bf16.msra.mxu0 %v1496_v35  ;;  %1438 = vmatpush1.bf16.msra.mxu1 %v1496_v35  ;;  %v1503_v40 = vld [vmem:[%s1759_s13 + $0x44] ss:$8 sps:$4 sm:$0xff]   ;;  %v1506_v42 = vld [vmem:[%s1759_s13 + $0x34] ss:$8 sps:$4 sm:$0xff]   ;;  %v1508_v43 = vld [vmem:[%s1759_s13 + $0x30] ss:$8 sps:$4 sm:$0xff]  }
  0x31   : > { %819 = vmatprep.subr.bf16.mxu0 %v1497_v36  ;;  %1423 = vmatprep.subr.bf16.mxu1 %v1497_v36  ;;  %v1509_v44 = vld [vmem:[%s1759_s13 + $0x24] ss:$8 sps:$4 sm:$0xff]   ;;  %v1511_v45 = vld [vmem:[%s1759_s13 + $0x20] ss:$8 sps:$4 sm:$0xff]   ;;  %v1512_v46 = vld [vmem:[%s1759_s13 + $0x14] ss:$8 sps:$4 sm:$0xff]  }
  0x32   : > { %v1514_v47 = vld [vmem:[%s1759_s13 + $0x10] ss:$8 sps:$4 sm:$0xff]   ;;  %v1515_v48 = vld [vmem:[%s1759_s13 + $0x4] ss:$8 sps:$4 sm:$0xff]   ;;  %v1517_v49 = vld [vmem:[%s1759_s13] ss:$8 sps:$4 sm:$0xff]  }
  0x33   : > { %v1518_v50 = vld [vmem:[%s1759_s13 + $0xf4] ss:$8 sps:$4 sm:$0xff]   ;;  %v1520_v51 = vld [vmem:[%s1759_s13 + $0xf0] ss:$8 sps:$4 sm:$0xff]   ;;  %v1521_v52 = vld [vmem:[%s1759_s13 + $0xe4] ss:$8 sps:$4 sm:$0xff]  }
  0x34   : > { %820 = vmatpush1.bf16.msra.mxu0 %v1499_v37  ;;  %1439 = vmatpush1.bf16.msra.mxu1 %v1499_v37  ;;  %v1523_v53 = vld [vmem:[%s1759_s13 + $0xe0] ss:$8 sps:$4 sm:$0xff]   ;;  %v1524_v54 = vld [vmem:[%s1759_s13 + $0xd4] ss:$8 sps:$4 sm:$0xff]   ;;  %v1526_v55 = vld [vmem:[%s1759_s13 + $0xd0] ss:$8 sps:$4 sm:$0xff]  }
  0x35   : > { %821 = vmatprep.subr.bf16.mxu0 %v1500_v38  ;;  %1424 = vmatprep.subr.bf16.mxu1 %v1500_v38  ;;  %v1527_v56 = vld [vmem:[%s1759_s13 + $0xc4] ss:$8 sps:$4 sm:$0xff]   ;;  %v1529_v57 = vld [vmem:[%s1759_s13 + $0xc0] ss:$8 sps:$4 sm:$0xff]   ;;  %v1530_v58 = vld [vmem:[%s1759_s13 + $0xb4] ss:$8 sps:$4 sm:$0xff]  }
  0x36   : > { %v1532_v59 = vld [vmem:[%s1759_s13 + $0xb0] ss:$8 sps:$4 sm:$0xff]   ;;  %v1533_v60 = vld [vmem:[%s1759_s13 + $0xa4] ss:$8 sps:$4 sm:$0xff]   ;;  %v1535_v61 = vld [vmem:[%s1759_s13 + $0xa0] ss:$8 sps:$4 sm:$0xff]  }
  0x37   : > { %v1536_v62 = vld [vmem:[%s1759_s13 + $0x94] ss:$8 sps:$4 sm:$0xff]   ;;  %v1538_v63 = vld [vmem:[%s1759_s13 + $0x90] ss:$8 sps:$4 sm:$0xff]   ;;  %v1539_v0 = vld [vmem:[%s1759_s13 + $0x84] ss:$8 sps:$4 sm:$0xff]  }
  0x38   : > { %822 = vmatpush1.bf16.msra.mxu0 %v1502_v39  ;;  %1440 = vmatpush1.bf16.msra.mxu1 %v1502_v39  ;;  %v1541_v1 = vld [vmem:[%s1759_s13 + $0x80] ss:$8 sps:$4 sm:$0xff]   ;;  %v1548_v4 = vld [vmem:[%s2036_s0 + $0x14] ss:$8 sps:$4 sm:$0xff]   ;;  %v1552_v6 = vld [vmem:[%s2036_s0 + $0x10] ss:$8 sps:$4 sm:$0xff]  }
  0x39   : > { %823 = vmatprep.subr.bf16.mxu0 %v1503_v40  ;;  %1425 = vmatprep.subr.bf16.mxu1 %v1503_v40  ;;  %v1542_v2 = vld [vmem:[%s2036_s0] ss:$8 sps:$4 sm:$0xff]   ;;  %v1550_v5 = vld [vmem:[%s2036_s0 + $0x54] ss:$8 sps:$4 sm:$0xff]   ;;  %v1553_v7 = vld [vmem:[%s2036_s0 + $0x50] ss:$8 sps:$4 sm:$0xff]  }
  0x3a   : > { %v1545_v3 = vld [vmem:[%s2036_s0 + $0x40] ss:$8 sps:$4 sm:$0xff]   ;;  %v1554_v8 = vld [vmem:[%s2036_s0 + $0x24] ss:$8 sps:$4 sm:$0xff]   ;;  %v1560_v12 = vld [vmem:[%s2036_s0 + $0x34] ss:$8 sps:$4 sm:$0xff]  }
  0x3b   : > { %v1556_v9 = vld [vmem:[%s2036_s0 + $0x64] ss:$8 sps:$4 sm:$0xff]   ;;  %v1558_v10 = vld [vmem:[%s2036_s0 + $0x20] ss:$8 sps:$4 sm:$0xff]   ;;  %v1562_v13 = vld [vmem:[%s2036_s0 + $0x74] ss:$8 sps:$4 sm:$0xff]  }
  0x3c   : > { %824 = vmatpush1.bf16.msra.mxu0 %v1505_v41  ;;  %1441 = vmatpush1.bf16.msra.mxu1 %v1505_v41  ;;  %v1559_v11 = vld [vmem:[%s2036_s0 + $0x60] ss:$8 sps:$4 sm:$0xff]   ;;  %v1564_v14 = vld [vmem:[%s2036_s0 + $0x30] ss:$8 sps:$4 sm:$0xff]   ;;  %s2049_s5 = smov (!%p450_p11, %s1365_s5), 3  ;;  %v1032_v17 = vshrl.u32 %v1031_v16, 7 }
  0x3d   : > { %825 = vmatprep.subr.bf16.mxu0 %v1506_v42  ;;  %1426 = vmatprep.subr.bf16.mxu1 %v1506_v42  ;;  %v1565_v15 = vld [vmem:[%s2036_s0 + $0x70] ss:$8 sps:$4 sm:$0xff]   ;;  %s452_s9 = scalar_lea.vmem %s2038_s2, %s2049_s5  ;;  %s457_s12 = scalar_lea.vmem %s2039_s3, %s2049_s5 }
  0x3e   : > { %v1033_v18 = vsub.s32 0, %v1032_v17  ;;  %v1029_v19 = vld [vmem:[%s452_s9] sm:$0x3]  ;;  %v1037_v20 = vsub.s32 1, %v1032_v17  ;;  %s1857_s13 = scalar_lea.vmem [#allocation4], %s1750_s8  ;;  %s1421_s8 = sshll.u32 (%p1666_p6), %s1596_s17, 4 }
  0x3f   : > { %v1073_v21 = vld [vmem:[%s457_s12] sm:$0x3]  ;;  %s1958_s21 = scalar_lea.vmem (%p1666_p6), %s2040_s4, %s1421_s8 }
  0x40   : > { %826 = vmatpush1.bf16.msra.mxu0 %v1508_v43  ;;  %1442 = vmatpush1.bf16.msra.mxu1 %v1508_v43  ;;  %v1842_v22 = vrot.slane %v1029_v19, %v1033_v18  ;;  %v1844_v23 = vrot.slane %v1073_v21, %v1033_v18  ;;  %v1846_v24 = vrot.slane %v1029_v19, %v1037_v20 }
  0x41   : > { %827 = vmatprep.subr.bf16.mxu0 %v1509_v44  ;;  %1427 = vmatprep.subr.bf16.mxu1 %v1509_v44  ;;  %v1850_v29 = vrot.slane %v1073_v21, %v1037_v20 }
  0x44   : > { %828 = vmatpush1.bf16.msra.mxu0 %v1511_v45  ;;  %1443 = vmatpush1.bf16.msra.mxu1 %v1511_v45 }
  0x45   : > { %829 = vmatprep.subr.bf16.mxu0 %v1512_v46  ;;  %1428 = vmatprep.subr.bf16.mxu1 %v1512_v46 }
  0x48   : > { %830 = vmatpush1.bf16.msra.mxu0 %v1514_v47  ;;  %1444 = vmatpush1.bf16.msra.mxu1 %v1514_v47 }
  0x49   : > { %831 = vmatprep.subr.bf16.mxu0 %v1515_v48  ;;  %1429 = vmatprep.subr.bf16.mxu1 %v1515_v48 }
  0x4c   : > { %832 = vmatpush1.bf16.msra.mxu0 %v1517_v49  ;;  %1445 = vmatpush1.bf16.msra.mxu1 %v1517_v49 }
  0x4d   : > { %833 = vmatprep.subr.bf16.mxu0 %v1518_v50  ;;  %1430 = vmatprep.subr.bf16.mxu1 %v1518_v50 }
  0x50   : > { %834 = vmatpush2.bf16.msra.mxu0 %v1520_v51  ;;  %1446 = vmatpush2.bf16.msra.mxu1 %v1520_v51 }
  0x51   : > { %835 = vmatprep.subr.bf16.mxu0 %v1521_v52  ;;  %1431 = vmatprep.subr.bf16.mxu1 %v1521_v52 }
  0x54   : > { %836 = vmatpush2.bf16.msra.mxu0 %v1523_v53  ;;  %1447 = vmatpush2.bf16.msra.mxu1 %v1523_v53 }
  0x55   : > { %837 = vmatprep.subr.bf16.mxu0 %v1524_v54  ;;  %1432 = vmatprep.subr.bf16.mxu1 %v1524_v54 }
  0x58   : > { %838 = vmatpush2.bf16.msra.mxu0 %v1526_v55  ;;  %1448 = vmatpush2.bf16.msra.mxu1 %v1526_v55 }
  0x59   : > { %839 = vmatprep.subr.bf16.mxu0 %v1527_v56  ;;  %1433 = vmatprep.subr.bf16.mxu1 %v1527_v56 }
  0x5c   : > { %840 = vmatpush2.bf16.msra.mxu0 %v1529_v57  ;;  %1449 = vmatpush2.bf16.msra.mxu1 %v1529_v57 }
  0x5d   : > { %841 = vmatprep.subr.bf16.mxu0 %v1530_v58  ;;  %1434 = vmatprep.subr.bf16.mxu1 %v1530_v58 }
  0x60   : > { %842 = vmatpush2.bf16.msra.mxu0 %v1532_v59  ;;  %1450 = vmatpush2.bf16.msra.mxu1 %v1532_v59 }
  0x61   : > { %843 = vmatprep.subr.bf16.mxu0 %v1533_v60  ;;  %1435 = vmatprep.subr.bf16.mxu1 %v1533_v60 }
  0x64   : > { %844 = vmatpush2.bf16.msra.mxu0 %v1535_v61  ;;  %1451 = vmatpush2.bf16.msra.mxu1 %v1535_v61 }
  0x65   : > { %845 = vmatprep.subr.bf16.mxu0 %v1536_v62  ;;  %1436 = vmatprep.subr.bf16.mxu1 %v1536_v62 }
  0x68   : > { %846 = vmatpush2.bf16.msra.mxu0 %v1538_v63  ;;  %1452 = vmatpush2.bf16.msra.mxu1 %v1538_v63 }
  0x69   : > { %847 = vmatprep.subr.bf16.mxu0 %v1539_v0  ;;  %1437 = vmatprep.subr.bf16.mxu1 %v1539_v0 }
  0x6c   : > { %848 = vmatpush2.bf16.msra.mxu0 %v1541_v1  ;;  %1453 = vmatpush2.bf16.msra.mxu1 %v1541_v1 }
  0x6f   : > { %850 = vmatmul.mubr.bf16.vlgmr.msra.gmra.mxu0 %v1542_v2  ;;  %890 = vmatmul.mubr.bf16.vlgmr.msra.gmra.mxu1 %v1545_v3 }
  0x70   : > { %859 = vmatprep.mubr.bf16.mxu0 %v1548_v4  ;;  %899 = vmatprep.mubr.bf16.mxu1 %v1550_v5 }
  0x77   : > { %860 = vmatmul.mubr.bf16.gmra.mxu0 %v1552_v6  ;;  %900 = vmatmul.mubr.bf16.gmra.mxu1 %v1553_v7 }
  0x78   : > { %869 = vmatprep.mubr.bf16.mxu0 %v1554_v8  ;;  %909 = vmatprep.mubr.bf16.mxu1 %v1556_v9 }
  0x7f   : > { %870 = vmatmul.mubr.bf16.gmra.mxu0 %v1558_v10  ;;  %910 = vmatmul.mubr.bf16.gmra.mxu1 %v1559_v11 }
  0x80   : > { %879 = vmatprep.mubr.bf16.mxu0 %v1560_v12  ;;  %919 = vmatprep.mubr.bf16.mxu1 %v1562_v13 }
  0x87   : > { %880 = vmatmul.mubr.bf16.gmra.mxu0 %v1564_v14  ;;  %920 = vmatmul.mubr.bf16.gmra.mxu1 %v1565_v15 }
 0x12f   : > { %v851_v25 = vpop.f32.mrf.mxu0  ;;  %v891_v26 = vpop.f32.mrf.mxu1 }
 0x130   : > { %v1041_v27 = vmul.f32 %v1842_v22, %v851_v25  ;;  %v1057_v28 = vmul.f32 %v1842_v22, %v891_v26 }
 0x131   : > { %v853_v30 = vpop.f32.mrf.mxu0  ;;  %v893_v31 = vpop.f32.mrf.mxu1 }
 0x132   : > { %v1085_v32 = vadd.f32 %v1844_v23, %v1041_v27  ;;  %v1101_v33 = vadd.f32 %v1844_v23, %v1057_v28  ;;  %v1042_v34 = vmul.f32 %v1846_v24, %v853_v30  ;;  %v1058_v35 = vmul.f32 %v1846_v24, %v893_v31 }
 0x133   : > { %v855_v36 = vpop.f32.mrf.mxu0  ;;  %v895_v37 = vpop.f32.mrf.mxu1 }
 0x134   : > { %1117 = vst [vmem:[%s1857_s13] sm:$0xff] %v1085_v32  ;;  %1133 = vst [vmem:[%s1857_s13 + $0x80] sm:$0xff] %v1101_v33  ;;  %v1086_v38 = vadd.f32 %v1850_v29, %v1042_v34  ;;  %v1102_v39 = vadd.f32 %v1850_v29, %v1058_v35  ;;  %v1043_v40 = vmul.f32 %v1842_v22, %v855_v36 }
 0x135   : > { %v1059_v41 = vmul.f32 %v1842_v22, %v895_v37  ;;  %v857_v42 = vpop.f32.mrf.mxu0  ;;  %v897_v43 = vpop.f32.mrf.mxu1 }
 0x136   : > { %1118 = vst [vmem:[%s1857_s13 + $0x8] sm:$0xff] %v1086_v38  ;;  %1134 = vst [vmem:[%s1857_s13 + $0x88] sm:$0xff] %v1102_v39  ;;  %v1087_v44 = vadd.f32 %v1844_v23, %v1043_v40  ;;  %v1044_v46 = vmul.f32 %v1846_v24, %v857_v42  ;;  %v1060_v47 = vmul.f32 %v1846_v24, %v897_v43 }
 0x137   : > { %v1103_v45 = vadd.f32 %v1844_v23, %v1059_v41  ;;  %v861_v48 = vpop.f32.mrf.mxu0  ;;  %v901_v49 = vpop.f32.mrf.mxu1 }
 0x138   : > { %1119 = vst [vmem:[%s1857_s13 + $0x10] sm:$0xff] %v1087_v44  ;;  %v1088_v50 = vadd.f32 %v1850_v29, %v1044_v46  ;;  %v1104_v51 = vadd.f32 %v1850_v29, %v1060_v47  ;;  %v1045_v52 = vmul.f32 %v1842_v22, %v861_v48  ;;  %v1061_v53 = vmul.f32 %v1842_v22, %v901_v49 }
 0x139   : > { %1135 = vst [vmem:[%s1857_s13 + $0x90] sm:$0xff] %v1103_v45  ;;  %v863_v54 = vpop.f32.mrf.mxu0  ;;  %v903_v55 = vpop.f32.mrf.mxu1 }
 0x13a   : > { %1120 = vst [vmem:[%s1857_s13 + $0x18] sm:$0xff] %v1088_v50  ;;  %1136 = vst [vmem:[%s1857_s13 + $0x98] sm:$0xff] %v1104_v51  ;;  %v1089_v56 = vadd.f32 %v1844_v23, %v1045_v52  ;;  %v1105_v57 = vadd.f32 %v1844_v23, %v1061_v53  ;;  %v1046_v58 = vmul.f32 %v1846_v24, %v863_v54 }
 0x13b   : > { %v1062_v59 = vmul.f32 %v1846_v24, %v903_v55  ;;  %v865_v60 = vpop.f32.mrf.mxu0  ;;  %v905_v61 = vpop.f32.mrf.mxu1 }
 0x13c   : > { %1121 = vst [vmem:[%s1857_s13 + $0x20] sm:$0xff] %v1089_v56  ;;  %1137 = vst [vmem:[%s1857_s13 + $0xa0] sm:$0xff] %v1105_v57  ;;  %v1090_v62 = vadd.f32 %v1850_v29, %v1046_v58  ;;  %v1047_v0 = vmul.f32 %v1842_v22, %v865_v60  ;;  %v1063_v1 = vmul.f32 %v1842_v22, %v905_v61 }
 0x13d   : > { %v1106_v63 = vadd.f32 %v1850_v29, %v1062_v59  ;;  %v867_v2 = vpop.f32.mrf.mxu0  ;;  %v907_v3 = vpop.f32.mrf.mxu1 }
 0x13e   : > { %1122 = vst [vmem:[%s1857_s13 + $0x28] sm:$0xff] %v1090_v62  ;;  %v1091_v4 = vadd.f32 %v1844_v23, %v1047_v0  ;;  %v1107_v5 = vadd.f32 %v1844_v23, %v1063_v1  ;;  %v1048_v6 = vmul.f32 %v1846_v24, %v867_v2  ;;  %v1064_v7 = vmul.f32 %v1846_v24, %v907_v3 }
 0x13f   : > { %1138 = vst [vmem:[%s1857_s13 + $0xa8] sm:$0xff] %v1106_v63  ;;  %v871_v8 = vpop.f32.mrf.mxu0  ;;  %v911_v9 = vpop.f32.mrf.mxu1 }
 0x140   : > { %1123 = vst [vmem:[%s1857_s13 + $0x30] sm:$0xff] %v1091_v4  ;;  %1139 = vst [vmem:[%s1857_s13 + $0xb0] sm:$0xff] %v1107_v5  ;;  %v1092_v10 = vadd.f32 %v1850_v29, %v1048_v6  ;;  %v1108_v11 = vadd.f32 %v1850_v29, %v1064_v7  ;;  %v1049_v12 = vmul.f32 %v1842_v22, %v871_v8 }
 0x141   : > { %v1065_v13 = vmul.f32 %v1842_v22, %v911_v9  ;;  %v873_v14 = vpop.f32.mrf.mxu0  ;;  %v913_v15 = vpop.f32.mrf.mxu1 }
 0x142   : > { %1124 = vst [vmem:[%s1857_s13 + $0x38] sm:$0xff] %v1092_v10  ;;  %1140 = vst [vmem:[%s1857_s13 + $0xb8] sm:$0xff] %v1108_v11  ;;  %v1093_v16 = vadd.f32 %v1844_v23, %v1049_v12  ;;  %v1050_v18 = vmul.f32 %v1846_v24, %v873_v14  ;;  %v1066_v19 = vmul.f32 %v1846_v24, %v913_v15  ;;  %v1206_v10 = vld [vmem:[%s1857_s13 + $0x80] sm:$0xff] (%p1666_p6)  ;;  %v1208_v11 = vld [vmem:[%s1857_s13 + $0x88] sm:$0xff] (%p1666_p6) }
 0x143   : > { %v1109_v17 = vadd.f32 %v1844_v23, %v1065_v13  ;;  %v875_v20 = vpop.f32.mrf.mxu0  ;;  %v915_v21 = vpop.f32.mrf.mxu1  ;;  %v1182_v62 = vld [vmem:[%s1857_s13 + $0x20] sm:$0xff] (%p1666_p6)  ;;  %1207 = vst [vmem:[%s1958_s21 + $0x100] sm:$0xff] (%p1666_p6), %v1206_v10  ;;  %1209 = vst [vmem:[%s1958_s21 + $0x108] sm:$0xff] (%p1666_p6), %v1208_v11  ;;  %v1210_v12 = vld [vmem:[%s1857_s13 + $0x90] sm:$0xff] (%p1666_p6) }
 0x144   : > { %1125 = vst [vmem:[%s1857_s13 + $0x40] sm:$0xff] %v1093_v16  ;;  %v1094_v25 = vadd.f32 %v1850_v29, %v1050_v18  ;;  %v1110_v26 = vadd.f32 %v1850_v29, %v1066_v19  ;;  %v1051_v27 = vmul.f32 %v1842_v22, %v875_v20  ;;  %v1067_v28 = vmul.f32 %v1842_v22, %v915_v21  ;;  %v1212_v13 = vld [vmem:[%s1857_s13 + $0x98] sm:$0xff] (%p1666_p6)  ;;  %v1214_v14 = vld [vmem:[%s1857_s13 + $0xa0] sm:$0xff] (%p1666_p6) }
 0x145   : > { %1141 = vst [vmem:[%s1857_s13 + $0xc0] sm:$0xff] %v1109_v17  ;;  %v877_v30 = vpop.f32.mrf.mxu0  ;;  %v917_v31 = vpop.f32.mrf.mxu1  ;;  %v1184_v63 = vld [vmem:[%s1857_s13 + $0x28] sm:$0xff] (%p1666_p6)  ;;  %1183 = vst [vmem:[%s1958_s21 + $0x40] sm:$0xff] (%p1666_p6), %v1182_v62 }
 0x146   : > { %1126 = vst [vmem:[%s1857_s13 + $0x48] sm:$0xff] %v1094_v25  ;;  %1142 = vst [vmem:[%s1857_s13 + $0xc8] sm:$0xff] %v1110_v26  ;;  %v1095_v32 = vadd.f32 %v1844_v23, %v1051_v27  ;;  %v1111_v33 = vadd.f32 %v1844_v23, %v1067_v28  ;;  %v1052_v34 = vmul.f32 %v1846_v24, %v877_v30  ;;  %v1216_v15 = vld [vmem:[%s1857_s13 + $0xa8] sm:$0xff] (%p1666_p6) }
 0x147   : > { %v1068_v35 = vmul.f32 %v1846_v24, %v917_v31  ;;  %v881_v36 = vpop.f32.mrf.mxu0  ;;  %v921_v37 = vpop.f32.mrf.mxu1  ;;  %1185 = vst [vmem:[%s1958_s21 + $0x48] sm:$0xff] (%p1666_p6), %v1184_v63  ;;  %v1186_v0 = vld [vmem:[%s1857_s13 + $0x30] sm:$0xff] (%p1666_p6)  ;;  %1211 = vst [vmem:[%s1958_s21 + $0x120] sm:$0xff] (%p1666_p6), %v1210_v12 }
 0x148   : > { %1127 = vst [vmem:[%s1857_s13 + $0x50] sm:$0xff] %v1095_v32  ;;  %1143 = vst [vmem:[%s1857_s13 + $0xd0] sm:$0xff] %v1111_v33  ;;  %v1096_v38 = vadd.f32 %v1850_v29, %v1052_v34  ;;  %v1053_v40 = vmul.f32 %v1842_v22, %v881_v36  ;;  %v1069_v41 = vmul.f32 %v1842_v22, %v921_v37  ;;  %v1218_v16 = vld [vmem:[%s1857_s13 + $0xb0] sm:$0xff] (%p1666_p6) }
 0x149   : > { %v1112_v39 = vadd.f32 %v1850_v29, %v1068_v35  ;;  %v883_v42 = vpop.f32.mrf.mxu0  ;;  %v923_v43 = vpop.f32.mrf.mxu1  ;;  %v1188_v1 = vld [vmem:[%s1857_s13 + $0x38] sm:$0xff] (%p1666_p6)  ;;  %1187 = vst [vmem:[%s1958_s21 + $0x60] sm:$0xff] (%p1666_p6), %v1186_v0  ;;  %1213 = vst [vmem:[%s1958_s21 + $0x128] sm:$0xff] (%p1666_p6), %v1212_v13 }
 0x14a   : > { %1128 = vst [vmem:[%s1857_s13 + $0x58] sm:$0xff] %v1096_v38  ;;  %v1097_v44 = vadd.f32 %v1844_v23, %v1053_v40  ;;  %v1113_v45 = vadd.f32 %v1844_v23, %v1069_v41  ;;  %v1054_v46 = vmul.f32 %v1846_v24, %v883_v42  ;;  %v1070_v47 = vmul.f32 %v1846_v24, %v923_v43  ;;  %v1220_v17 = vld [vmem:[%s1857_s13 + $0xb8] sm:$0xff] (%p1666_p6) }
 0x14b   : > { %1144 = vst [vmem:[%s1857_s13 + $0xd8] sm:$0xff] %v1112_v39  ;;  %v885_v48 = vpop.f32.mrf.mxu0  ;;  %v925_v49 = vpop.f32.mrf.mxu1  ;;  %v1190_v2 = vld [vmem:[%s1857_s13 + $0x40] sm:$0xff] (%p1666_p6)  ;;  %1189 = vst [vmem:[%s1958_s21 + $0x68] sm:$0xff] (%p1666_p6), %v1188_v1 }
 0x14c   : > { %1129 = vst [vmem:[%s1857_s13 + $0x60] sm:$0xff] %v1097_v44  ;;  %1145 = vst [vmem:[%s1857_s13 + $0xe0] sm:$0xff] %v1113_v45  ;;  %v1098_v50 = vadd.f32 %v1850_v29, %v1054_v46  ;;  %v1114_v51 = vadd.f32 %v1850_v29, %v1070_v47  ;;  %v1055_v52 = vmul.f32 %v1842_v22, %v885_v48  ;;  %v1222_v18 = vld [vmem:[%s1857_s13 + $0xc0] sm:$0xff] (%p1666_p6) }
 0x14d   : > { %v1071_v53 = vmul.f32 %v1842_v22, %v925_v49  ;;  %v887_v54 = vpop.f32.mrf.mxu0  ;;  %v927_v55 = vpop.f32.mrf.mxu1  ;;  %v1174_v22 = vld [vmem:[%s1857_s13] sm:$0xff] (%p1666_p6)  ;;  %1191 = vst [vmem:[%s1958_s21 + $0x80] sm:$0xff] (%p1666_p6), %v1190_v2  ;;  %v1192_v3 = vld [vmem:[%s1857_s13 + $0x48] sm:$0xff] (%p1666_p6)  ;;  %1215 = vst [vmem:[%s1958_s21 + $0x140] sm:$0xff] (%p1666_p6), %v1214_v14 }
 0x14e   : > { %1130 = vst [vmem:[%s1857_s13 + $0x68] sm:$0xff] %v1098_v50  ;;  %1146 = vst [vmem:[%s1857_s13 + $0xe8] sm:$0xff] %v1114_v51  ;;  %v1099_v56 = vadd.f32 %v1844_v23, %v1055_v52  ;;  %v1056_v58 = vmul.f32 %v1846_v24, %v887_v54  ;;  %v1072_v59 = vmul.f32 %v1846_v24, %v927_v55  ;;  %1155 = sbr.rel (!%p1666_p6) target bundleno = 348 (0x15c), region = 86  ;;  %v1178_v24 = vld [vmem:[%s1857_s13 + $0x10] sm:$0xff] (%p1666_p6)  ;;  %v1224_v19 = vld [vmem:[%s1857_s13 + $0xc8] sm:$0xff] (%p1666_p6) }
 0x14f   : > { %v1115_v57 = vadd.f32 %v1844_v23, %v1071_v53  ;;  %v1176_v23 = vld [vmem:[%s1857_s13 + $0x8] sm:$0xff] (%p1666_p6)  ;;  %1175 = vst [vmem:[%s1958_s21] sm:$0xff] (%p1666_p6), %v1174_v22  ;;  %1179 = vst [vmem:[%s1958_s21 + $0x20] sm:$0xff] (%p1666_p6), %v1178_v24  ;;  %v1194_v4 = vld [vmem:[%s1857_s13 + $0x50] sm:$0xff] (%p1666_p6) }
 0x150   : > { %1131 = vst [vmem:[%s1857_s13 + $0x70] sm:$0xff] %v1099_v56  ;;  %v1100_v60 = vadd.f32 %v1850_v29, %v1056_v58  ;;  %v1116_v61 = vadd.f32 %v1850_v29, %v1072_v59  ;;  %v1180_v29 = vld [vmem:[%s1857_s13 + $0x18] sm:$0xff] (%p1666_p6)  ;;  %1177 = vst [vmem:[%s1958_s21 + $0x8] sm:$0xff] (%p1666_p6), %v1176_v23  ;;  %v1226_v20 = vld [vmem:[%s1857_s13 + $0xd0] sm:$0xff] (%p1666_p6) }
 0x151   : > { %1147 = vst [vmem:[%s1857_s13 + $0xf0] sm:$0xff] %v1115_v57  ;;  %1181 = vst [vmem:[%s1958_s21 + $0x28] sm:$0xff] (%p1666_p6), %v1180_v29  ;;  %v1196_v5 = vld [vmem:[%s1857_s13 + $0x58] sm:$0xff] (%p1666_p6) }
 0x152   : > { %1132 = vst [vmem:[%s1857_s13 + $0x78] sm:$0xff] %v1100_v60  ;;  %1148 = vst [vmem:[%s1857_s13 + $0xf8] sm:$0xff] %v1116_v61  ;;  %v1228_v21 = vld [vmem:[%s1857_s13 + $0xd8] sm:$0xff] (%p1666_p6) }
 0x153   : > { %1193 = vst [vmem:[%s1958_s21 + $0x88] sm:$0xff] %v1192_v3  ;;  %1195 = vst [vmem:[%s1958_s21 + $0xa0] sm:$0xff] %v1194_v4  ;;  %v1198_v6 = vld [vmem:[%s1857_s13 + $0x60] sm:$0xff] }
 0x154   : > { %1197 = vst [vmem:[%s1958_s21 + $0xa8] sm:$0xff] %v1196_v5  ;;  %1199 = vst [vmem:[%s1958_s21 + $0xc0] sm:$0xff] %v1198_v6  ;;  %v1230_v25 = vld [vmem:[%s1857_s13 + $0xe0] sm:$0xff] }
 0x155   : > { %v1200_v7 = vld [vmem:[%s1857_s13 + $0x68] sm:$0xff]  ;;  %1217 = vst [vmem:[%s1958_s21 + $0x148] sm:$0xff] %v1216_v15  ;;  %1219 = vst [vmem:[%s1958_s21 + $0x160] sm:$0xff] %v1218_v16 }
 0x156   : > { %1201 = vst [vmem:[%s1958_s21 + $0xc8] sm:$0xff] %v1200_v7  ;;  %1221 = vst [vmem:[%s1958_s21 + $0x168] sm:$0xff] %v1220_v17  ;;  %v1232_v26 = vld [vmem:[%s1857_s13 + $0xe8] sm:$0xff] }
 0x157   : > { %v1202_v8 = vld [vmem:[%s1857_s13 + $0x70] sm:$0xff]  ;;  %1223 = vst [vmem:[%s1958_s21 + $0x180] sm:$0xff] %v1222_v18  ;;  %1225 = vst [vmem:[%s1958_s21 + $0x188] sm:$0xff] %v1224_v19 }
 0x158   : > { %1203 = vst [vmem:[%s1958_s21 + $0xe0] sm:$0xff] %v1202_v8  ;;  %1227 = vst [vmem:[%s1958_s21 + $0x1a0] sm:$0xff] %v1226_v20  ;;  %v1234_v27 = vld [vmem:[%s1857_s13 + $0xf0] sm:$0xff] }
 0x159   : > { %v1204_v9 = vld [vmem:[%s1857_s13 + $0x78] sm:$0xff]  ;;  %1229 = vst [vmem:[%s1958_s21 + $0x1a8] sm:$0xff] %v1228_v21  ;;  %1231 = vst [vmem:[%s1958_s21 + $0x1c0] sm:$0xff] %v1230_v25 }
 0x15a   : > { %1205 = vst [vmem:[%s1958_s21 + $0xe8] sm:$0xff] %v1204_v9  ;;  %1233 = vst [vmem:[%s1958_s21 + $0x1c8] sm:$0xff] %v1232_v26  ;;  %v1236_v28 = vld [vmem:[%s1857_s13 + $0xf8] sm:$0xff] }
 0x15b   : > { %1235 = vst [vmem:[%s1958_s21 + $0x1e0] sm:$0xff] %v1234_v27  ;;  %1237 = vst [vmem:[%s1958_s21 + $0x1e8] sm:$0xff] %v1236_v28 }
 0x15c PF: > { %s14_s19 = sadd.s32 1, %s1604_s19   ;;  %s2042_s15 = smov %s1592_s16 }
 0x15d   : > { %p11_p12 = scmp.ge.s32.totalorder %s14_s19, 4   ;;  %s2043_s16 = smov %s1671_s25 }
 0x15e   : > { %s2044_s17 = smov %s1600_s18  ;;  %s2045_s18 = smov %s2047_s20 }
 0x15f   :  { %13 = sbr.rel (!%p11_p12) target bundleno = 3 (0x3), region = 149 }

</bundles_post_ra>
